<compile_context>
chip_gen: v7x
topology: tpu7x:2x2x1
jax: 0.10.0
libtpu: 0.0.40
codegen_flags: <defaults>
</compile_context>

<pallas_src>
import functools

import jax
import jax.numpy as jnp
from jax.experimental import pallas as pl
from jax.experimental.pallas import tpu as pltpu

BN_EPS = 1e-5
NEG_SLOPE = 0.2
TM_CONV1 = 1024          # row tile for the gridded layer-1 matmul

VMEM_SPEC = pl.BlockSpec(memory_space=pltpu.MemorySpace.VMEM)


def _round_up(v, m):
    return (v + m - 1) // m * m


def _leaky(y):
    return jnp.where(y >= 0, y, NEG_SLOPE * y)


# ------------------------------ Pallas kernels ------------------------------

def _conv_act_kernel(x_ref, w_ref, o_ref):
    """One row tile of LeakyReLU(patches @ w) (conv layer 1, no BN)."""
    y = jnp.dot(x_ref[...], w_ref[...], preferred_element_type=jnp.float32)
    o_ref[...] = _leaky(y).astype(o_ref.dtype)


def conv_act(patches, wmat):
    M, K = patches.shape
    N = wmat.shape[1]
    tm = min(TM_CONV1, M)       # >=2 "parallel" row tiles at M=2048 (v7x 2-TC)
    return pl.pallas_call(
        _conv_act_kernel,
        out_shape=jax.ShapeDtypeStruct((M, N), jnp.bfloat16),
        grid=(pl.cdiv(M, tm),),
        in_specs=[pl.BlockSpec((tm, K), lambda i: (i, 0)),
                  pl.BlockSpec((K, N), lambda i: (0, 0))],
        out_specs=pl.BlockSpec((tm, N), lambda i: (i, 0)),
        compiler_params=pltpu.CompilerParams(
            dimension_semantics=("parallel",)),
    )(patches, wmat)


def _conv_bn_act_kernel(x_ref, w_ref, g_ref, b_ref, o_ref):
    """Conv matmul + training-mode BatchNorm + LeakyReLU, fully in-register.

    The whole (M, N) output lives in one tile (M <= 512 here), so batch
    statistics, normalization and the activation are fused into the matmul
    epilogue: a single bf16 store, no f32 raw round trip, no second pass.
    """
    y = jnp.dot(x_ref[...], w_ref[...], preferred_element_type=jnp.float32)
    mean = jnp.mean(y, axis=0, keepdims=True)
    ctr = y - mean
    var = jnp.mean(ctr * ctr, axis=0, keepdims=True)      # biased, like torch BN
    scale = g_ref[...] * jax.lax.rsqrt(var + BN_EPS)
    o_ref[...] = _leaky(ctr * scale + b_ref[...]).astype(o_ref.dtype)


def conv_bn_act(patches, wmat, gamma, beta):
    M, K = patches.shape
    N = wmat.shape[1]
    return pl.pallas_call(
        _conv_bn_act_kernel,
        out_shape=jax.ShapeDtypeStruct((M, N), jnp.bfloat16),
        in_specs=[VMEM_SPEC] * 4,
        out_specs=VMEM_SPEC,
    )(patches, wmat,
      gamma.reshape(1, N).astype(jnp.float32),
      beta.reshape(1, N).astype(jnp.float32))


def _heads_kernel(flat_ref, w1_ref, b1_ref, w2_ref, b2_ref, d_ref, q_ref, *,
                  d_col):
    """Fused D + Q heads.

    The D-head 4x4 valid conv is packed as column `d_col` of the (already
    128-lane padded) Q first-layer weight, so one MXU matmul serves both heads;
    its bias is zero and the logit is read before the ReLU.  The 128-wide
    intermediate never leaves VMEM.
    """
    h = jnp.dot(flat_ref[...], w1_ref[...],
                preferred_element_type=jnp.float32) + b1_ref[...]
    logit = h[:, d_col:d_col + 1]
    d_ref[...] = 1.0 / (1.0 + jnp.exp(-logit))             # sigmoid
    hq = jnp.maximum(h, 0.0).astype(jnp.bfloat16)          # ReLU (Q path)
    q_ref[...] = (jnp.dot(hq, w2_ref[...],
                          preferred_element_type=jnp.float32) + b2_ref[...])


def heads(flat, w1, b1, w2, b2, nl, d_col):
    B = flat.shape[0]
    return pl.pallas_call(
        functools.partial(_heads_kernel, d_col=d_col),
        out_shape=(jax.ShapeDtypeStruct((B, 1), jnp.float32),
                   jax.ShapeDtypeStruct((B, nl), jnp.float32)),
        in_specs=[VMEM_SPEC] * 5,
        out_specs=(VMEM_SPEC, VMEM_SPEC),
    )(flat, w1, b1, w2, b2)


# -------------------------------- JAX glue -----------------------------------

def im2col_nhwc(x, k, stride, pad):
    """x: (B, H, W, C) -> (B*Ho*Wo, k*k*C), columns ordered (kh, kw, c)."""
    B, H, W, C = x.shape
    xp = jnp.pad(x, ((0, 0), (pad, pad), (pad, pad), (0, 0)))
    Ho = (H + 2 * pad - k) // stride + 1
    Wo = (W + 2 * pad - k) // stride + 1
    cols = []
    for i in range(k):
        for j in range(k):
            cols.append(xp[:, i:i + stride * Ho:stride, j:j + stride * Wo:stride, :])
    patches = jnp.stack(cols, axis=3)                      # (B, Ho, Wo, k*k, C)
    return patches.reshape(B * Ho * Wo, k * k * C), Ho, Wo


def prep_conv_weight(w):
    """(Cout, Cin, k, k) torch layout -> (k*k*Cin, Cout) bf16, (kh, kw, c) order."""
    cout, cin, k, _ = w.shape
    return w.transpose(2, 3, 1, 0).reshape(k * k * cin, cout).astype(jnp.bfloat16)


def conv_block(x_nhwc, w, bn=None, stride=2, pad=1):
    """Conv2d(bias=False) [+ BatchNorm2d (batch stats)] + LeakyReLU(0.2), NHWC."""
    B = x_nhwc.shape[0]
    cout = w.shape[0]
    k = w.shape[2]
    patches, Ho, Wo = im2col_nhwc(x_nhwc.astype(jnp.bfloat16), k, stride, pad)
    wmat = prep_conv_weight(w)
    if bn is None:
        y = conv_act(patches, wmat)
    else:
        y = conv_bn_act(patches, wmat, bn[0], bn[1])
    return y.reshape(B, Ho, Wo, cout)


def discriminator_forward(params, x):
    nl = params["wq2"].shape[0]
    cf = params["w4"].shape[0]                      # ndf*8
    x = jnp.transpose(x, (0, 2, 3, 1))              # single NCHW->NHWC boundary

    h = conv_block(x, params["w1"])
    h = conv_block(h, params["w2"], bn=(params["g2"], params["b2"]))
    h = conv_block(h, params["w3"], bn=(params["g3"], params["b3"]))
    feats = conv_block(h, params["w4"], bn=(params["g4"], params["b4"]))

    B, Hf, Wf, _ = feats.shape                      # Hf = Wf = 4
    F = Hf * Wf * cf
    flat = feats.reshape(B, F)                      # (h, w, c) order, bf16

    hid = params["wq1"].shape[0]                    # 100
    d_col = hid                                     # D logit column index
    n1 = _round_up(hid + 1, 128)                    # 128-wide fused head matmul

    # Q linear 1: torch flattens NCHW features as (c, h, w); permute to (h, w, c).
    wq1 = (params["wq1"].reshape(hid, cf, Hf, Wf)
           .transpose(0, 2, 3, 1).reshape(hid, F))
    # D head weight (1, cf, 4, 4) -> (h, w, c) flat, packed as one extra column.
    wd = params["wD"][0].transpose(1, 2, 0).reshape(F)
    w1 = jnp.concatenate(
        [wq1.T, wd[:, None], jnp.zeros((F, n1 - hid - 1), jnp.float32)],
        axis=1).astype(jnp.bfloat16)                # (F, 128)
    b1 = jnp.concatenate(
        [params["bq1"], jnp.zeros((n1 - hid,), jnp.float32)]).reshape(1, n1)
    w2 = jnp.concatenate(
        [params["wq2"].T, jnp.zeros((n1 - hid, nl), jnp.float32)],
        axis=0).astype(jnp.bfloat16)                # rows for D/pad cols are 0
    b2 = params["bq2"].reshape(1, nl).astype(jnp.float32)

    d_out, q_out = heads(flat, w1, b1, w2, b2, nl, d_col)
    return d_out.reshape(-1), q_out                 # matches view(-1,1).squeeze(1)


def init_params(key, nl, ndf, nc):
    ks = jax.random.split(key, 12)
    f32 = jnp.float32
    p = {
        "w1": 0.02 * jax.random.normal(ks[0], (ndf, nc, 4, 4), f32),
        "w2": 0.02 * jax.random.normal(ks[1], (ndf * 2, ndf, 4, 4), f32),
        "w3": 0.02 * jax.random.normal(ks[2], (ndf * 4, ndf * 2, 4, 4), f32),
        "w4": 0.02 * jax.random.normal(ks[3], (ndf * 8, ndf * 4, 4, 4), f32),
        "g2": 1.0 + 0.02 * jax.random.normal(ks[4], (ndf * 2,), f32),
        "b2": 0.02 * jax.random.normal(ks[5], (ndf * 2,), f32),
        "g3": 1.0 + 0.02 * jax.random.normal(ks[6], (ndf * 4,), f32),
        "b3": 0.02 * jax.random.normal(ks[7], (ndf * 4,), f32),
        "g4": 1.0 + 0.02 * jax.random.normal(ks[8], (ndf * 8,), f32),
        "b4": 0.02 * jax.random.normal(ks[9], (ndf * 8,), f32),
        "wD": 0.02 * jax.random.normal(ks[10], (1, ndf * 8, 4, 4), f32),
    }
    kq = jax.random.split(ks[11], 4)
    fan_in = ndf * 8 * 4 * 4
    p["wq1"] = 0.02 * jax.random.normal(kq[0], (100, fan_in), f32)
    p["bq1"] = 0.02 * jax.random.normal(kq[1], (100,), f32)
    p["wq2"] = 0.02 * jax.random.normal(kq[2], (nl, 100), f32)
    p["bq2"] = 0.02 * jax.random.normal(kq[3], (nl,), f32)
    return p


if __name__ == "__main__":
    nl, ndf, nc = 10, 8, 3
    B, H, W = 2, 64, 64     # 64x64 required: 4 stride-2 convs -> 4x4, D conv 4x4 -> 1x1

    key = jax.random.PRNGKey(0)
    kp, kx = jax.random.split(key)
    params = init_params(kp, nl, ndf, nc)
    x = jax.random.normal(kx, (B, nc, H, W), jnp.float32)

    fwd = jax.jit(discriminator_forward)
    d_out, q_out = fwd(params, x)
    jax.block_until_ready((d_out, q_out))

    assert d_out.shape == (B,), d_out.shape
    assert q_out.shape == (B, nl), q_out.shape
    assert bool(jnp.all(jnp.isfinite(d_out))) and bool(jnp.all(jnp.isfinite(q_out)))
    assert bool(jnp.all((d_out > 0.0) & (d_out < 1.0)))   # sigmoid output range
    print("KERNEL_OK")
</pallas_src>

<mosaic_0001>
module attributes {stable_mosaic.version = 11 : i64} {
  func.func @_conv_act_kernel(%arg0: i32, %arg1: memref<1024x48xbf16, #tpu.memory_space<vmem>>, %arg2: memref<48x8xbf16, #tpu.memory_space<vmem>>, %arg3: memref<1024x8xbf16, #tpu.memory_space<vmem>>) attributes {dimension_semantics = [#tpu.dimension_semantics<parallel>], iteration_bounds = array<i64: 2>, scalar_prefetch = 0 : i64, scratch_operands = 0 : i64, tpu.core_type = #tpu.core_type<tc>, window_params = [{transform_indices = @transform_0, window_bounds = array<i64: 1024, 48>}, {pipeline_mode = #tpu.pipeline_mode<synchronous>, transform_indices = @transform_1, window_bounds = array<i64: 48, 8>}, {transform_indices = @transform_2, window_bounds = array<i64: 1024, 8>}]} {
    %c0 = arith.constant 0 : index
    %c0_0 = arith.constant 0 : index
    %0 = vector.load %arg1[%c0, %c0_0] : memref<1024x48xbf16, #tpu.memory_space<vmem>>, vector<1024x48xbf16>
    %c0_1 = arith.constant 0 : index
    %c0_2 = arith.constant 0 : index
    %1 = vector.load %arg2[%c0_1, %c0_2] : memref<48x8xbf16, #tpu.memory_space<vmem>>, vector<48x8xbf16>
    %cst = arith.constant dense<0.000000e+00> : vector<1024x8xf32>
    %2 = tpu.matmul %0, %1, %cst {dimension_numbers = #tpu.dot_dimension_numbers<[1], [0], [0], [1], [0, 0, 1, 1], [], []>} : vector<1024x48xbf16>, vector<48x8xbf16>, vector<1024x8xf32> -> vector<1024x8xf32>
    %cst_3 = arith.constant 0.000000e+00 : f32
    %3 = vector.broadcast %cst_3 : f32 to vector<1024x8xf32>
    %4 = arith.cmpf oge, %2, %3 : vector<1024x8xf32>
    %cst_4 = arith.constant 2.000000e-01 : f32
    %5 = vector.broadcast %cst_4 : f32 to vector<1024x8xf32>
    %6 = arith.mulf %5, %2 : vector<1024x8xf32>
    %7 = arith.select %4, %2, %6 : vector<1024x8xi1>, vector<1024x8xf32>
    %8 = arith.truncf %7 : vector<1024x8xf32> to vector<1024x8xbf16>
    %c0_5 = arith.constant 0 : index
    %c0_6 = arith.constant 0 : index
    %9 = vector.load %arg3[%c0_5, %c0_6] : memref<1024x8xbf16, #tpu.memory_space<vmem>>, vector<1024x8xbf16>
    tpu.vector_store %arg3[%c0_5, %c0_6], %8 {strides = array<i32>} : memref<1024x8xbf16, #tpu.memory_space<vmem>>, vector<1024x8xbf16>,
    return
  }
  func.func @transform_0(%arg0: i32) -> (i32, i32) {
    %c0_i32 = arith.constant 0 : i32
    %c0_i32_0 = arith.constant 0 : i32
    return %arg0, %c0_i32 : i32, i32
  }
  func.func @transform_1(%arg0: i32) -> (i32, i32) {
    %c0_i32 = arith.constant 0 : i32
    %c0_i32_0 = arith.constant 0 : i32
    %c0_i32_1 = arith.constant 0 : i32
    return %c0_i32, %c0_i32_0 : i32, i32
  }
  func.func @transform_2(%arg0: i32) -> (i32, i32) {
    %c0_i32 = arith.constant 0 : i32
    %c0_i32_0 = arith.constant 0 : i32
    return %arg0, %c0_i32 : i32, i32
  }
}

module attributes {stable_mosaic.version = 11 : i64} {
  func.func @_conv_bn_act_kernel(%arg0: memref<512x128xbf16, #tpu.memory_space<vmem>>, %arg1: memref<128x16xbf16, #tpu.memory_space<vmem>>, %arg2: memref<1x16xf32, #tpu.memory_space<vmem>>, %arg3: memref<1x16xf32, #tpu.memory_space<vmem>>, %arg4: memref<512x16xbf16, #tpu.memory_space<vmem>>) attributes {dimension_semantics = [], scalar_prefetch = 0 : i64, scratch_operands = 0 : i64, tpu.core_type = #tpu.core_type<tc>} {
    %c0 = arith.constant 0 : index
    %c0_0 = arith.constant 0 : index
    %0 = vector.load %arg0[%c0, %c0_0] : memref<512x128xbf16, #tpu.memory_space<vmem>>, vector<512x128xbf16>
    %c0_1 = arith.constant 0 : index
    %c0_2 = arith.constant 0 : index
    %1 = vector.load %arg1[%c0_1, %c0_2] : memref<128x16xbf16, #tpu.memory_space<vmem>>, vector<128x16xbf16>
    %cst = arith.constant dense<0.000000e+00> : vector<512x16xf32>
    %2 = tpu.matmul %0, %1, %cst {dimension_numbers = #tpu.dot_dimension_numbers<[1], [0], [0], [1], [0, 0, 1, 1], [], []>} : vector<512x128xbf16>, vector<128x16xbf16>, vector<512x16xf32> -> vector<512x16xf32>
    %cst_3 = arith.constant dense<0.000000e+00> : vector<16xf32>
    %3 = vector.multi_reduction <add>, %2, %cst_3 [0] : vector<512x16xf32> to vector<16xf32>
    %4 = vector.shape_cast %3 : vector<16xf32> to vector<1x16xf32>
    %cst_4 = arith.constant 5.120000e+02 : f32
    %5 = vector.broadcast %cst_4 : f32 to vector<1x16xf32>
    %6 = arith.divf %4, %5 : vector<1x16xf32>
    %7 = vector.broadcast %6 : vector<1x16xf32> to vector<512x16xf32>
    %8 = arith.subf %2, %7 : vector<512x16xf32>
    %9 = arith.mulf %8, %8 : vector<512x16xf32>
    %cst_5 = arith.constant dense<0.000000e+00> : vector<16xf32>
    %10 = vector.multi_reduction <add>, %9, %cst_5 [0] : vector<512x16xf32> to vector<16xf32>
    %11 = vector.shape_cast %10 : vector<16xf32> to vector<1x16xf32>
    %cst_6 = arith.constant 5.120000e+02 : f32
    %12 = vector.broadcast %cst_6 : f32 to vector<1x16xf32>
    %13 = arith.divf %11, %12 : vector<1x16xf32>
    %c0_7 = arith.constant 0 : index
    %c0_8 = arith.constant 0 : index
    %14 = vector.load %arg2[%c0_7, %c0_8] : memref<1x16xf32, #tpu.memory_space<vmem>>, vector<1x16xf32>
    %cst_9 = arith.constant 9.99999974E-6 : f32
    %15 = vector.broadcast %cst_9 : f32 to vector<1x16xf32>
    %16 = arith.addf %13, %15 : vector<1x16xf32>
    %17 = math.rsqrt %16 : vector<1x16xf32>
    %18 = arith.mulf %14, %17 : vector<1x16xf32>
    %19 = vector.broadcast %18 : vector<1x16xf32> to vector<512x16xf32>
    %20 = arith.mulf %8, %19 : vector<512x16xf32>
    %c0_10 = arith.constant 0 : index
    %c0_11 = arith.constant 0 : index
    %21 = vector.load %arg3[%c0_10, %c0_11] : memref<1x16xf32, #tpu.memory_space<vmem>>, vector<1x16xf32>
    %22 = vector.broadcast %21 : vector<1x16xf32> to vector<512x16xf32>
    %23 = arith.addf %20, %22 : vector<512x16xf32>
    %cst_12 = arith.constant 0.000000e+00 : f32
    %24 = vector.broadcast %cst_12 : f32 to vector<512x16xf32>
    %25 = arith.cmpf oge, %23, %24 : vector<512x16xf32>
    %cst_13 = arith.constant 2.000000e-01 : f32
    %26 = vector.broadcast %cst_13 : f32 to vector<512x16xf32>
    %27 = arith.mulf %26, %23 : vector<512x16xf32>
    %28 = arith.select %25, %23, %27 : vector<512x16xi1>, vector<512x16xf32>
    %29 = arith.truncf %28 : vector<512x16xf32> to vector<512x16xbf16>
    %c0_14 = arith.constant 0 : index
    %c0_15 = arith.constant 0 : index
    %30 = vector.load %arg4[%c0_14, %c0_15] : memref<512x16xbf16, #tpu.memory_space<vmem>>, vector<512x16xbf16>
    tpu.vector_store %arg4[%c0_14, %c0_15], %29 {strides = array<i32>} : memref<512x16xbf16, #tpu.memory_space<vmem>>, vector<512x16xbf16>,
    return
  }
}

module attributes {stable_mosaic.version = 11 : i64} {
  func.func @_conv_bn_act_kernel(%arg0: memref<128x256xbf16, #tpu.memory_space<vmem>>, %arg1: memref<256x32xbf16, #tpu.memory_space<vmem>>, %arg2: memref<1x32xf32, #tpu.memory_space<vmem>>, %arg3: memref<1x32xf32, #tpu.memory_space<vmem>>, %arg4: memref<128x32xbf16, #tpu.memory_space<vmem>>) attributes {dimension_semantics = [], scalar_prefetch = 0 : i64, scratch_operands = 0 : i64, tpu.core_type = #tpu.core_type<tc>} {
    %c0 = arith.constant 0 : index
    %c0_0 = arith.constant 0 : index
    %0 = vector.load %arg0[%c0, %c0_0] : memref<128x256xbf16, #tpu.memory_space<vmem>>, vector<128x256xbf16>
    %c0_1 = arith.constant 0 : index
    %c0_2 = arith.constant 0 : index
    %1 = vector.load %arg1[%c0_1, %c0_2] : memref<256x32xbf16, #tpu.memory_space<vmem>>, vector<256x32xbf16>
    %cst = arith.constant dense<0.000000e+00> : vector<128x32xf32>
    %2 = tpu.matmul %0, %1, %cst {dimension_numbers = #tpu.dot_dimension_numbers<[1], [0], [0], [1], [0, 0, 1, 1], [], []>} : vector<128x256xbf16>, vector<256x32xbf16>, vector<128x32xf32> -> vector<128x32xf32>
    %cst_3 = arith.constant dense<0.000000e+00> : vector<32xf32>
    %3 = vector.multi_reduction <add>, %2, %cst_3 [0] : vector<128x32xf32> to vector<32xf32>
    %4 = vector.shape_cast %3 : vector<32xf32> to vector<1x32xf32>
    %cst_4 = arith.constant 1.280000e+02 : f32
    %5 = vector.broadcast %cst_4 : f32 to vector<1x32xf32>
    %6 = arith.divf %4, %5 : vector<1x32xf32>
    %7 = vector.broadcast %6 : vector<1x32xf32> to vector<128x32xf32>
    %8 = arith.subf %2, %7 : vector<128x32xf32>
    %9 = arith.mulf %8, %8 : vector<128x32xf32>
    %cst_5 = arith.constant dense<0.000000e+00> : vector<32xf32>
    %10 = vector.multi_reduction <add>, %9, %cst_5 [0] : vector<128x32xf32> to vector<32xf32>
    %11 = vector.shape_cast %10 : vector<32xf32> to vector<1x32xf32>
    %cst_6 = arith.constant 1.280000e+02 : f32
    %12 = vector.broadcast %cst_6 : f32 to vector<1x32xf32>
    %13 = arith.divf %11, %12 : vector<1x32xf32>
    %c0_7 = arith.constant 0 : index
    %c0_8 = arith.constant 0 : index
    %14 = vector.load %arg2[%c0_7, %c0_8] : memref<1x32xf32, #tpu.memory_space<vmem>>, vector<1x32xf32>
    %cst_9 = arith.constant 9.99999974E-6 : f32
    %15 = vector.broadcast %cst_9 : f32 to vector<1x32xf32>
    %16 = arith.addf %13, %15 : vector<1x32xf32>
    %17 = math.rsqrt %16 : vector<1x32xf32>
    %18 = arith.mulf %14, %17 : vector<1x32xf32>
    %19 = vector.broadcast %18 : vector<1x32xf32> to vector<128x32xf32>
    %20 = arith.mulf %8, %19 : vector<128x32xf32>
    %c0_10 = arith.constant 0 : index
    %c0_11 = arith.constant 0 : index
    %21 = vector.load %arg3[%c0_10, %c0_11] : memref<1x32xf32, #tpu.memory_space<vmem>>, vector<1x32xf32>
    %22 = vector.broadcast %21 : vector<1x32xf32> to vector<128x32xf32>
    %23 = arith.addf %20, %22 : vector<128x32xf32>
    %cst_12 = arith.constant 0.000000e+00 : f32
    %24 = vector.broadcast %cst_12 : f32 to vector<128x32xf32>
    %25 = arith.cmpf oge, %23, %24 : vector<128x32xf32>
    %cst_13 = arith.constant 2.000000e-01 : f32
    %26 = vector.broadcast %cst_13 : f32 to vector<128x32xf32>
    %27 = arith.mulf %26, %23 : vector<128x32xf32>
    %28 = arith.select %25, %23, %27 : vector<128x32xi1>, vector<128x32xf32>
    %29 = arith.truncf %28 : vector<128x32xf32> to vector<128x32xbf16>
    %c0_14 = arith.constant 0 : index
    %c0_15 = arith.constant 0 : index
    %30 = vector.load %arg4[%c0_14, %c0_15] : memref<128x32xbf16, #tpu.memory_space<vmem>>, vector<128x32xbf16>
    tpu.vector_store %arg4[%c0_14, %c0_15], %29 {strides = array<i32>} : memref<128x32xbf16, #tpu.memory_space<vmem>>, vector<128x32xbf16>,
    return
  }
}

module attributes {stable_mosaic.version = 11 : i64} {
  func.func @_conv_bn_act_kernel(%arg0: memref<32x512xbf16, #tpu.memory_space<vmem>>, %arg1: memref<512x64xbf16, #tpu.memory_space<vmem>>, %arg2: memref<1x64xf32, #tpu.memory_space<vmem>>, %arg3: memref<1x64xf32, #tpu.memory_space<vmem>>, %arg4: memref<32x64xbf16, #tpu.memory_space<vmem>>) attributes {dimension_semantics = [], scalar_prefetch = 0 : i64, scratch_operands = 0 : i64, tpu.core_type = #tpu.core_type<tc>} {
    %c0 = arith.constant 0 : index
    %c0_0 = arith.constant 0 : index
    %0 = vector.load %arg0[%c0, %c0_0] : memref<32x512xbf16, #tpu.memory_space<vmem>>, vector<32x512xbf16>
    %c0_1 = arith.constant 0 : index
    %c0_2 = arith.constant 0 : index
    %1 = vector.load %arg1[%c0_1, %c0_2] : memref<512x64xbf16, #tpu.memory_space<vmem>>, vector<512x64xbf16>
    %cst = arith.constant dense<0.000000e+00> : vector<32x64xf32>
    %2 = tpu.matmul %0, %1, %cst {dimension_numbers = #tpu.dot_dimension_numbers<[1], [0], [0], [1], [0, 0, 1, 1], [], []>} : vector<32x512xbf16>, vector<512x64xbf16>, vector<32x64xf32> -> vector<32x64xf32>
    %cst_3 = arith.constant dense<0.000000e+00> : vector<64xf32>
    %3 = vector.multi_reduction <add>, %2, %cst_3 [0] : vector<32x64xf32> to vector<64xf32>
    %4 = vector.shape_cast %3 : vector<64xf32> to vector<1x64xf32>
    %cst_4 = arith.constant 3.200000e+01 : f32
    %5 = vector.broadcast %cst_4 : f32 to vector<1x64xf32>
    %6 = arith.divf %4, %5 : vector<1x64xf32>
    %7 = vector.broadcast %6 : vector<1x64xf32> to vector<32x64xf32>
    %8 = arith.subf %2, %7 : vector<32x64xf32>
    %9 = arith.mulf %8, %8 : vector<32x64xf32>
    %cst_5 = arith.constant dense<0.000000e+00> : vector<64xf32>
    %10 = vector.multi_reduction <add>, %9, %cst_5 [0] : vector<32x64xf32> to vector<64xf32>
    %11 = vector.shape_cast %10 : vector<64xf32> to vector<1x64xf32>
    %cst_6 = arith.constant 3.200000e+01 : f32
    %12 = vector.broadcast %cst_6 : f32 to vector<1x64xf32>
    %13 = arith.divf %11, %12 : vector<1x64xf32>
    %c0_7 = arith.constant 0 : index
    %c0_8 = arith.constant 0 : index
    %14 = vector.load %arg2[%c0_7, %c0_8] : memref<1x64xf32, #tpu.memory_space<vmem>>, vector<1x64xf32>
    %cst_9 = arith.constant 9.99999974E-6 : f32
    %15 = vector.broadcast %cst_9 : f32 to vector<1x64xf32>
    %16 = arith.addf %13, %15 : vector<1x64xf32>
    %17 = math.rsqrt %16 : vector<1x64xf32>
    %18 = arith.mulf %14, %17 : vector<1x64xf32>
    %19 = vector.broadcast %18 : vector<1x64xf32> to vector<32x64xf32>
    %20 = arith.mulf %8, %19 : vector<32x64xf32>
    %c0_10 = arith.constant 0 : index
    %c0_11 = arith.constant 0 : index
    %21 = vector.load %arg3[%c0_10, %c0_11] : memref<1x64xf32, #tpu.memory_space<vmem>>, vector<1x64xf32>
    %22 = vector.broadcast %21 : vector<1x64xf32> to vector<32x64xf32>
    %23 = arith.addf %20, %22 : vector<32x64xf32>
    %cst_12 = arith.constant 0.000000e+00 : f32
    %24 = vector.broadcast %cst_12 : f32 to vector<32x64xf32>
    %25 = arith.cmpf oge, %23, %24 : vector<32x64xf32>
    %cst_13 = arith.constant 2.000000e-01 : f32
    %26 = vector.broadcast %cst_13 : f32 to vector<32x64xf32>
    %27 = arith.mulf %26, %23 : vector<32x64xf32>
    %28 = arith.select %25, %23, %27 : vector<32x64xi1>, vector<32x64xf32>
    %29 = arith.truncf %28 : vector<32x64xf32> to vector<32x64xbf16>
    %c0_14 = arith.constant 0 : index
    %c0_15 = arith.constant 0 : index
    %30 = vector.load %arg4[%c0_14, %c0_15] : memref<32x64xbf16, #tpu.memory_space<vmem>>, vector<32x64xbf16>
    tpu.vector_store %arg4[%c0_14, %c0_15], %29 {strides = array<i32>} : memref<32x64xbf16, #tpu.memory_space<vmem>>, vector<32x64xbf16>,
    return
  }
}

module attributes {stable_mosaic.version = 11 : i64} {
  func.func @_heads_kernel(%arg0: memref<2x1024xbf16, #tpu.memory_space<vmem>>, %arg1: memref<1024x128xbf16, #tpu.memory_space<vmem>>, %arg2: memref<1x128xf32, #tpu.memory_space<vmem>>, %arg3: memref<128x10xbf16, #tpu.memory_space<vmem>>, %arg4: memref<1x10xf32, #tpu.memory_space<vmem>>, %arg5: memref<2x1xf32, #tpu.memory_space<vmem>>, %arg6: memref<2x10xf32, #tpu.memory_space<vmem>>) attributes {dimension_semantics = [], scalar_prefetch = 0 : i64, scratch_operands = 0 : i64, tpu.core_type = #tpu.core_type<tc>} {
    %c0 = arith.constant 0 : index
    %c0_0 = arith.constant 0 : index
    %0 = vector.load %arg0[%c0, %c0_0] : memref<2x1024xbf16, #tpu.memory_space<vmem>>, vector<2x1024xbf16>
    %c0_1 = arith.constant 0 : index
    %c0_2 = arith.constant 0 : index
    %1 = vector.load %arg1[%c0_1, %c0_2] : memref<1024x128xbf16, #tpu.memory_space<vmem>>, vector<1024x128xbf16>
    %cst = arith.constant dense<0.000000e+00> : vector<2x128xf32>
    %2 = tpu.matmul %0, %1, %cst {dimension_numbers = #tpu.dot_dimension_numbers<[1], [0], [0], [1], [0, 0, 1, 1], [], []>} : vector<2x1024xbf16>, vector<1024x128xbf16>, vector<2x128xf32> -> vector<2x128xf32>
    %c0_3 = arith.constant 0 : index
    %c0_4 = arith.constant 0 : index
    %3 = vector.load %arg2[%c0_3, %c0_4] : memref<1x128xf32, #tpu.memory_space<vmem>>, vector<1x128xf32>
    %4 = vector.broadcast %3 : vector<1x128xf32> to vector<2x128xf32>
    %5 = arith.addf %2, %4 : vector<2x128xf32>
    %6 = vector.extract_strided_slice %5 {offsets = [0, 100], sizes = [2, 1], strides = [1, 1]} : vector<2x128xf32> to vector<2x1xf32>
    %cst_5 = arith.constant 0.000000e+00 : f32
    %7 = vector.broadcast %cst_5 : f32 to vector<2x1xf32>
    %8 = arith.subf %7, %6 : vector<2x1xf32>
    %9 = math.exp %8 : vector<2x1xf32>
    %cst_6 = arith.constant 1.000000e+00 : f32
    %10 = vector.broadcast %cst_6 : f32 to vector<2x1xf32>
    %11 = arith.addf %10, %9 : vector<2x1xf32>
    %cst_7 = arith.constant 1.000000e+00 : f32
    %12 = vector.broadcast %cst_7 : f32 to vector<2x1xf32>
    %13 = arith.divf %12, %11 : vector<2x1xf32>
    %c0_8 = arith.constant 0 : index
    %c0_9 = arith.constant 0 : index
    %14 = vector.load %arg5[%c0_8, %c0_9] : memref<2x1xf32, #tpu.memory_space<vmem>>, vector<2x1xf32>
    tpu.vector_store %arg5[%c0_8, %c0_9], %13 {strides = array<i32>} : memref<2x1xf32, #tpu.memory_space<vmem>>, vector<2x1xf32>,
    %cst_10 = arith.constant 0.000000e+00 : f32
    %15 = vector.broadcast %cst_10 : f32 to vector<2x128xf32>
    %16 = arith.maximumf %5, %15 : vector<2x128xf32>
    %17 = arith.truncf %16 : vector<2x128xf32> to vector<2x128xbf16>
    %c0_11 = arith.constant 0 : index
    %c0_12 = arith.constant 0 : index
    %18 = vector.load %arg3[%c0_11, %c0_12] : memref<128x10xbf16, #tpu.memory_space<vmem>>, vector<128x10xbf16>
    %cst_13 = arith.constant dense<0.000000e+00> : vector<2x10xf32>
    %19 = tpu.matmul %17, %18, %cst_13 {dimension_numbers = #tpu.dot_dimension_numbers<[1], [0], [0], [1], [0, 0, 1, 1], [], []>} : vector<2x128xbf16>, vector<128x10xbf16>, vector<2x10xf32> -> vector<2x10xf32>
    %c0_14 = arith.constant 0 : index
    %c0_15 = arith.constant 0 : index
    %20 = vector.load %arg4[%c0_14, %c0_15] : memref<1x10xf32, #tpu.memory_space<vmem>>, vector<1x10xf32>
    %21 = vector.broadcast %20 : vector<1x10xf32> to vector<2x10xf32>
    %22 = arith.addf %19, %21 : vector<2x10xf32>
    %c0_16 = arith.constant 0 : index
    %c0_17 = arith.constant 0 : index
    %23 = vector.load %arg6[%c0_16, %c0_17] : memref<2x10xf32, #tpu.memory_space<vmem>>, vector<2x10xf32>
    tpu.vector_store %arg6[%c0_16, %c0_17], %22 {strides = array<i32>} : memref<2x10xf32, #tpu.memory_space<vmem>>, vector<2x10xf32>,
    return
  }
}

</mosaic_0001>

<bundles_post_ra>
// kernel: discriminator_forward.5
= control target key start
LH: loop header
LB: loop body
LE: loop exit
PB: predicated region body
PF: predicated region fallthrough
CT: control target
= control target key end

     0   :  { %s3142_s9 = smov 0   ;;  %s3564_s0 = inlined_call_operand.vmem [shape: bf16[2048,48], index: 0, kind: input, shape index: {}]   ;;  %s3565_s1 = inlined_call_operand.vmem [shape: bf16[48,8], index: 1, kind: input, shape index: {}]   ;;  %s3566_s2 = inlined_call_operand.vmem [shape: bf16[2048,8], index: 2, kind: output, shape index: {}]  }
   0x1 LB: > { %s2439_s10 = sadd.s32 4294967295, %s3125_s9   ;;  %p2443_p0 = scmp.ge.s32.totalorder %s3125_s9, 1  ;;  %s3125_s9 = sphi %s3142_s9, %s12_s9  }
   0x2   : > { %p113_p1 = scmp.lt.s32.totalorder %s3125_s9, 3 }
   0x4   : > { %p114_p2 = pnand %p2443_p0, %p113_p1 }
   0x5   : > { %v3052_v0 = vld [vmem:[%s3565_s1] sm:$0xff] (!%p114_p2)   ;;  %s2444_s13 = sshll.u32 (!%p114_p2), %s2439_s10, 7  ;;  %v3053_v1 = vld [vmem:[%s3565_s1 + $0x8] sm:$0xff] (!%p114_p2)   ;;  %v3054_v2 = vld [vmem:[%s3565_s1 + $0x10] sm:$0xff] (!%p114_p2)   ;;  %vm620_vm0 = vcmask (!%p114_p2), 392192   ;;  %vm2254_vm3 = vcmask (!%p114_p2), 60416  }
   0x6   : > { %117 = sbr.rel (%p114_p2) target bundleno = 366 (0x16e), region = 28  ;;  %p136_p3 = scmp.lt.s32.totalorder (!%p114_p2), %s2444_s13, 255  ;;  %2904 = vmatprep.subr.bf16.mxu0 (!%p114_p2), %v3052_v0  ;;  %3038 = vmatprep.subr.bf16.mxu1 (!%p114_p2), %v3052_v0 }
   0x7   : > { %2905 = vmatpush3.bf16.msra.mxu0 (!%p114_p2), %v3052_v0  ;;  %3041 = vmatpush3.bf16.msra.mxu1 (!%p114_p2), %v3052_v0 }
   0x8   : > { %2906 = vmatprep.subr.bf16.mxu0 (!%p114_p2), %v3053_v1  ;;  %3039 = vmatprep.subr.bf16.mxu1 (!%p114_p2), %v3053_v1 }
   0xb   : > { %2907 = vmatpush3.bf16.msra.mxu0 (!%p114_p2), %v3053_v1  ;;  %3042 = vmatpush3.bf16.msra.mxu1 (!%p114_p2), %v3053_v1 }
   0xc   : > { %2908 = vmatprep.subr.bf16.mxu0 (!%p114_p2), %v3054_v2  ;;  %3040 = vmatprep.subr.bf16.mxu1 (!%p114_p2), %v3054_v2 }
   0xd   : > { %s3568_s13 = smov (!%p136_p3, %s2444_s13), 255 }
   0xe   : > { %s2445_s18 = sshll.u32 %s3568_s13, 2 }
   0xf   : > { %s3167_s21 = scalar_lea.vmem %s3564_s0, %s2445_s18  ;;  %2909 = vmatpush3.bf16.msra.mxu0 %v3054_v2  ;;  %3043 = vmatpush3.bf16.msra.mxu1 %v3054_v2  ;;  %s3302_s24 = scalar_lea.vmem %s3566_s2, %s2445_s18 }
  0x10   : > { %v3055_v3 = vld [vmem:[%s3167_s21] sm:$0xff]   ;;  %v3057_v5 = vld [vmem:[%s3167_s21 + $0x8] sm:$0xff]   ;;  %v3059_v7 = vld [vmem:[%s3167_s21 + $0x10] sm:$0xff]  }
  0x11   : > { %v3056_v4 = vld [vmem:[%s3167_s21 + $0x100] sm:$0xff]   ;;  %2910 = vmatprep.mubr.msk.bf16.mxu0 %vm620_vm0, %v3055_v3  ;;  %v3058_v6 = vld [vmem:[%s3167_s21 + $0x108] sm:$0xff]   ;;  %v3060_v8 = vld [vmem:[%s3167_s21 + $0x110] sm:$0xff]  }
  0x12   : > { %2974 = vmatprep.mubr.msk.bf16.mxu1 %vm620_vm0, %v3056_v4  ;;  %2911 = vmatmul.mubr.msk.bf16.vlgmr.msra.gmra.mrb[0].mxu0 %vm620_vm0, %v3057_v5  ;;  %v3061_v9 = vld [vmem:[%s3167_s21 + $0x18] sm:$0xff]   ;;  %v3063_v11 = vld [vmem:[%s3167_s21 + $0x20] sm:$0xff]   ;;  %v3065_v13 = vld [vmem:[%s3167_s21 + $0x28] sm:$0xff]  }
  0x13   : > { %2975 = vmatmul.mubr.msk.bf16.vlgmr.msra.gmra.mrb[0].mxu1 %vm620_vm0, %v3058_v6  ;;  %2914 = vmatprep.mubr.msk.bf16.mxu0 %vm620_vm0, %v3059_v7  ;;  %v3062_v10 = vld [vmem:[%s3167_s21 + $0x118] sm:$0xff]   ;;  %v3064_v12 = vld [vmem:[%s3167_s21 + $0x120] sm:$0xff]   ;;  %v3066_v14 = vld [vmem:[%s3167_s21 + $0x128] sm:$0xff]  }
  0x14   : > { %2978 = vmatprep.mubr.msk.bf16.mxu1 %vm620_vm0, %v3060_v8  ;;  %v3067_v15 = vld [vmem:[%s3167_s21 + $0x30] sm:$0xff]   ;;  %v3069_v17 = vld [vmem:[%s3167_s21 + $0x38] sm:$0xff]   ;;  %v3071_v19 = vld [vmem:[%s3167_s21 + $0x40] sm:$0xff]  }
  0x15   : > { %v3068_v16 = vld [vmem:[%s3167_s21 + $0x130] sm:$0xff]   ;;  %v3070_v18 = vld [vmem:[%s3167_s21 + $0x138] sm:$0xff]   ;;  %v3072_v20 = vld [vmem:[%s3167_s21 + $0x140] sm:$0xff]  }
  0x16   : > { %v3073_v21 = vld [vmem:[%s3167_s21 + $0x48] sm:$0xff]   ;;  %v3075_v23 = vld [vmem:[%s3167_s21 + $0x50] sm:$0xff]   ;;  %v3077_v25 = vld [vmem:[%s3167_s21 + $0x58] sm:$0xff]  }
  0x17   : > { %v3074_v22 = vld [vmem:[%s3167_s21 + $0x148] sm:$0xff]   ;;  %v3076_v24 = vld [vmem:[%s3167_s21 + $0x150] sm:$0xff]   ;;  %v3078_v26 = vld [vmem:[%s3167_s21 + $0x158] sm:$0xff]  }
  0x18   : > { %v3079_v27 = vld [vmem:[%s3167_s21 + $0x60] sm:$0xff]   ;;  %v3081_v29 = vld [vmem:[%s3167_s21 + $0x68] sm:$0xff]   ;;  %v3083_v31 = vld [vmem:[%s3167_s21 + $0x70] sm:$0xff]  }
  0x19   : > { %v3080_v28 = vld [vmem:[%s3167_s21 + $0x160] sm:$0xff]   ;;  %v3082_v30 = vld [vmem:[%s3167_s21 + $0x168] sm:$0xff]   ;;  %v3084_v32 = vld [vmem:[%s3167_s21 + $0x170] sm:$0xff]  }
  0x1a   : > { %2915 = vmatmul.mubr.msk.bf16.gmra.mrb[4].mxu0 %vm620_vm0, %v3061_v9  ;;  %v3085_v33 = vld [vmem:[%s3167_s21 + $0x78] sm:$0xff]   ;;  %v3087_v35 = vld [vmem:[%s3167_s21 + $0x80] sm:$0xff]   ;;  %v3089_v37 = vld [vmem:[%s3167_s21 + $0x88] sm:$0xff]  }
  0x1b   : > { %2979 = vmatmul.mubr.msk.bf16.gmra.mrb[4].mxu1 %vm620_vm0, %v3062_v10  ;;  %2918 = vmatprep.mubr.msk.bf16.mxu0 %vm620_vm0, %v3063_v11  ;;  %v3086_v34 = vld [vmem:[%s3167_s21 + $0x178] sm:$0xff]   ;;  %v3088_v36 = vld [vmem:[%s3167_s21 + $0x180] sm:$0xff]   ;;  %v3090_v38 = vld [vmem:[%s3167_s21 + $0x188] sm:$0xff]  }
  0x1c   : > { %2982 = vmatprep.mubr.msk.bf16.mxu1 %vm620_vm0, %v3064_v12  ;;  %v3091_v39 = vld [vmem:[%s3167_s21 + $0x90] sm:$0xff]   ;;  %v3093_v41 = vld [vmem:[%s3167_s21 + $0x98] sm:$0xff]   ;;  %v3095_v43 = vld [vmem:[%s3167_s21 + $0xa0] sm:$0xff]  }
  0x1d   : > { %v3092_v40 = vld [vmem:[%s3167_s21 + $0x190] sm:$0xff]   ;;  %v3094_v42 = vld [vmem:[%s3167_s21 + $0x198] sm:$0xff]   ;;  %v3096_v44 = vld [vmem:[%s3167_s21 + $0x1a0] sm:$0xff]  }
  0x1e   : > { %v3097_v45 = vld [vmem:[%s3167_s21 + $0xa8] sm:$0xff]   ;;  %v3099_v47 = vld [vmem:[%s3167_s21 + $0xb0] sm:$0xff]   ;;  %v3101_v49 = vld [vmem:[%s3167_s21 + $0xb8] sm:$0xff]  }
  0x1f   : > { %v3098_v46 = vld [vmem:[%s3167_s21 + $0x1a8] sm:$0xff]   ;;  %v3100_v48 = vld [vmem:[%s3167_s21 + $0x1b0] sm:$0xff]   ;;  %v3102_v50 = vld [vmem:[%s3167_s21 + $0x1b8] sm:$0xff]  }
  0x20   : > { %v3103_v51 = vld [vmem:[%s3167_s21 + $0xc0] sm:$0xff]   ;;  %v3105_v53 = vld [vmem:[%s3167_s21 + $0xc8] sm:$0xff]   ;;  %v3107_v55 = vld [vmem:[%s3167_s21 + $0xd0] sm:$0xff]  }
  0x21   : > { %v3104_v52 = vld [vmem:[%s3167_s21 + $0x1c0] sm:$0xff]   ;;  %v3106_v54 = vld [vmem:[%s3167_s21 + $0x1c8] sm:$0xff]   ;;  %v3108_v56 = vld [vmem:[%s3167_s21 + $0x1d0] sm:$0xff]  }
  0x22   : > { %2919 = vmatmul.mubr.msk.bf16.gmra.mrb[8].mxu0 %vm620_vm0, %v3065_v13  ;;  %v3109_v57 = vld [vmem:[%s3167_s21 + $0xd8] sm:$0xff]   ;;  %v3111_v59 = vld [vmem:[%s3167_s21 + $0xe0] sm:$0xff]   ;;  %v3113_v61 = vld [vmem:[%s3167_s21 + $0xe8] sm:$0xff]  }
  0x23   : > { %2983 = vmatmul.mubr.msk.bf16.gmra.mrb[8].mxu1 %vm620_vm0, %v3066_v14  ;;  %2922 = vmatprep.mubr.msk.bf16.mxu0 %vm620_vm0, %v3067_v15  ;;  %v3110_v58 = vld [vmem:[%s3167_s21 + $0x1d8] sm:$0xff]   ;;  %v3112_v60 = vld [vmem:[%s3167_s21 + $0x1e0] sm:$0xff]   ;;  %v3114_v62 = vld [vmem:[%s3167_s21 + $0x1e8] sm:$0xff]  }
  0x24   : > { %2986 = vmatprep.mubr.msk.bf16.mxu1 %vm620_vm0, %v3068_v16  ;;  %v3115_v63 = vld [vmem:[%s3167_s21 + $0xf0] sm:$0xff]   ;;  %v3117_v1 = vld [vmem:[%s3167_s21 + $0xf8] sm:$0xff]  }
  0x25   : > { %v3116_v0 = vld [vmem:[%s3167_s21 + $0x1f0] sm:$0xff]   ;;  %v3118_v2 = vld [vmem:[%s3167_s21 + $0x1f8] sm:$0xff]  }
  0x2a   : > { %2923 = vmatmul.mubr.msk.bf16.gmra.mrb[12].mxu0 %vm620_vm0, %v3069_v17 }
  0x2b   : > { %2987 = vmatmul.mubr.msk.bf16.gmra.mrb[12].mxu1 %vm620_vm0, %v3070_v18  ;;  %2926 = vmatprep.mubr.msk.bf16.mxu0 %vm620_vm0, %v3071_v19 }
  0x2c   : > { %2990 = vmatprep.mubr.msk.bf16.mxu1 %vm620_vm0, %v3072_v20 }
  0x32   : > { %2927 = vmatmul.mubr.msk.bf16.gmra.mrb[16].mxu0 %vm620_vm0, %v3073_v21 }
  0x33   : > { %2991 = vmatmul.mubr.msk.bf16.gmra.mrb[16].mxu1 %vm620_vm0, %v3074_v22  ;;  %2930 = vmatprep.mubr.msk.bf16.mxu0 %vm620_vm0, %v3075_v23 }
  0x34   : > { %2994 = vmatprep.mubr.msk.bf16.mxu1 %vm620_vm0, %v3076_v24 }
  0x3a   : > { %2931 = vmatmul.mubr.msk.bf16.gmra.mrb[20].mxu0 %vm620_vm0, %v3077_v25 }
  0x3b   : > { %2995 = vmatmul.mubr.msk.bf16.gmra.mrb[20].mxu1 %vm620_vm0, %v3078_v26  ;;  %2934 = vmatprep.mubr.msk.bf16.mxu0 %vm620_vm0, %v3079_v27 }
  0x3c   : > { %2998 = vmatprep.mubr.msk.bf16.mxu1 %vm620_vm0, %v3080_v28 }
  0x42   : > { %2935 = vmatmul.mubr.msk.bf16.gmra.mrb[24].mxu0 %vm620_vm0, %v3081_v29 }
  0x43   : > { %2999 = vmatmul.mubr.msk.bf16.gmra.mrb[24].mxu1 %vm620_vm0, %v3082_v30  ;;  %2938 = vmatprep.mubr.msk.bf16.mxu0 %vm620_vm0, %v3083_v31 }
  0x44   : > { %3002 = vmatprep.mubr.msk.bf16.mxu1 %vm620_vm0, %v3084_v32 }
  0x4a   : > { %2939 = vmatmul.mubr.msk.bf16.gmra.mrb[28].mxu0 %vm620_vm0, %v3085_v33 }
  0x4b   : > { %3003 = vmatmul.mubr.msk.bf16.gmra.mrb[28].mxu1 %vm620_vm0, %v3086_v34  ;;  %2942 = vmatprep.mubr.msk.bf16.mxu0 %vm620_vm0, %v3087_v35 }
  0x4c   : > { %3006 = vmatprep.mubr.msk.bf16.mxu1 %vm620_vm0, %v3088_v36 }
  0x52   : > { %2943 = vmatmul.mubr.msk.bf16.gmra.mrb[32].mxu0 %vm620_vm0, %v3089_v37 }
  0x53   : > { %3007 = vmatmul.mubr.msk.bf16.gmra.mrb[32].mxu1 %vm620_vm0, %v3090_v38  ;;  %2946 = vmatprep.mubr.msk.bf16.mxu0 %vm620_vm0, %v3091_v39 }
  0x54   : > { %3010 = vmatprep.mubr.msk.bf16.mxu1 %vm620_vm0, %v3092_v40 }
  0x5a   : > { %2947 = vmatmul.mubr.msk.bf16.gmra.mrb[36].mxu0 %vm620_vm0, %v3093_v41 }
  0x5b   : > { %3011 = vmatmul.mubr.msk.bf16.gmra.mrb[36].mxu1 %vm620_vm0, %v3094_v42  ;;  %2950 = vmatprep.mubr.msk.bf16.mxu0 %vm620_vm0, %v3095_v43 }
  0x5c   : > { %3014 = vmatprep.mubr.msk.bf16.mxu1 %vm620_vm0, %v3096_v44 }
  0x62   : > { %2951 = vmatmul.mubr.msk.bf16.gmra.mrb[40].mxu0 %vm620_vm0, %v3097_v45 }
  0x63   : > { %3015 = vmatmul.mubr.msk.bf16.gmra.mrb[40].mxu1 %vm620_vm0, %v3098_v46  ;;  %2954 = vmatprep.mubr.msk.bf16.mxu0 %vm620_vm0, %v3099_v47 }
  0x64   : > { %3018 = vmatprep.mubr.msk.bf16.mxu1 %vm620_vm0, %v3100_v48 }
  0x6a   : > { %2955 = vmatmul.mubr.msk.bf16.gmra.mrb[44].mxu0 %vm620_vm0, %v3101_v49 }
  0x6b   : > { %3019 = vmatmul.mubr.msk.bf16.gmra.mrb[44].mxu1 %vm620_vm0, %v3102_v50  ;;  %2958 = vmatprep.mubr.msk.bf16.mxu0 %vm620_vm0, %v3103_v51 }
  0x6c   : > { %3022 = vmatprep.mubr.msk.bf16.mxu1 %vm620_vm0, %v3104_v52 }
  0x72   : > { %2959 = vmatmul.mubr.msk.bf16.gmra.mrb[48].mxu0 %vm620_vm0, %v3105_v53 }
  0x73   : > { %3023 = vmatmul.mubr.msk.bf16.gmra.mrb[48].mxu1 %vm620_vm0, %v3106_v54  ;;  %2962 = vmatprep.mubr.msk.bf16.mxu0 %vm620_vm0, %v3107_v55 }
  0x74   : > { %3026 = vmatprep.mubr.msk.bf16.mxu1 %vm620_vm0, %v3108_v56 }
  0x7a   : > { %2963 = vmatmul.mubr.msk.bf16.gmra.mrb[52].mxu0 %vm620_vm0, %v3109_v57 }
  0x7b   : > { %3027 = vmatmul.mubr.msk.bf16.gmra.mrb[52].mxu1 %vm620_vm0, %v3110_v58  ;;  %2966 = vmatprep.mubr.msk.bf16.mxu0 %vm620_vm0, %v3111_v59 }
  0x7c   : > { %3030 = vmatprep.mubr.msk.bf16.mxu1 %vm620_vm0, %v3112_v60 }
  0x82   : > { %2967 = vmatmul.mubr.msk.bf16.gmra.mrb[56].mxu0 %vm620_vm0, %v3113_v61 }
  0x83   : > { %3031 = vmatmul.mubr.msk.bf16.gmra.mrb[56].mxu1 %vm620_vm0, %v3114_v62  ;;  %2970 = vmatprep.mubr.msk.bf16.mxu0 %vm620_vm0, %v3115_v63 }
  0x84   : > { %3034 = vmatprep.mubr.msk.bf16.mxu1 %vm620_vm0, %v3116_v0 }
  0x8a   : > { %2971 = vmatmul.mubr.msk.bf16.gmra.mrb[60].mxu0 %vm620_vm0, %v3117_v1 }
  0x8b   : > { %3035 = vmatmul.mubr.msk.bf16.gmra.mrb[60].mxu1 %vm620_vm0, %v3118_v2 }
  0xe5   : > { %v2912_v3 = vpop.f32.mrb[0].mxu0 }
  0xe6   : > { %v2976_v4 = vpop.f32.mrb[0].mxu1  ;;  %vm1360_vm1 = vcmp.ge.f32.partialorder %v2912_v3, 0.0  ;;  %v1488_v5 = vmul.f32 0.2, %v2912_v3  ;;  %v847_v7 = vpop.f32.mrb[1].mxu0 }
  0xe7   : > { %vm1424_vm2 = vcmp.ge.f32.partialorder %v2976_v4, 0.0  ;;  %v1552_v6 = vmul.f32 0.2, %v2976_v4  ;;  %v1103_v8 = vpop.f32.mrb[1].mxu1  ;;  %vm1358_vm4 = vcmp.ge.f32.partialorder %v847_v7, 0.0  ;;  %v2913_v12 = vpop.f32.mrb[2].mxu0 }
  0xe8   : > { %v1616_v9 = vsel %vm1360_vm1, %v2912_v3, %v1488_v5  ;;  %v1486_v11 = vmul.f32 0.2, %v847_v7  ;;  %v2977_v13 = vpop.f32.mrb[2].mxu1  ;;  %vm1422_vm5 = vcmp.ge.f32.partialorder %v1103_v8, 0.0  ;;  %v1550_v16 = vmul.f32 0.2, %v1103_v8 }
  0xe9   : > { %v1680_v10 = vsel %vm1424_vm2, %v2976_v4, %v1552_v6  ;;  %v2711_v14 = vpack.c.bf16 %v1616_v9, %v1616_v9  ;;  %v850_v17 = vpop.f32.mrb[3].mxu0  ;;  %v1106_v18 = vpop.f32.mrb[3].mxu1  ;;  %vm1361_vm6 = vcmp.ge.f32.partialorder %v2913_v12, 0.0  ;;  %v1489_v20 = vmul.f32 0.2, %v2913_v12 }
  0xea   : > { %v2775_v15 = vpack.c.bf16 %v1680_v10, %v1680_v10  ;;  %v1614_v19 = vsel %vm1358_vm4, %v847_v7, %v1486_v11  ;;  %vm1425_vm7 = vcmp.ge.f32.partialorder %v2977_v13, 0.0  ;;  %v1678_v22 = vsel %vm1422_vm5, %v1103_v8, %v1550_v16 }
  0xeb   : > { %2257 = vst.msk [vmem:[%s3302_s24 + $0x8] sm:$0xf] %vm2254_vm3, %v2711_v14  ;;  %v2709_v21 = vpack.c.bf16 %v1614_v19, %v1614_v19  ;;  %v1553_v23 = vmul.f32 0.2, %v2977_v13  ;;  %vm1359_vm8 = vcmp.ge.f32.partialorder %v850_v17, 0.0  ;;  %v2773_v24 = vpack.c.bf16 %v1678_v22, %v1678_v22 }
  0xec   : > { %2321 = vst.msk [vmem:[%s3302_s24 + $0x108] sm:$0xf] %vm2254_vm3, %v2775_v15  ;;  %v1617_v25 = vsel %vm1361_vm6, %v2913_v12, %v1489_v20  ;;  %v1487_v26 = vmul.f32 0.2, %v850_v17  ;;  %vm1423_vm9 = vcmp.ge.f32.partialorder %v1106_v18, 0.0 }
  0xed   : > { %2255 = vst.msk [vmem:[%s3302_s24] sm:$0xf] %vm2254_vm3, %v2709_v21  ;;  %v2712_v27 = vpack.c.bf16 %v1617_v25, %v1617_v25  ;;  %v1681_v28 = vsel %vm1425_vm7, %v2977_v13, %v1553_v23  ;;  %v1551_v29 = vmul.f32 0.2, %v1106_v18  ;;  %v2916_v30 = vpop.f32.mrb[4].mxu0 }
  0xee   : > { %v2980_v31 = vpop.f32.mrb[4].mxu1  ;;  %2319 = vst.msk [vmem:[%s3302_s24 + $0x100] sm:$0xf] %vm2254_vm3, %v2773_v24  ;;  %v2776_v32 = vpack.c.bf16 %v1681_v28, %v1681_v28  ;;  %v1615_v33 = vsel %vm1359_vm8, %v850_v17, %v1487_v26  ;;  %vm1364_vm10 = vcmp.ge.f32.partialorder %v2916_v30, 0.0  ;;  %v1492_v34 = vmul.f32 0.2, %v2916_v30 }
  0xef   : > { %v863_v35 = vpop.f32.mrb[5].mxu0  ;;  %v1119_v36 = vpop.f32.mrb[5].mxu1  ;;  %2258 = vst.msk [vmem:[%s3302_s24 + $0xc] sm:$0xf] %vm2254_vm3, %v2712_v27  ;;  %v2710_v37 = vpack.c.bf16 %v1615_v33, %v1615_v33  ;;  %v1679_v38 = vsel %vm1423_vm9, %v1106_v18, %v1551_v29  ;;  %vm1428_vm11 = vcmp.ge.f32.partialorder %v2980_v31, 0.0 }
  0xf0   : > { %v1556_v39 = vmul.f32 0.2, %v2980_v31  ;;  %v2917_v40 = vpop.f32.mrb[6].mxu0  ;;  %v2981_v41 = vpop.f32.mrb[6].mxu1  ;;  %2322 = vst.msk [vmem:[%s3302_s24 + $0x10c] sm:$0xf] %vm2254_vm3, %v2776_v32  ;;  %v2774_v42 = vpack.c.bf16 %v1679_v38, %v1679_v38  ;;  %v1620_v43 = vsel %vm1364_vm10, %v2916_v30, %v1492_v34 }
  0xf1   : > { %vm1362_vm12 = vcmp.ge.f32.partialorder %v863_v35, 0.0  ;;  %v1490_v44 = vmul.f32 0.2, %v863_v35  ;;  %v866_v45 = vpop.f32.mrb[7].mxu0  ;;  %v1122_v46 = vpop.f32.mrb[7].mxu1  ;;  %v2715_v47 = vpack.c.bf16 %v1620_v43, %v1620_v43  ;;  %vm1426_vm13 = vcmp.ge.f32.partialorder %v1119_v36, 0.0 }
  0xf2   : > { %2256 = vst.msk [vmem:[%s3302_s24 + $0x4] sm:$0xf] %vm2254_vm3, %v2710_v37  ;;  %v1684_v48 = vsel %vm1428_vm11, %v2980_v31, %v1556_v39  ;;  %v1554_v49 = vmul.f32 0.2, %v1119_v36  ;;  %2320 = vst.msk [vmem:[%s3302_s24 + $0x104] sm:$0xf] %vm2254_vm3, %v2774_v42 }
  0xf3   : > { %v2779_v50 = vpack.c.bf16 %v1684_v48, %v1684_v48  ;;  %v1618_v51 = vsel %vm1362_vm12, %v863_v35, %v1490_v44  ;;  %vm1365_vm14 = vcmp.ge.f32.partialorder %v2917_v40, 0.0  ;;  %v1493_v52 = vmul.f32 0.2, %v2917_v40  ;;  %2261 = vst.msk [vmem:[%s3302_s24 + $0x18] sm:$0xf] %vm2254_vm3, %v2715_v47 }
  0xf4   : > { %v2713_v53 = vpack.c.bf16 %v1618_v51, %v1618_v51  ;;  %v1682_v54 = vsel %vm1426_vm13, %v1119_v36, %v1554_v49  ;;  %vm1429_vm15 = vcmp.ge.f32.partialorder %v2981_v41, 0.0  ;;  %v1557_v55 = vmul.f32 0.2, %v2981_v41 }
  0xf5   : > { %2325 = vst.msk [vmem:[%s3302_s24 + $0x118] sm:$0xf] %vm2254_vm3, %v2779_v50  ;;  %v2777_v56 = vpack.c.bf16 %v1682_v54, %v1682_v54  ;;  %v1621_v57 = vsel %vm1365_vm14, %v2917_v40, %v1493_v52  ;;  %vm1363_vm0 = vcmp.ge.f32.partialorder %v866_v45, 0.0  ;;  %v1491_v58 = vmul.f32 0.2, %v866_v45  ;;  %v2920_v62 = vpop.f32.mrb[8].mxu0 }
  0xf6   : > { %2259 = vst.msk [vmem:[%s3302_s24 + $0x10] sm:$0xf] %vm2254_vm3, %v2713_v53  ;;  %v2716_v59 = vpack.c.bf16 %v1621_v57, %v1621_v57  ;;  %v1685_v60 = vsel %vm1429_vm15, %v2981_v41, %v1557_v55  ;;  %vm1427_vm1 = vcmp.ge.f32.partialorder %v1122_v46, 0.0  ;;  %v1555_v61 = vmul.f32 0.2, %v1122_v46  ;;  %v2984_v63 = vpop.f32.mrb[8].mxu1 }
  0xf7   : > { %2323 = vst.msk [vmem:[%s3302_s24 + $0x110] sm:$0xf] %vm2254_vm3, %v2777_v56  ;;  %v2780_v0 = vpack.c.bf16 %v1685_v60, %v1685_v60  ;;  %v1619_v1 = vsel %vm1363_vm0, %v866_v45, %v1491_v58  ;;  %vm1368_vm2 = vcmp.ge.f32.partialorder %v2920_v62, 0.0  ;;  %v1496_v2 = vmul.f32 0.2, %v2920_v62  ;;  %v879_v3 = vpop.f32.mrb[9].mxu0 }
  0xf8   : > { %v1135_v4 = vpop.f32.mrb[9].mxu1  ;;  %2262 = vst.msk [vmem:[%s3302_s24 + $0x1c] sm:$0xf] %vm2254_vm3, %v2716_v59  ;;  %v2714_v5 = vpack.c.bf16 %v1619_v1, %v1619_v1  ;;  %v1683_v6 = vsel %vm1427_vm1, %v1122_v46, %v1555_v61  ;;  %vm1432_vm4 = vcmp.ge.f32.partialorder %v2984_v63, 0.0  ;;  %v1560_v7 = vmul.f32 0.2, %v2984_v63 }
  0xf9   : > { %v2921_v8 = vpop.f32.mrb[10].mxu0  ;;  %v2985_v9 = vpop.f32.mrb[10].mxu1  ;;  %2326 = vst.msk [vmem:[%s3302_s24 + $0x11c] sm:$0xf] %vm2254_vm3, %v2780_v0  ;;  %v2778_v10 = vpack.c.bf16 %v1683_v6, %v1683_v6  ;;  %v1624_v11 = vsel %vm1368_vm2, %v2920_v62, %v1496_v2  ;;  %vm1366_vm5 = vcmp.ge.f32.partialorder %v879_v3, 0.0  ;;  %vm1430_vm6 = vcmp.ge.f32.partialorder %v1135_v4, 0.0 }
  0xfa   : > { %v1494_v12 = vmul.f32 0.2, %v879_v3  ;;  %v882_v13 = vpop.f32.mrb[11].mxu0  ;;  %v1138_v14 = vpop.f32.mrb[11].mxu1  ;;  %2260 = vst.msk [vmem:[%s3302_s24 + $0x14] sm:$0xf] %vm2254_vm3, %v2714_v5  ;;  %v2719_v15 = vpack.c.bf16 %v1624_v11, %v1624_v11  ;;  %v1688_v16 = vsel %vm1432_vm4, %v2984_v63, %v1560_v7 }
  0xfb   : > { %v1558_v17 = vmul.f32 0.2, %v1135_v4  ;;  %2324 = vst.msk [vmem:[%s3302_s24 + $0x114] sm:$0xf] %vm2254_vm3, %v2778_v10  ;;  %v2783_v18 = vpack.c.bf16 %v1688_v16, %v1688_v16  ;;  %vm1369_vm7 = vcmp.ge.f32.partialorder %v2921_v8, 0.0  ;;  %vm1433_vm8 = vcmp.ge.f32.partialorder %v2985_v9, 0.0 }
  0xfc   : > { %v1622_v19 = vsel %vm1366_vm5, %v879_v3, %v1494_v12  ;;  %v1497_v20 = vmul.f32 0.2, %v2921_v8  ;;  %2265 = vst.msk [vmem:[%s3302_s24 + $0x28] sm:$0xf] %vm2254_vm3, %v2719_v15  ;;  %v1561_v23 = vmul.f32 0.2, %v2985_v9 }
  0xfd   : > { %v2717_v21 = vpack.c.bf16 %v1622_v19, %v1622_v19  ;;  %v1686_v22 = vsel %vm1430_vm6, %v1135_v4, %v1558_v17  ;;  %2329 = vst.msk [vmem:[%s3302_s24 + $0x128] sm:$0xf] %vm2254_vm3, %v2783_v18  ;;  %vm1367_vm9 = vcmp.ge.f32.partialorder %v882_v13, 0.0  ;;  %v1495_v26 = vmul.f32 0.2, %v882_v13  ;;  %v2924_v30 = vpop.f32.mrb[12].mxu0 }
  0xfe   : > { %v2781_v24 = vpack.c.bf16 %v1686_v22, %v1686_v22  ;;  %v1625_v25 = vsel %vm1369_vm7, %v2921_v8, %v1497_v20  ;;  %v1689_v28 = vsel %vm1433_vm8, %v2985_v9, %v1561_v23  ;;  %vm1431_vm10 = vcmp.ge.f32.partialorder %v1138_v14, 0.0  ;;  %v2988_v31 = vpop.f32.mrb[12].mxu1  ;;  %v895_v35 = vpop.f32.mrb[13].mxu0 }
  0xff   : > { %2263 = vst.msk [vmem:[%s3302_s24 + $0x20] sm:$0xf] %vm2254_vm3, %v2717_v21  ;;  %v2720_v27 = vpack.c.bf16 %v1625_v25, %v1625_v25  ;;  %v1559_v29 = vmul.f32 0.2, %v1138_v14  ;;  %v2784_v32 = vpack.c.bf16 %v1689_v28, %v1689_v28  ;;  %v1623_v33 = vsel %vm1367_vm9, %v882_v13, %v1495_v26  ;;  %v1151_v36 = vpop.f32.mrb[13].mxu1  ;;  %v2925_v40 = vpop.f32.mrb[14].mxu0 }
 0x100   : > { %2327 = vst.msk [vmem:[%s3302_s24 + $0x120] sm:$0xf] %vm2254_vm3, %v2781_v24  ;;  %vm1372_vm11 = vcmp.ge.f32.partialorder %v2924_v30, 0.0  ;;  %v1500_v34 = vmul.f32 0.2, %v2924_v30  ;;  %v2718_v37 = vpack.c.bf16 %v1623_v33, %v1623_v33  ;;  %vm1436_vm12 = vcmp.ge.f32.partialorder %v2988_v31, 0.0 }
 0x101   : > { %2266 = vst.msk [vmem:[%s3302_s24 + $0x2c] sm:$0xf] %vm2254_vm3, %v2720_v27  ;;  %v1687_v38 = vsel %vm1431_vm10, %v1138_v14, %v1559_v29  ;;  %v1564_v39 = vmul.f32 0.2, %v2988_v31  ;;  %v2989_v41 = vpop.f32.mrb[14].mxu1  ;;  %vm1370_vm13 = vcmp.ge.f32.partialorder %v895_v35, 0.0 }
 0x102   : > { %2330 = vst.msk [vmem:[%s3302_s24 + $0x12c] sm:$0xf] %vm2254_vm3, %v2784_v32  ;;  %v2782_v42 = vpack.c.bf16 %v1687_v38, %v1687_v38  ;;  %v1628_v43 = vsel %vm1372_vm11, %v2924_v30, %v1500_v34  ;;  %v1498_v44 = vmul.f32 0.2, %v895_v35  ;;  %v898_v45 = vpop.f32.mrb[15].mxu0  ;;  %v1154_v46 = vpop.f32.mrb[15].mxu1 }
 0x103   : > { %2264 = vst.msk [vmem:[%s3302_s24 + $0x24] sm:$0xf] %vm2254_vm3, %v2718_v37  ;;  %v2723_v47 = vpack.c.bf16 %v1628_v43, %v1628_v43  ;;  %v1692_v48 = vsel %vm1436_vm12, %v2988_v31, %v1564_v39  ;;  %vm1434_vm14 = vcmp.ge.f32.partialorder %v1151_v36, 0.0  ;;  %v1562_v49 = vmul.f32 0.2, %v1151_v36 }
 0x104   : > { %2328 = vst.msk [vmem:[%s3302_s24 + $0x124] sm:$0xf] %vm2254_vm3, %v2782_v42  ;;  %v2787_v50 = vpack.c.bf16 %v1692_v48, %v1692_v48  ;;  %v1626_v51 = vsel %vm1370_vm13, %v895_v35, %v1498_v44  ;;  %vm1373_vm15 = vcmp.ge.f32.partialorder %v2925_v40, 0.0  ;;  %v1501_v52 = vmul.f32 0.2, %v2925_v40 }
 0x105   : > { %2269 = vst.msk [vmem:[%s3302_s24 + $0x38] sm:$0xf] %vm2254_vm3, %v2723_v47  ;;  %v2721_v53 = vpack.c.bf16 %v1626_v51, %v1626_v51  ;;  %v1690_v54 = vsel %vm1434_vm14, %v1151_v36, %v1562_v49  ;;  %vm1437_vm0 = vcmp.ge.f32.partialorder %v2989_v41, 0.0  ;;  %v1565_v55 = vmul.f32 0.2, %v2989_v41  ;;  %v2928_v62 = vpop.f32.mrb[16].mxu0 }
 0x106   : > { %2333 = vst.msk [vmem:[%s3302_s24 + $0x138] sm:$0xf] %vm2254_vm3, %v2787_v50  ;;  %v2785_v56 = vpack.c.bf16 %v1690_v54, %v1690_v54  ;;  %v1629_v57 = vsel %vm1373_vm15, %v2925_v40, %v1501_v52  ;;  %vm1371_vm1 = vcmp.ge.f32.partialorder %v898_v45, 0.0  ;;  %v1499_v58 = vmul.f32 0.2, %v898_v45  ;;  %v2992_v63 = vpop.f32.mrb[16].mxu1 }
 0x107   : > { %2267 = vst.msk [vmem:[%s3302_s24 + $0x30] sm:$0xf] %vm2254_vm3, %v2721_v53  ;;  %v2724_v59 = vpack.c.bf16 %v1629_v57, %v1629_v57  ;;  %v1693_v60 = vsel %vm1437_vm0, %v2989_v41, %v1565_v55  ;;  %vm1435_vm2 = vcmp.ge.f32.partialorder %v1154_v46, 0.0  ;;  %v1563_v61 = vmul.f32 0.2, %v1154_v46  ;;  %v911_v3 = vpop.f32.mrb[17].mxu0 }
 0x108   : > { %2331 = vst.msk [vmem:[%s3302_s24 + $0x130] sm:$0xf] %vm2254_vm3, %v2785_v56  ;;  %v2788_v0 = vpack.c.bf16 %v1693_v60, %v1693_v60  ;;  %v1627_v1 = vsel %vm1371_vm1, %v898_v45, %v1499_v58  ;;  %vm1376_vm4 = vcmp.ge.f32.partialorder %v2928_v62, 0.0  ;;  %v1504_v2 = vmul.f32 0.2, %v2928_v62  ;;  %v1167_v4 = vpop.f32.mrb[17].mxu1 }
 0x109   : > { %2270 = vst.msk [vmem:[%s3302_s24 + $0x3c] sm:$0xf] %vm2254_vm3, %v2724_v59  ;;  %v2722_v5 = vpack.c.bf16 %v1627_v1, %v1627_v1  ;;  %v1691_v6 = vsel %vm1435_vm2, %v1154_v46, %v1563_v61  ;;  %vm1440_vm5 = vcmp.ge.f32.partialorder %v2992_v63, 0.0  ;;  %v1568_v7 = vmul.f32 0.2, %v2992_v63  ;;  %v2929_v8 = vpop.f32.mrb[18].mxu0 }
 0x10a   : > { %v2993_v9 = vpop.f32.mrb[18].mxu1  ;;  %2334 = vst.msk [vmem:[%s3302_s24 + $0x13c] sm:$0xf] %vm2254_vm3, %v2788_v0  ;;  %v2786_v10 = vpack.c.bf16 %v1691_v6, %v1691_v6  ;;  %v1632_v11 = vsel %vm1376_vm4, %v2928_v62, %v1504_v2  ;;  %vm1374_vm6 = vcmp.ge.f32.partialorder %v911_v3, 0.0  ;;  %v1502_v12 = vmul.f32 0.2, %v911_v3 }
 0x10b   : > { %v914_v13 = vpop.f32.mrb[19].mxu0  ;;  %v1170_v14 = vpop.f32.mrb[19].mxu1  ;;  %2268 = vst.msk [vmem:[%s3302_s24 + $0x34] sm:$0xf] %vm2254_vm3, %v2722_v5  ;;  %v2727_v15 = vpack.c.bf16 %v1632_v11, %v1632_v11  ;;  %v1696_v16 = vsel %vm1440_vm5, %v2992_v63, %v1568_v7  ;;  %vm1438_vm7 = vcmp.ge.f32.partialorder %v1167_v4, 0.0  ;;  %vm1377_vm8 = vcmp.ge.f32.partialorder %v2929_v8, 0.0 }
 0x10c   : > { %v1566_v17 = vmul.f32 0.2, %v1167_v4  ;;  %2332 = vst.msk [vmem:[%s3302_s24 + $0x134] sm:$0xf] %vm2254_vm3, %v2786_v10  ;;  %v2791_v18 = vpack.c.bf16 %v1696_v16, %v1696_v16  ;;  %v1630_v19 = vsel %vm1374_vm6, %v911_v3, %v1502_v12  ;;  %v1505_v20 = vmul.f32 0.2, %v2929_v8 }
 0x10d   : > { %2273 = vst.msk [vmem:[%s3302_s24 + $0x48] sm:$0xf] %vm2254_vm3, %v2727_v15  ;;  %v2725_v21 = vpack.c.bf16 %v1630_v19, %v1630_v19  ;;  %vm1441_vm9 = vcmp.ge.f32.partialorder %v2993_v9, 0.0  ;;  %v1569_v23 = vmul.f32 0.2, %v2993_v9  ;;  %vm1375_vm10 = vcmp.ge.f32.partialorder %v914_v13, 0.0 }
 0x10e   : > { %v1694_v22 = vsel %vm1438_vm7, %v1167_v4, %v1566_v17  ;;  %2337 = vst.msk [vmem:[%s3302_s24 + $0x148] sm:$0xf] %vm2254_vm3, %v2791_v18  ;;  %v1633_v25 = vsel %vm1377_vm8, %v2929_v8, %v1505_v20  ;;  %v1503_v26 = vmul.f32 0.2, %v914_v13  ;;  %vm1439_vm11 = vcmp.ge.f32.partialorder %v1170_v14, 0.0  ;;  %v2932_v30 = vpop.f32.mrb[20].mxu0 }
 0x10f   : > { %v2789_v24 = vpack.c.bf16 %v1694_v22, %v1694_v22  ;;  %2271 = vst.msk [vmem:[%s3302_s24 + $0x40] sm:$0xf] %vm2254_vm3, %v2725_v21  ;;  %v2728_v27 = vpack.c.bf16 %v1633_v25, %v1633_v25  ;;  %v1697_v28 = vsel %vm1441_vm9, %v2993_v9, %v1569_v23  ;;  %v1567_v29 = vmul.f32 0.2, %v1170_v14  ;;  %v2996_v31 = vpop.f32.mrb[20].mxu1  ;;  %v927_v35 = vpop.f32.mrb[21].mxu0 }
 0x110   : > { %v2792_v32 = vpack.c.bf16 %v1697_v28, %v1697_v28  ;;  %v1631_v33 = vsel %vm1375_vm10, %v914_v13, %v1503_v26  ;;  %vm1380_vm12 = vcmp.ge.f32.partialorder %v2932_v30, 0.0  ;;  %v1508_v34 = vmul.f32 0.2, %v2932_v30  ;;  %v1183_v36 = vpop.f32.mrb[21].mxu1  ;;  %v2933_v40 = vpop.f32.mrb[22].mxu0 }
 0x111   : > { %2335 = vst.msk [vmem:[%s3302_s24 + $0x140] sm:$0xf] %vm2254_vm3, %v2789_v24  ;;  %2274 = vst.msk [vmem:[%s3302_s24 + $0x4c] sm:$0xf] %vm2254_vm3, %v2728_v27  ;;  %v2726_v37 = vpack.c.bf16 %v1631_v33, %v1631_v33  ;;  %v1695_v38 = vsel %vm1439_vm11, %v1170_v14, %v1567_v29  ;;  %vm1444_vm13 = vcmp.ge.f32.partialorder %v2996_v31, 0.0  ;;  %v2997_v41 = vpop.f32.mrb[22].mxu1 }
 0x112   : > { %v1572_v39 = vmul.f32 0.2, %v2996_v31  ;;  %2338 = vst.msk [vmem:[%s3302_s24 + $0x14c] sm:$0xf] %vm2254_vm3, %v2792_v32  ;;  %v2790_v42 = vpack.c.bf16 %v1695_v38, %v1695_v38  ;;  %v1636_v43 = vsel %vm1380_vm12, %v2932_v30, %v1508_v34  ;;  %vm1378_vm14 = vcmp.ge.f32.partialorder %v927_v35, 0.0  ;;  %v930_v45 = vpop.f32.mrb[23].mxu0 }
 0x113   : > { %v1506_v44 = vmul.f32 0.2, %v927_v35  ;;  %v1186_v46 = vpop.f32.mrb[23].mxu1  ;;  %2272 = vst.msk [vmem:[%s3302_s24 + $0x44] sm:$0xf] %vm2254_vm3, %v2726_v37  ;;  %v2731_v47 = vpack.c.bf16 %v1636_v43, %v1636_v43  ;;  %vm1442_vm15 = vcmp.ge.f32.partialorder %v1183_v36, 0.0 }
 0x114   : > { %v1700_v48 = vsel %vm1444_vm13, %v2996_v31, %v1572_v39  ;;  %v1570_v49 = vmul.f32 0.2, %v1183_v36  ;;  %2336 = vst.msk [vmem:[%s3302_s24 + $0x144] sm:$0xf] %vm2254_vm3, %v2790_v42  ;;  %vm1381_vm0 = vcmp.ge.f32.partialorder %v2933_v40, 0.0  ;;  %vm1445_vm1 = vcmp.ge.f32.partialorder %v2997_v41, 0.0 }
 0x115   : > { %v2795_v50 = vpack.c.bf16 %v1700_v48, %v1700_v48  ;;  %v1634_v51 = vsel %vm1378_vm14, %v927_v35, %v1506_v44  ;;  %v1509_v52 = vmul.f32 0.2, %v2933_v40  ;;  %2277 = vst.msk [vmem:[%s3302_s24 + $0x58] sm:$0xf] %vm2254_vm3, %v2731_v47  ;;  %v1573_v55 = vmul.f32 0.2, %v2997_v41 }
 0x116   : > { %v2729_v53 = vpack.c.bf16 %v1634_v51, %v1634_v51  ;;  %v1698_v54 = vsel %vm1442_vm15, %v1183_v36, %v1570_v49  ;;  %vm1379_vm2 = vcmp.ge.f32.partialorder %v930_v45, 0.0  ;;  %v1507_v58 = vmul.f32 0.2, %v930_v45  ;;  %v2936_v62 = vpop.f32.mrb[24].mxu0  ;;  %v3000_v63 = vpop.f32.mrb[24].mxu1 }
 0x117   : > { %2341 = vst.msk [vmem:[%s3302_s24 + $0x158] sm:$0xf] %vm2254_vm3, %v2795_v50  ;;  %v2793_v56 = vpack.c.bf16 %v1698_v54, %v1698_v54  ;;  %v1637_v57 = vsel %vm1381_vm0, %v2933_v40, %v1509_v52  ;;  %v1701_v60 = vsel %vm1445_vm1, %v2997_v41, %v1573_v55  ;;  %vm1443_vm4 = vcmp.ge.f32.partialorder %v1186_v46, 0.0  ;;  %v943_v3 = vpop.f32.mrb[25].mxu0  ;;  %v1199_v4 = vpop.f32.mrb[25].mxu1 }
 0x118   : > { %2275 = vst.msk [vmem:[%s3302_s24 + $0x50] sm:$0xf] %vm2254_vm3, %v2729_v53  ;;  %v2732_v59 = vpack.c.bf16 %v1637_v57, %v1637_v57  ;;  %v1571_v61 = vmul.f32 0.2, %v1186_v46  ;;  %v2796_v0 = vpack.c.bf16 %v1701_v60, %v1701_v60  ;;  %v1635_v1 = vsel %vm1379_vm2, %v930_v45, %v1507_v58  ;;  %v2937_v8 = vpop.f32.mrb[26].mxu0  ;;  %v3001_v9 = vpop.f32.mrb[26].mxu1 }
 0x119   : > { %2339 = vst.msk [vmem:[%s3302_s24 + $0x150] sm:$0xf] %vm2254_vm3, %v2793_v56  ;;  %vm1384_vm5 = vcmp.ge.f32.partialorder %v2936_v62, 0.0  ;;  %v1512_v2 = vmul.f32 0.2, %v2936_v62  ;;  %v2730_v5 = vpack.c.bf16 %v1635_v1, %v1635_v1  ;;  %vm1448_vm6 = vcmp.ge.f32.partialorder %v3000_v63, 0.0 }
 0x11a   : > { %2278 = vst.msk [vmem:[%s3302_s24 + $0x5c] sm:$0xf] %vm2254_vm3, %v2732_v59  ;;  %v1699_v6 = vsel %vm1443_vm4, %v1186_v46, %v1571_v61  ;;  %v1576_v7 = vmul.f32 0.2, %v3000_v63  ;;  %2342 = vst.msk [vmem:[%s3302_s24 + $0x15c] sm:$0xf] %vm2254_vm3, %v2796_v0 }
 0x11b   : > { %v2794_v10 = vpack.c.bf16 %v1699_v6, %v1699_v6  ;;  %v1640_v11 = vsel %vm1384_vm5, %v2936_v62, %v1512_v2  ;;  %vm1382_vm7 = vcmp.ge.f32.partialorder %v943_v3, 0.0  ;;  %v1510_v12 = vmul.f32 0.2, %v943_v3  ;;  %v946_v13 = vpop.f32.mrb[27].mxu0  ;;  %v1202_v14 = vpop.f32.mrb[27].mxu1 }
 0x11c   : > { %2276 = vst.msk [vmem:[%s3302_s24 + $0x54] sm:$0xf] %vm2254_vm3, %v2730_v5  ;;  %v2735_v15 = vpack.c.bf16 %v1640_v11, %v1640_v11  ;;  %v1704_v16 = vsel %vm1448_vm6, %v3000_v63, %v1576_v7  ;;  %vm1446_vm8 = vcmp.ge.f32.partialorder %v1199_v4, 0.0  ;;  %v1574_v17 = vmul.f32 0.2, %v1199_v4 }
 0x11d   : > { %2340 = vst.msk [vmem:[%s3302_s24 + $0x154] sm:$0xf] %vm2254_vm3, %v2794_v10  ;;  %v2799_v18 = vpack.c.bf16 %v1704_v16, %v1704_v16  ;;  %v1638_v19 = vsel %vm1382_vm7, %v943_v3, %v1510_v12  ;;  %vm1385_vm9 = vcmp.ge.f32.partialorder %v2937_v8, 0.0  ;;  %v1513_v20 = vmul.f32 0.2, %v2937_v8  ;;  %v2940_v30 = vpop.f32.mrb[28].mxu0 }
 0x11e   : > { %2281 = vst.msk [vmem:[%s3302_s24 + $0x68] sm:$0xf] %vm2254_vm3, %v2735_v15  ;;  %v2733_v21 = vpack.c.bf16 %v1638_v19, %v1638_v19  ;;  %v1702_v22 = vsel %vm1446_vm8, %v1199_v4, %v1574_v17  ;;  %vm1449_vm10 = vcmp.ge.f32.partialorder %v3001_v9, 0.0  ;;  %v1577_v23 = vmul.f32 0.2, %v3001_v9  ;;  %v3004_v31 = vpop.f32.mrb[28].mxu1 }
 0x11f   : > { %2345 = vst.msk [vmem:[%s3302_s24 + $0x168] sm:$0xf] %vm2254_vm3, %v2799_v18  ;;  %v2797_v24 = vpack.c.bf16 %v1702_v22, %v1702_v22  ;;  %v1641_v25 = vsel %vm1385_vm9, %v2937_v8, %v1513_v20  ;;  %vm1383_vm11 = vcmp.ge.f32.partialorder %v946_v13, 0.0  ;;  %v1511_v26 = vmul.f32 0.2, %v946_v13  ;;  %v959_v35 = vpop.f32.mrb[29].mxu0 }
 0x120   : > { %2279 = vst.msk [vmem:[%s3302_s24 + $0x60] sm:$0xf] %vm2254_vm3, %v2733_v21  ;;  %v2736_v27 = vpack.c.bf16 %v1641_v25, %v1641_v25  ;;  %v1705_v28 = vsel %vm1449_vm10, %v3001_v9, %v1577_v23  ;;  %vm1447_vm12 = vcmp.ge.f32.partialorder %v1202_v14, 0.0  ;;  %v1575_v29 = vmul.f32 0.2, %v1202_v14  ;;  %v1215_v36 = vpop.f32.mrb[29].mxu1 }
 0x121   : > { %2343 = vst.msk [vmem:[%s3302_s24 + $0x160] sm:$0xf] %vm2254_vm3, %v2797_v24  ;;  %v2800_v32 = vpack.c.bf16 %v1705_v28, %v1705_v28  ;;  %v1639_v33 = vsel %vm1383_vm11, %v946_v13, %v1511_v26  ;;  %vm1388_vm13 = vcmp.ge.f32.partialorder %v2940_v30, 0.0  ;;  %v1516_v34 = vmul.f32 0.2, %v2940_v30  ;;  %v2941_v40 = vpop.f32.mrb[30].mxu0 }
 0x122   : > { %2282 = vst.msk [vmem:[%s3302_s24 + $0x6c] sm:$0xf] %vm2254_vm3, %v2736_v27  ;;  %v2734_v37 = vpack.c.bf16 %v1639_v33, %v1639_v33  ;;  %v1703_v38 = vsel %vm1447_vm12, %v1202_v14, %v1575_v29  ;;  %vm1452_vm14 = vcmp.ge.f32.partialorder %v3004_v31, 0.0  ;;  %v1580_v39 = vmul.f32 0.2, %v3004_v31  ;;  %v3005_v41 = vpop.f32.mrb[30].mxu1 }
 0x123   : > { %2346 = vst.msk [vmem:[%s3302_s24 + $0x16c] sm:$0xf] %vm2254_vm3, %v2800_v32  ;;  %v2798_v42 = vpack.c.bf16 %v1703_v38, %v1703_v38  ;;  %v1644_v43 = vsel %vm1388_vm13, %v2940_v30, %v1516_v34  ;;  %vm1386_vm15 = vcmp.ge.f32.partialorder %v959_v35, 0.0  ;;  %v1514_v44 = vmul.f32 0.2, %v959_v35  ;;  %v962_v45 = vpop.f32.mrb[31].mxu0 }
 0x124   : > { %v1218_v46 = vpop.f32.mrb[31].mxu1  ;;  %2280 = vst.msk [vmem:[%s3302_s24 + $0x64] sm:$0xf] %vm2254_vm3, %v2734_v37  ;;  %v2739_v47 = vpack.c.bf16 %v1644_v43, %v1644_v43  ;;  %v1708_v48 = vsel %vm1452_vm14, %v3004_v31, %v1580_v39  ;;  %vm1450_vm0 = vcmp.ge.f32.partialorder %v1215_v36, 0.0  ;;  %v1578_v49 = vmul.f32 0.2, %v1215_v36 }
 0x125   : > { %2344 = vst.msk [vmem:[%s3302_s24 + $0x164] sm:$0xf] %vm2254_vm3, %v2798_v42  ;;  %v2803_v50 = vpack.c.bf16 %v1708_v48, %v1708_v48  ;;  %v1642_v51 = vsel %vm1386_vm15, %v959_v35, %v1514_v44  ;;  %vm1389_vm1 = vcmp.ge.f32.partialorder %v2941_v40, 0.0  ;;  %v1517_v52 = vmul.f32 0.2, %v2941_v40  ;;  %v2944_v62 = vpop.f32.mrb[32].mxu0 }
 0x126   : > { %2285 = vst.msk [vmem:[%s3302_s24 + $0x78] sm:$0xf] %vm2254_vm3, %v2739_v47  ;;  %v2737_v53 = vpack.c.bf16 %v1642_v51, %v1642_v51  ;;  %v1706_v54 = vsel %vm1450_vm0, %v1215_v36, %v1578_v49  ;;  %vm1453_vm2 = vcmp.ge.f32.partialorder %v3005_v41, 0.0  ;;  %v1581_v55 = vmul.f32 0.2, %v3005_v41  ;;  %v3008_v63 = vpop.f32.mrb[32].mxu1 }
 0x127   : > { %2349 = vst.msk [vmem:[%s3302_s24 + $0x178] sm:$0xf] %vm2254_vm3, %v2803_v50  ;;  %v2801_v56 = vpack.c.bf16 %v1706_v54, %v1706_v54  ;;  %v1645_v57 = vsel %vm1389_vm1, %v2941_v40, %v1517_v52  ;;  %vm1387_vm4 = vcmp.ge.f32.partialorder %v962_v45, 0.0  ;;  %v1515_v58 = vmul.f32 0.2, %v962_v45  ;;  %v975_v3 = vpop.f32.mrb[33].mxu0 }
 0x128   : > { %2283 = vst.msk [vmem:[%s3302_s24 + $0x70] sm:$0xf] %vm2254_vm3, %v2737_v53  ;;  %v2740_v59 = vpack.c.bf16 %v1645_v57, %v1645_v57  ;;  %v1709_v60 = vsel %vm1453_vm2, %v3005_v41, %v1581_v55  ;;  %vm1451_vm5 = vcmp.ge.f32.partialorder %v1218_v46, 0.0  ;;  %v1579_v61 = vmul.f32 0.2, %v1218_v46  ;;  %v1231_v4 = vpop.f32.mrb[33].mxu1 }
 0x129   : > { %2347 = vst.msk [vmem:[%s3302_s24 + $0x170] sm:$0xf] %vm2254_vm3, %v2801_v56  ;;  %v2804_v0 = vpack.c.bf16 %v1709_v60, %v1709_v60  ;;  %v1643_v1 = vsel %vm1387_vm4, %v962_v45, %v1515_v58  ;;  %vm1392_vm6 = vcmp.ge.f32.partialorder %v2944_v62, 0.0  ;;  %v1520_v2 = vmul.f32 0.2, %v2944_v62  ;;  %v2945_v8 = vpop.f32.mrb[34].mxu0 }
 0x12a   : > { %2286 = vst.msk [vmem:[%s3302_s24 + $0x7c] sm:$0xf] %vm2254_vm3, %v2740_v59  ;;  %v2738_v5 = vpack.c.bf16 %v1643_v1, %v1643_v1  ;;  %v1707_v6 = vsel %vm1451_vm5, %v1218_v46, %v1579_v61  ;;  %vm1456_vm7 = vcmp.ge.f32.partialorder %v3008_v63, 0.0  ;;  %v1584_v7 = vmul.f32 0.2, %v3008_v63  ;;  %v3009_v9 = vpop.f32.mrb[34].mxu1 }
 0x12b   : > { %2350 = vst.msk [vmem:[%s3302_s24 + $0x17c] sm:$0xf] %vm2254_vm3, %v2804_v0  ;;  %v2802_v10 = vpack.c.bf16 %v1707_v6, %v1707_v6  ;;  %v1648_v11 = vsel %vm1392_vm6, %v2944_v62, %v1520_v2  ;;  %vm1390_vm8 = vcmp.ge.f32.partialorder %v975_v3, 0.0  ;;  %v1518_v12 = vmul.f32 0.2, %v975_v3  ;;  %v978_v13 = vpop.f32.mrb[35].mxu0 }
 0x12c   : > { %v1234_v14 = vpop.f32.mrb[35].mxu1  ;;  %2284 = vst.msk [vmem:[%s3302_s24 + $0x74] sm:$0xf] %vm2254_vm3, %v2738_v5  ;;  %v2743_v15 = vpack.c.bf16 %v1648_v11, %v1648_v11  ;;  %v1712_v16 = vsel %vm1456_vm7, %v3008_v63, %v1584_v7  ;;  %vm1454_vm9 = vcmp.ge.f32.partialorder %v1231_v4, 0.0  ;;  %v1582_v17 = vmul.f32 0.2, %v1231_v4 }
 0x12d   : > { %2348 = vst.msk [vmem:[%s3302_s24 + $0x174] sm:$0xf] %vm2254_vm3, %v2802_v10  ;;  %v2807_v18 = vpack.c.bf16 %v1712_v16, %v1712_v16  ;;  %v1646_v19 = vsel %vm1390_vm8, %v975_v3, %v1518_v12  ;;  %vm1393_vm10 = vcmp.ge.f32.partialorder %v2945_v8, 0.0  ;;  %v1521_v20 = vmul.f32 0.2, %v2945_v8  ;;  %v2948_v30 = vpop.f32.mrb[36].mxu0 }
 0x12e   : > { %2289 = vst.msk [vmem:[%s3302_s24 + $0x88] sm:$0xf] %vm2254_vm3, %v2743_v15  ;;  %v2741_v21 = vpack.c.bf16 %v1646_v19, %v1646_v19  ;;  %v1710_v22 = vsel %vm1454_vm9, %v1231_v4, %v1582_v17  ;;  %vm1457_vm11 = vcmp.ge.f32.partialorder %v3009_v9, 0.0  ;;  %v1585_v23 = vmul.f32 0.2, %v3009_v9  ;;  %v3012_v31 = vpop.f32.mrb[36].mxu1 }
 0x12f   : > { %2353 = vst.msk [vmem:[%s3302_s24 + $0x188] sm:$0xf] %vm2254_vm3, %v2807_v18  ;;  %v2805_v24 = vpack.c.bf16 %v1710_v22, %v1710_v22  ;;  %v1649_v25 = vsel %vm1393_vm10, %v2945_v8, %v1521_v20  ;;  %vm1391_vm12 = vcmp.ge.f32.partialorder %v978_v13, 0.0  ;;  %v1519_v26 = vmul.f32 0.2, %v978_v13  ;;  %v991_v35 = vpop.f32.mrb[37].mxu0 }
 0x130   : > { %2287 = vst.msk [vmem:[%s3302_s24 + $0x80] sm:$0xf] %vm2254_vm3, %v2741_v21  ;;  %v2744_v27 = vpack.c.bf16 %v1649_v25, %v1649_v25  ;;  %v1713_v28 = vsel %vm1457_vm11, %v3009_v9, %v1585_v23  ;;  %vm1455_vm13 = vcmp.ge.f32.partialorder %v1234_v14, 0.0  ;;  %v1583_v29 = vmul.f32 0.2, %v1234_v14  ;;  %v1247_v36 = vpop.f32.mrb[37].mxu1 }
 0x131   : > { %2351 = vst.msk [vmem:[%s3302_s24 + $0x180] sm:$0xf] %vm2254_vm3, %v2805_v24  ;;  %v2808_v32 = vpack.c.bf16 %v1713_v28, %v1713_v28  ;;  %v1647_v33 = vsel %vm1391_vm12, %v978_v13, %v1519_v26  ;;  %vm1396_vm14 = vcmp.ge.f32.partialorder %v2948_v30, 0.0  ;;  %v1524_v34 = vmul.f32 0.2, %v2948_v30  ;;  %v2949_v40 = vpop.f32.mrb[38].mxu0 }
 0x132   : > { %2290 = vst.msk [vmem:[%s3302_s24 + $0x8c] sm:$0xf] %vm2254_vm3, %v2744_v27  ;;  %v2742_v37 = vpack.c.bf16 %v1647_v33, %v1647_v33  ;;  %v1711_v38 = vsel %vm1455_vm13, %v1234_v14, %v1583_v29  ;;  %vm1460_vm15 = vcmp.ge.f32.partialorder %v3012_v31, 0.0  ;;  %v1588_v39 = vmul.f32 0.2, %v3012_v31  ;;  %v3013_v41 = vpop.f32.mrb[38].mxu1 }
 0x133   : > { %2354 = vst.msk [vmem:[%s3302_s24 + $0x18c] sm:$0xf] %vm2254_vm3, %v2808_v32  ;;  %v2806_v42 = vpack.c.bf16 %v1711_v38, %v1711_v38  ;;  %v1652_v43 = vsel %vm1396_vm14, %v2948_v30, %v1524_v34  ;;  %vm1394_vm0 = vcmp.ge.f32.partialorder %v991_v35, 0.0  ;;  %v1522_v44 = vmul.f32 0.2, %v991_v35  ;;  %v994_v45 = vpop.f32.mrb[39].mxu0 }
 0x134   : > { %v1250_v46 = vpop.f32.mrb[39].mxu1  ;;  %2288 = vst.msk [vmem:[%s3302_s24 + $0x84] sm:$0xf] %vm2254_vm3, %v2742_v37  ;;  %v2747_v47 = vpack.c.bf16 %v1652_v43, %v1652_v43  ;;  %v1716_v48 = vsel %vm1460_vm15, %v3012_v31, %v1588_v39  ;;  %vm1458_vm1 = vcmp.ge.f32.partialorder %v1247_v36, 0.0  ;;  %v1586_v49 = vmul.f32 0.2, %v1247_v36 }
 0x135   : > { %2352 = vst.msk [vmem:[%s3302_s24 + $0x184] sm:$0xf] %vm2254_vm3, %v2806_v42  ;;  %v2811_v50 = vpack.c.bf16 %v1716_v48, %v1716_v48  ;;  %v1650_v51 = vsel %vm1394_vm0, %v991_v35, %v1522_v44  ;;  %vm1397_vm2 = vcmp.ge.f32.partialorder %v2949_v40, 0.0  ;;  %v1525_v52 = vmul.f32 0.2, %v2949_v40  ;;  %v2952_v62 = vpop.f32.mrb[40].mxu0 }
 0x136   : > { %2293 = vst.msk [vmem:[%s3302_s24 + $0x98] sm:$0xf] %vm2254_vm3, %v2747_v47  ;;  %v2745_v53 = vpack.c.bf16 %v1650_v51, %v1650_v51  ;;  %v1714_v54 = vsel %vm1458_vm1, %v1247_v36, %v1586_v49  ;;  %vm1461_vm4 = vcmp.ge.f32.partialorder %v3013_v41, 0.0  ;;  %v1589_v55 = vmul.f32 0.2, %v3013_v41  ;;  %v3016_v63 = vpop.f32.mrb[40].mxu1 }
 0x137   : > { %2357 = vst.msk [vmem:[%s3302_s24 + $0x198] sm:$0xf] %vm2254_vm3, %v2811_v50  ;;  %v2809_v56 = vpack.c.bf16 %v1714_v54, %v1714_v54  ;;  %v1653_v57 = vsel %vm1397_vm2, %v2949_v40, %v1525_v52  ;;  %vm1395_vm5 = vcmp.ge.f32.partialorder %v994_v45, 0.0  ;;  %v1523_v58 = vmul.f32 0.2, %v994_v45  ;;  %v1007_v3 = vpop.f32.mrb[41].mxu0 }
 0x138   : > { %2291 = vst.msk [vmem:[%s3302_s24 + $0x90] sm:$0xf] %vm2254_vm3, %v2745_v53  ;;  %v2748_v59 = vpack.c.bf16 %v1653_v57, %v1653_v57  ;;  %v1717_v60 = vsel %vm1461_vm4, %v3013_v41, %v1589_v55  ;;  %vm1459_vm6 = vcmp.ge.f32.partialorder %v1250_v46, 0.0  ;;  %v1587_v61 = vmul.f32 0.2, %v1250_v46  ;;  %v1263_v4 = vpop.f32.mrb[41].mxu1 }
 0x139   : > { %2355 = vst.msk [vmem:[%s3302_s24 + $0x190] sm:$0xf] %vm2254_vm3, %v2809_v56  ;;  %v2812_v0 = vpack.c.bf16 %v1717_v60, %v1717_v60  ;;  %v1651_v1 = vsel %vm1395_vm5, %v994_v45, %v1523_v58  ;;  %vm1400_vm7 = vcmp.ge.f32.partialorder %v2952_v62, 0.0  ;;  %v1528_v2 = vmul.f32 0.2, %v2952_v62  ;;  %v2953_v8 = vpop.f32.mrb[42].mxu0 }
 0x13a   : > { %2294 = vst.msk [vmem:[%s3302_s24 + $0x9c] sm:$0xf] %vm2254_vm3, %v2748_v59  ;;  %v2746_v5 = vpack.c.bf16 %v1651_v1, %v1651_v1  ;;  %v1715_v6 = vsel %vm1459_vm6, %v1250_v46, %v1587_v61  ;;  %vm1464_vm8 = vcmp.ge.f32.partialorder %v3016_v63, 0.0  ;;  %v1592_v7 = vmul.f32 0.2, %v3016_v63  ;;  %v3017_v9 = vpop.f32.mrb[42].mxu1 }
 0x13b   : > { %2358 = vst.msk [vmem:[%s3302_s24 + $0x19c] sm:$0xf] %vm2254_vm3, %v2812_v0  ;;  %v2810_v10 = vpack.c.bf16 %v1715_v6, %v1715_v6  ;;  %v1656_v11 = vsel %vm1400_vm7, %v2952_v62, %v1528_v2  ;;  %vm1398_vm9 = vcmp.ge.f32.partialorder %v1007_v3, 0.0  ;;  %v1526_v12 = vmul.f32 0.2, %v1007_v3  ;;  %v1010_v13 = vpop.f32.mrb[43].mxu0 }
 0x13c   : > { %v1266_v14 = vpop.f32.mrb[43].mxu1  ;;  %2292 = vst.msk [vmem:[%s3302_s24 + $0x94] sm:$0xf] %vm2254_vm3, %v2746_v5  ;;  %v2751_v15 = vpack.c.bf16 %v1656_v11, %v1656_v11  ;;  %v1720_v16 = vsel %vm1464_vm8, %v3016_v63, %v1592_v7  ;;  %vm1462_vm10 = vcmp.ge.f32.partialorder %v1263_v4, 0.0  ;;  %v1590_v17 = vmul.f32 0.2, %v1263_v4 }
 0x13d   : > { %2356 = vst.msk [vmem:[%s3302_s24 + $0x194] sm:$0xf] %vm2254_vm3, %v2810_v10  ;;  %v2815_v18 = vpack.c.bf16 %v1720_v16, %v1720_v16  ;;  %v1654_v19 = vsel %vm1398_vm9, %v1007_v3, %v1526_v12  ;;  %vm1401_vm11 = vcmp.ge.f32.partialorder %v2953_v8, 0.0  ;;  %v1529_v20 = vmul.f32 0.2, %v2953_v8  ;;  %v2956_v30 = vpop.f32.mrb[44].mxu0 }
 0x13e   : > { %2297 = vst.msk [vmem:[%s3302_s24 + $0xa8] sm:$0xf] %vm2254_vm3, %v2751_v15  ;;  %v2749_v21 = vpack.c.bf16 %v1654_v19, %v1654_v19  ;;  %v1718_v22 = vsel %vm1462_vm10, %v1263_v4, %v1590_v17  ;;  %vm1465_vm12 = vcmp.ge.f32.partialorder %v3017_v9, 0.0  ;;  %v1593_v23 = vmul.f32 0.2, %v3017_v9  ;;  %v3020_v31 = vpop.f32.mrb[44].mxu1 }
 0x13f   : > { %2361 = vst.msk [vmem:[%s3302_s24 + $0x1a8] sm:$0xf] %vm2254_vm3, %v2815_v18  ;;  %v2813_v24 = vpack.c.bf16 %v1718_v22, %v1718_v22  ;;  %v1657_v25 = vsel %vm1401_vm11, %v2953_v8, %v1529_v20  ;;  %vm1399_vm13 = vcmp.ge.f32.partialorder %v1010_v13, 0.0  ;;  %v1527_v26 = vmul.f32 0.2, %v1010_v13  ;;  %v1023_v35 = vpop.f32.mrb[45].mxu0 }
 0x140   : > { %2295 = vst.msk [vmem:[%s3302_s24 + $0xa0] sm:$0xf] %vm2254_vm3, %v2749_v21  ;;  %v2752_v27 = vpack.c.bf16 %v1657_v25, %v1657_v25  ;;  %v1721_v28 = vsel %vm1465_vm12, %v3017_v9, %v1593_v23  ;;  %vm1463_vm14 = vcmp.ge.f32.partialorder %v1266_v14, 0.0  ;;  %v1591_v29 = vmul.f32 0.2, %v1266_v14  ;;  %v1279_v36 = vpop.f32.mrb[45].mxu1 }
 0x141   : > { %2359 = vst.msk [vmem:[%s3302_s24 + $0x1a0] sm:$0xf] %vm2254_vm3, %v2813_v24  ;;  %v2816_v32 = vpack.c.bf16 %v1721_v28, %v1721_v28  ;;  %v1655_v33 = vsel %vm1399_vm13, %v1010_v13, %v1527_v26  ;;  %vm1404_vm15 = vcmp.ge.f32.partialorder %v2956_v30, 0.0  ;;  %v1532_v34 = vmul.f32 0.2, %v2956_v30  ;;  %v2957_v40 = vpop.f32.mrb[46].mxu0 }
 0x142   : > { %2298 = vst.msk [vmem:[%s3302_s24 + $0xac] sm:$0xf] %vm2254_vm3, %v2752_v27  ;;  %v2750_v37 = vpack.c.bf16 %v1655_v33, %v1655_v33  ;;  %v1719_v38 = vsel %vm1463_vm14, %v1266_v14, %v1591_v29  ;;  %vm1468_vm0 = vcmp.ge.f32.partialorder %v3020_v31, 0.0  ;;  %v1596_v39 = vmul.f32 0.2, %v3020_v31  ;;  %v3021_v41 = vpop.f32.mrb[46].mxu1 }
 0x143   : > { %2362 = vst.msk [vmem:[%s3302_s24 + $0x1ac] sm:$0xf] %vm2254_vm3, %v2816_v32  ;;  %v2814_v42 = vpack.c.bf16 %v1719_v38, %v1719_v38  ;;  %v1660_v43 = vsel %vm1404_vm15, %v2956_v30, %v1532_v34  ;;  %vm1402_vm1 = vcmp.ge.f32.partialorder %v1023_v35, 0.0  ;;  %v1530_v44 = vmul.f32 0.2, %v1023_v35  ;;  %v1026_v45 = vpop.f32.mrb[47].mxu0 }
 0x144   : > { %v1282_v46 = vpop.f32.mrb[47].mxu1  ;;  %2296 = vst.msk [vmem:[%s3302_s24 + $0xa4] sm:$0xf] %vm2254_vm3, %v2750_v37  ;;  %v2755_v47 = vpack.c.bf16 %v1660_v43, %v1660_v43  ;;  %v1724_v48 = vsel %vm1468_vm0, %v3020_v31, %v1596_v39  ;;  %vm1466_vm2 = vcmp.ge.f32.partialorder %v1279_v36, 0.0  ;;  %v1594_v49 = vmul.f32 0.2, %v1279_v36 }
 0x145   : > { %2360 = vst.msk [vmem:[%s3302_s24 + $0x1a4] sm:$0xf] %vm2254_vm3, %v2814_v42  ;;  %v2819_v50 = vpack.c.bf16 %v1724_v48, %v1724_v48  ;;  %v1658_v51 = vsel %vm1402_vm1, %v1023_v35, %v1530_v44  ;;  %vm1405_vm4 = vcmp.ge.f32.partialorder %v2957_v40, 0.0  ;;  %v1533_v52 = vmul.f32 0.2, %v2957_v40  ;;  %v2960_v62 = vpop.f32.mrb[48].mxu0 }
 0x146   : > { %2301 = vst.msk [vmem:[%s3302_s24 + $0xb8] sm:$0xf] %vm2254_vm3, %v2755_v47  ;;  %v2753_v53 = vpack.c.bf16 %v1658_v51, %v1658_v51  ;;  %v1722_v54 = vsel %vm1466_vm2, %v1279_v36, %v1594_v49  ;;  %vm1469_vm5 = vcmp.ge.f32.partialorder %v3021_v41, 0.0  ;;  %v1597_v55 = vmul.f32 0.2, %v3021_v41  ;;  %v3024_v63 = vpop.f32.mrb[48].mxu1 }
 0x147   : > { %2365 = vst.msk [vmem:[%s3302_s24 + $0x1b8] sm:$0xf] %vm2254_vm3, %v2819_v50  ;;  %v2817_v56 = vpack.c.bf16 %v1722_v54, %v1722_v54  ;;  %v1661_v57 = vsel %vm1405_vm4, %v2957_v40, %v1533_v52  ;;  %vm1403_vm6 = vcmp.ge.f32.partialorder %v1026_v45, 0.0  ;;  %v1531_v58 = vmul.f32 0.2, %v1026_v45  ;;  %v1039_v3 = vpop.f32.mrb[49].mxu0 }
 0x148   : > { %2299 = vst.msk [vmem:[%s3302_s24 + $0xb0] sm:$0xf] %vm2254_vm3, %v2753_v53  ;;  %v2756_v59 = vpack.c.bf16 %v1661_v57, %v1661_v57  ;;  %v1725_v60 = vsel %vm1469_vm5, %v3021_v41, %v1597_v55  ;;  %vm1467_vm7 = vcmp.ge.f32.partialorder %v1282_v46, 0.0  ;;  %v1595_v61 = vmul.f32 0.2, %v1282_v46  ;;  %v1295_v4 = vpop.f32.mrb[49].mxu1 }
 0x149   : > { %2363 = vst.msk [vmem:[%s3302_s24 + $0x1b0] sm:$0xf] %vm2254_vm3, %v2817_v56  ;;  %v2820_v0 = vpack.c.bf16 %v1725_v60, %v1725_v60  ;;  %v1659_v1 = vsel %vm1403_vm6, %v1026_v45, %v1531_v58  ;;  %vm1408_vm8 = vcmp.ge.f32.partialorder %v2960_v62, 0.0  ;;  %v1536_v2 = vmul.f32 0.2, %v2960_v62  ;;  %v2961_v8 = vpop.f32.mrb[50].mxu0 }
 0x14a   : > { %2302 = vst.msk [vmem:[%s3302_s24 + $0xbc] sm:$0xf] %vm2254_vm3, %v2756_v59  ;;  %v2754_v5 = vpack.c.bf16 %v1659_v1, %v1659_v1  ;;  %v1723_v6 = vsel %vm1467_vm7, %v1282_v46, %v1595_v61  ;;  %vm1472_vm9 = vcmp.ge.f32.partialorder %v3024_v63, 0.0  ;;  %v1600_v7 = vmul.f32 0.2, %v3024_v63  ;;  %v3025_v9 = vpop.f32.mrb[50].mxu1 }
 0x14b   : > { %2366 = vst.msk [vmem:[%s3302_s24 + $0x1bc] sm:$0xf] %vm2254_vm3, %v2820_v0  ;;  %v2818_v10 = vpack.c.bf16 %v1723_v6, %v1723_v6  ;;  %v1664_v11 = vsel %vm1408_vm8, %v2960_v62, %v1536_v2  ;;  %vm1406_vm10 = vcmp.ge.f32.partialorder %v1039_v3, 0.0  ;;  %v1534_v12 = vmul.f32 0.2, %v1039_v3  ;;  %v1042_v13 = vpop.f32.mrb[51].mxu0 }
 0x14c   : > { %v1298_v14 = vpop.f32.mrb[51].mxu1  ;;  %2300 = vst.msk [vmem:[%s3302_s24 + $0xb4] sm:$0xf] %vm2254_vm3, %v2754_v5  ;;  %v2759_v15 = vpack.c.bf16 %v1664_v11, %v1664_v11  ;;  %v1728_v16 = vsel %vm1472_vm9, %v3024_v63, %v1600_v7  ;;  %vm1470_vm11 = vcmp.ge.f32.partialorder %v1295_v4, 0.0  ;;  %v1598_v17 = vmul.f32 0.2, %v1295_v4 }
 0x14d   : > { %2364 = vst.msk [vmem:[%s3302_s24 + $0x1b4] sm:$0xf] %vm2254_vm3, %v2818_v10  ;;  %v2823_v18 = vpack.c.bf16 %v1728_v16, %v1728_v16  ;;  %v1662_v19 = vsel %vm1406_vm10, %v1039_v3, %v1534_v12  ;;  %vm1409_vm12 = vcmp.ge.f32.partialorder %v2961_v8, 0.0  ;;  %v1537_v20 = vmul.f32 0.2, %v2961_v8  ;;  %v2964_v30 = vpop.f32.mrb[52].mxu0 }
 0x14e   : > { %2305 = vst.msk [vmem:[%s3302_s24 + $0xc8] sm:$0xf] %vm2254_vm3, %v2759_v15  ;;  %v2757_v21 = vpack.c.bf16 %v1662_v19, %v1662_v19  ;;  %v1726_v22 = vsel %vm1470_vm11, %v1295_v4, %v1598_v17  ;;  %vm1473_vm13 = vcmp.ge.f32.partialorder %v3025_v9, 0.0  ;;  %v1601_v23 = vmul.f32 0.2, %v3025_v9  ;;  %v3028_v31 = vpop.f32.mrb[52].mxu1 }
 0x14f   : > { %2369 = vst.msk [vmem:[%s3302_s24 + $0x1c8] sm:$0xf] %vm2254_vm3, %v2823_v18  ;;  %v2821_v24 = vpack.c.bf16 %v1726_v22, %v1726_v22  ;;  %v1665_v25 = vsel %vm1409_vm12, %v2961_v8, %v1537_v20  ;;  %vm1407_vm14 = vcmp.ge.f32.partialorder %v1042_v13, 0.0  ;;  %v1535_v26 = vmul.f32 0.2, %v1042_v13  ;;  %v1055_v35 = vpop.f32.mrb[53].mxu0 }
 0x150   : > { %2303 = vst.msk [vmem:[%s3302_s24 + $0xc0] sm:$0xf] %vm2254_vm3, %v2757_v21  ;;  %v2760_v27 = vpack.c.bf16 %v1665_v25, %v1665_v25  ;;  %v1729_v28 = vsel %vm1473_vm13, %v3025_v9, %v1601_v23  ;;  %vm1471_vm15 = vcmp.ge.f32.partialorder %v1298_v14, 0.0  ;;  %v1599_v29 = vmul.f32 0.2, %v1298_v14  ;;  %v1311_v36 = vpop.f32.mrb[53].mxu1 }
 0x151   : > { %2367 = vst.msk [vmem:[%s3302_s24 + $0x1c0] sm:$0xf] %vm2254_vm3, %v2821_v24  ;;  %v2824_v32 = vpack.c.bf16 %v1729_v28, %v1729_v28  ;;  %v1663_v33 = vsel %vm1407_vm14, %v1042_v13, %v1535_v26  ;;  %vm1412_vm0 = vcmp.ge.f32.partialorder %v2964_v30, 0.0  ;;  %v1540_v34 = vmul.f32 0.2, %v2964_v30  ;;  %v2965_v40 = vpop.f32.mrb[54].mxu0 }
 0x152   : > { %2306 = vst.msk [vmem:[%s3302_s24 + $0xcc] sm:$0xf] %vm2254_vm3, %v2760_v27  ;;  %v2758_v37 = vpack.c.bf16 %v1663_v33, %v1663_v33  ;;  %v1727_v38 = vsel %vm1471_vm15, %v1298_v14, %v1599_v29  ;;  %vm1476_vm1 = vcmp.ge.f32.partialorder %v3028_v31, 0.0  ;;  %v1604_v39 = vmul.f32 0.2, %v3028_v31  ;;  %v3029_v41 = vpop.f32.mrb[54].mxu1 }
 0x153   : > { %2370 = vst.msk [vmem:[%s3302_s24 + $0x1cc] sm:$0xf] %vm2254_vm3, %v2824_v32  ;;  %v2822_v42 = vpack.c.bf16 %v1727_v38, %v1727_v38  ;;  %v1668_v43 = vsel %vm1412_vm0, %v2964_v30, %v1540_v34  ;;  %vm1410_vm2 = vcmp.ge.f32.partialorder %v1055_v35, 0.0  ;;  %v1538_v44 = vmul.f32 0.2, %v1055_v35  ;;  %v1058_v45 = vpop.f32.mrb[55].mxu0 }
 0x154   : > { %v1314_v46 = vpop.f32.mrb[55].mxu1  ;;  %2304 = vst.msk [vmem:[%s3302_s24 + $0xc4] sm:$0xf] %vm2254_vm3, %v2758_v37  ;;  %v2763_v47 = vpack.c.bf16 %v1668_v43, %v1668_v43  ;;  %v1732_v48 = vsel %vm1476_vm1, %v3028_v31, %v1604_v39  ;;  %vm1474_vm4 = vcmp.ge.f32.partialorder %v1311_v36, 0.0  ;;  %v1602_v49 = vmul.f32 0.2, %v1311_v36 }
 0x155   : > { %2368 = vst.msk [vmem:[%s3302_s24 + $0x1c4] sm:$0xf] %vm2254_vm3, %v2822_v42  ;;  %v2827_v50 = vpack.c.bf16 %v1732_v48, %v1732_v48  ;;  %v1666_v51 = vsel %vm1410_vm2, %v1055_v35, %v1538_v44  ;;  %vm1413_vm5 = vcmp.ge.f32.partialorder %v2965_v40, 0.0  ;;  %v1541_v52 = vmul.f32 0.2, %v2965_v40  ;;  %v2968_v62 = vpop.f32.mrb[56].mxu0 }
 0x156   : > { %2309 = vst.msk [vmem:[%s3302_s24 + $0xd8] sm:$0xf] %vm2254_vm3, %v2763_v47  ;;  %v2761_v53 = vpack.c.bf16 %v1666_v51, %v1666_v51  ;;  %v1730_v54 = vsel %vm1474_vm4, %v1311_v36, %v1602_v49  ;;  %vm1477_vm6 = vcmp.ge.f32.partialorder %v3029_v41, 0.0  ;;  %v1605_v55 = vmul.f32 0.2, %v3029_v41  ;;  %v3032_v63 = vpop.f32.mrb[56].mxu1 }
 0x157   : > { %2373 = vst.msk [vmem:[%s3302_s24 + $0x1d8] sm:$0xf] %vm2254_vm3, %v2827_v50  ;;  %v2825_v56 = vpack.c.bf16 %v1730_v54, %v1730_v54  ;;  %v1669_v57 = vsel %vm1413_vm5, %v2965_v40, %v1541_v52  ;;  %vm1411_vm7 = vcmp.ge.f32.partialorder %v1058_v45, 0.0  ;;  %v1539_v58 = vmul.f32 0.2, %v1058_v45  ;;  %v1071_v3 = vpop.f32.mrb[57].mxu0 }
 0x158   : > { %2307 = vst.msk [vmem:[%s3302_s24 + $0xd0] sm:$0xf] %vm2254_vm3, %v2761_v53  ;;  %v2764_v59 = vpack.c.bf16 %v1669_v57, %v1669_v57  ;;  %v1733_v60 = vsel %vm1477_vm6, %v3029_v41, %v1605_v55  ;;  %vm1475_vm8 = vcmp.ge.f32.partialorder %v1314_v46, 0.0  ;;  %v1603_v61 = vmul.f32 0.2, %v1314_v46  ;;  %v1327_v4 = vpop.f32.mrb[57].mxu1 }
 0x159   : > { %2371 = vst.msk [vmem:[%s3302_s24 + $0x1d0] sm:$0xf] %vm2254_vm3, %v2825_v56  ;;  %v2828_v0 = vpack.c.bf16 %v1733_v60, %v1733_v60  ;;  %v1667_v1 = vsel %vm1411_vm7, %v1058_v45, %v1539_v58  ;;  %vm1416_vm9 = vcmp.ge.f32.partialorder %v2968_v62, 0.0  ;;  %v1544_v2 = vmul.f32 0.2, %v2968_v62  ;;  %v2969_v8 = vpop.f32.mrb[58].mxu0 }
 0x15a   : > { %2310 = vst.msk [vmem:[%s3302_s24 + $0xdc] sm:$0xf] %vm2254_vm3, %v2764_v59  ;;  %v2762_v5 = vpack.c.bf16 %v1667_v1, %v1667_v1  ;;  %v1731_v6 = vsel %vm1475_vm8, %v1314_v46, %v1603_v61  ;;  %vm1480_vm10 = vcmp.ge.f32.partialorder %v3032_v63, 0.0  ;;  %v1608_v7 = vmul.f32 0.2, %v3032_v63  ;;  %v3033_v9 = vpop.f32.mrb[58].mxu1 }
 0x15b   : > { %2374 = vst.msk [vmem:[%s3302_s24 + $0x1dc] sm:$0xf] %vm2254_vm3, %v2828_v0  ;;  %v2826_v10 = vpack.c.bf16 %v1731_v6, %v1731_v6  ;;  %v1672_v11 = vsel %vm1416_vm9, %v2968_v62, %v1544_v2  ;;  %vm1414_vm11 = vcmp.ge.f32.partialorder %v1071_v3, 0.0  ;;  %v1542_v12 = vmul.f32 0.2, %v1071_v3  ;;  %v1074_v13 = vpop.f32.mrb[59].mxu0 }
 0x15c   : > { %v1330_v14 = vpop.f32.mrb[59].mxu1  ;;  %2308 = vst.msk [vmem:[%s3302_s24 + $0xd4] sm:$0xf] %vm2254_vm3, %v2762_v5  ;;  %v2767_v15 = vpack.c.bf16 %v1672_v11, %v1672_v11  ;;  %v1736_v16 = vsel %vm1480_vm10, %v3032_v63, %v1608_v7  ;;  %vm1478_vm12 = vcmp.ge.f32.partialorder %v1327_v4, 0.0  ;;  %v1606_v17 = vmul.f32 0.2, %v1327_v4 }
 0x15d   : > { %2372 = vst.msk [vmem:[%s3302_s24 + $0x1d4] sm:$0xf] %vm2254_vm3, %v2826_v10  ;;  %v2831_v18 = vpack.c.bf16 %v1736_v16, %v1736_v16  ;;  %v1670_v19 = vsel %vm1414_vm11, %v1071_v3, %v1542_v12  ;;  %vm1417_vm13 = vcmp.ge.f32.partialorder %v2969_v8, 0.0  ;;  %v1545_v20 = vmul.f32 0.2, %v2969_v8  ;;  %v2972_v30 = vpop.f32.mrb[60].mxu0 }
 0x15e   : > { %2313 = vst.msk [vmem:[%s3302_s24 + $0xe8] sm:$0xf] %vm2254_vm3, %v2767_v15  ;;  %v2765_v21 = vpack.c.bf16 %v1670_v19, %v1670_v19  ;;  %v1734_v22 = vsel %vm1478_vm12, %v1327_v4, %v1606_v17  ;;  %vm1481_vm14 = vcmp.ge.f32.partialorder %v3033_v9, 0.0  ;;  %v1609_v23 = vmul.f32 0.2, %v3033_v9  ;;  %v3036_v31 = vpop.f32.mrb[60].mxu1 }
 0x15f   : > { %2377 = vst.msk [vmem:[%s3302_s24 + $0x1e8] sm:$0xf] %vm2254_vm3, %v2831_v18  ;;  %v2829_v24 = vpack.c.bf16 %v1734_v22, %v1734_v22  ;;  %v1673_v25 = vsel %vm1417_vm13, %v2969_v8, %v1545_v20  ;;  %vm1415_vm15 = vcmp.ge.f32.partialorder %v1074_v13, 0.0  ;;  %v1543_v26 = vmul.f32 0.2, %v1074_v13  ;;  %v1087_v35 = vpop.f32.mrb[61].mxu0 }
 0x160   : > { %2311 = vst.msk [vmem:[%s3302_s24 + $0xe0] sm:$0xf] %vm2254_vm3, %v2765_v21  ;;  %v2768_v27 = vpack.c.bf16 %v1673_v25, %v1673_v25  ;;  %v1737_v28 = vsel %vm1481_vm14, %v3033_v9, %v1609_v23  ;;  %vm1479_vm0 = vcmp.ge.f32.partialorder %v1330_v14, 0.0  ;;  %v1607_v29 = vmul.f32 0.2, %v1330_v14  ;;  %v1343_v36 = vpop.f32.mrb[61].mxu1 }
 0x161   : > { %2375 = vst.msk [vmem:[%s3302_s24 + $0x1e0] sm:$0xf] %vm2254_vm3, %v2829_v24  ;;  %v2832_v32 = vpack.c.bf16 %v1737_v28, %v1737_v28  ;;  %v1671_v33 = vsel %vm1415_vm15, %v1074_v13, %v1543_v26  ;;  %vm1420_vm1 = vcmp.ge.f32.partialorder %v2972_v30, 0.0  ;;  %v1548_v34 = vmul.f32 0.2, %v2972_v30  ;;  %v2973_v40 = vpop.f32.mrb[62].mxu0 }
 0x162   : > { %2314 = vst.msk [vmem:[%s3302_s24 + $0xec] sm:$0xf] %vm2254_vm3, %v2768_v27  ;;  %v2766_v37 = vpack.c.bf16 %v1671_v33, %v1671_v33  ;;  %v1735_v38 = vsel %vm1479_vm0, %v1330_v14, %v1607_v29  ;;  %vm1484_vm2 = vcmp.ge.f32.partialorder %v3036_v31, 0.0  ;;  %v1612_v39 = vmul.f32 0.2, %v3036_v31  ;;  %v3037_v41 = vpop.f32.mrb[62].mxu1 }
 0x163   : > { %2378 = vst.msk [vmem:[%s3302_s24 + $0x1ec] sm:$0xf] %vm2254_vm3, %v2832_v32  ;;  %v2830_v42 = vpack.c.bf16 %v1735_v38, %v1735_v38  ;;  %v1676_v43 = vsel %vm1420_vm1, %v2972_v30, %v1548_v34  ;;  %vm1418_vm4 = vcmp.ge.f32.partialorder %v1087_v35, 0.0  ;;  %v1546_v44 = vmul.f32 0.2, %v1087_v35  ;;  %v1090_v45 = vpop.f32.mrb[63].mxu0 }
 0x164   : > { %v1346_v46 = vpop.f32.mrb[63].mxu1  ;;  %2312 = vst.msk [vmem:[%s3302_s24 + $0xe4] sm:$0xf] %vm2254_vm3, %v2766_v37  ;;  %v2771_v47 = vpack.c.bf16 %v1676_v43, %v1676_v43  ;;  %v1740_v48 = vsel %vm1484_vm2, %v3036_v31, %v1612_v39  ;;  %vm1482_vm5 = vcmp.ge.f32.partialorder %v1343_v36, 0.0  ;;  %v1610_v49 = vmul.f32 0.2, %v1343_v36 }
 0x165   : > { %2376 = vst.msk [vmem:[%s3302_s24 + $0x1e4] sm:$0xf] %vm2254_vm3, %v2830_v42  ;;  %v2835_v50 = vpack.c.bf16 %v1740_v48, %v1740_v48  ;;  %v1674_v51 = vsel %vm1418_vm4, %v1087_v35, %v1546_v44  ;;  %vm1421_vm6 = vcmp.ge.f32.partialorder %v2973_v40, 0.0  ;;  %v1549_v52 = vmul.f32 0.2, %v2973_v40 }
 0x166   : > { %2317 = vst.msk [vmem:[%s3302_s24 + $0xf8] sm:$0xf] %vm2254_vm3, %v2771_v47  ;;  %v2769_v53 = vpack.c.bf16 %v1674_v51, %v1674_v51  ;;  %v1738_v54 = vsel %vm1482_vm5, %v1343_v36, %v1610_v49  ;;  %vm1485_vm7 = vcmp.ge.f32.partialorder %v3037_v41, 0.0  ;;  %v1613_v55 = vmul.f32 0.2, %v3037_v41 }
 0x167   : > { %2381 = vst.msk [vmem:[%s3302_s24 + $0x1f8] sm:$0xf] %vm2254_vm3, %v2835_v50  ;;  %v2833_v56 = vpack.c.bf16 %v1738_v54, %v1738_v54  ;;  %v1677_v57 = vsel %vm1421_vm6, %v2973_v40, %v1549_v52  ;;  %vm1419_vm8 = vcmp.ge.f32.partialorder %v1090_v45, 0.0  ;;  %v1547_v58 = vmul.f32 0.2, %v1090_v45 }
 0x168   : > { %2315 = vst.msk [vmem:[%s3302_s24 + $0xf0] sm:$0xf] %vm2254_vm3, %v2769_v53  ;;  %v2772_v59 = vpack.c.bf16 %v1677_v57, %v1677_v57  ;;  %v1741_v60 = vsel %vm1485_vm7, %v3037_v41, %v1613_v55  ;;  %vm1483_vm9 = vcmp.ge.f32.partialorder %v1346_v46, 0.0  ;;  %v1611_v61 = vmul.f32 0.2, %v1346_v46 }
 0x169   : > { %2379 = vst.msk [vmem:[%s3302_s24 + $0x1f0] sm:$0xf] %vm2254_vm3, %v2833_v56  ;;  %v2836_v62 = vpack.c.bf16 %v1741_v60, %v1741_v60  ;;  %v1675_v63 = vsel %vm1419_vm8, %v1090_v45, %v1547_v58 }
 0x16a   : > { %2318 = vst.msk [vmem:[%s3302_s24 + $0xfc] sm:$0xf] %vm2254_vm3, %v2772_v59  ;;  %v2770_v0 = vpack.c.bf16 %v1675_v63, %v1675_v63  ;;  %v1739_v1 = vsel %vm1483_vm9, %v1346_v46, %v1611_v61 }
 0x16b   : > { %2382 = vst.msk [vmem:[%s3302_s24 + $0x1fc] sm:$0xf] %vm2254_vm3, %v2836_v62  ;;  %v2834_v2 = vpack.c.bf16 %v1739_v1, %v1739_v1 }
 0x16c   : > { %2316 = vst.msk [vmem:[%s3302_s24 + $0xf4] sm:$0xf] %vm2254_vm3, %v2770_v0 }
 0x16d   : > { %2380 = vst.msk [vmem:[%s3302_s24 + $0x1f4] sm:$0xf] %vm2254_vm3, %v2834_v2 }
 0x16e PF: > { %s12_s9 = sadd.s32 1, %s3125_s9  }
 0x16f   : > { %p9_p4 = scmp.ge.s32.totalorder %s12_s9, 4  }
 0x171   :  { %11 = sbr.rel (!%p9_p4) target bundleno = 1 (0x1), region = 58 }

// kernel: discriminator_forward.6
= control target key start
LH: loop header
LB: loop body
LE: loop exit
PB: predicated region body
PF: predicated region fallthrough
CT: control target
= control target key end

     0   :  { %vm627_vm0 = vcmask 130048   ;;  %s4200_s1 = inlined_call_operand.vmem [shape: bf16[128,16], index: 1, kind: input, shape index: {}]   ;;  %s4201_s0 = inlined_call_operand.vmem [shape: bf16[512,128], index: 0, kind: input, shape index: {}]   ;;  %s4202_s2 = inlined_call_operand.vmem [shape: f32[1,16], index: 2, kind: input, shape index: {}]   ;;  %s4203_s3 = inlined_call_operand.vmem [shape: f32[1,16], index: 3, kind: input, shape index: {}]   ;;  %s4204_s4 = inlined_call_operand.vmem [shape: bf16[512,16], index: 4, kind: output, shape index: {}]  }
   0x1   :  { %v1992_v0 = vld [vmem:[%s4200_s1] sm:$0xff]   ;;  %v1993_v1 = vld [vmem:[%s4200_s1 + $0x8] sm:$0xff]   ;;  %v1994_v2 = vld [vmem:[%s4200_s1 + $0x10] sm:$0xff]  }
   0x2   :  { %1896 = vmatprep.subr.bf16.mxu0 %v1992_v0  ;;  %1976 = vmatprep.subr.bf16.mxu1 %v1992_v0  ;;  %v1995_v3 = vld [vmem:[%s4200_s1 + $0x18] sm:$0xff]   ;;  %v2000_v4 = vld [vmem:[%s4201_s0] sm:$0xff]   ;;  %v1997_v6 = vld [vmem:[%s4200_s1 + $0x28] sm:$0xff]  }
   0x3   :  { %1897 = vmatpush3.bf16.msra.mxu0 %v1992_v0  ;;  %1984 = vmatpush3.bf16.msra.mxu1 %v1992_v0  ;;  %v1996_v5 = vld [vmem:[%s4200_s1 + $0x20] sm:$0xff]   ;;  %v1998_v7 = vld [vmem:[%s4200_s1 + $0x30] sm:$0xff]   ;;  %v1999_v8 = vld [vmem:[%s4200_s1 + $0x38] sm:$0xff]  }
   0x4   :  { %1898 = vmatprep.subr.bf16.mxu0 %v1993_v1  ;;  %1977 = vmatprep.subr.bf16.mxu1 %v1993_v1  ;;  %v2016_v9 = vld [vmem:[%s4201_s0 + $0x80] sm:$0xff]   ;;  %v2001_v10 = vld [vmem:[%s4201_s0 + $0x8] sm:$0xff]   ;;  %v2002_v11 = vld [vmem:[%s4201_s0 + $0x10] sm:$0xff]  }
   0x5   :  { %1912 = vmatprep.mubr.bf16.mxu0 %v2000_v4  ;;  %1944 = vmatprep.mubr.bf16.mxu1 %v2016_v9  ;;  %v2017_v12 = vld [vmem:[%s4201_s0 + $0x88] sm:$0xff]   ;;  %v2018_v13 = vld [vmem:[%s4201_s0 + $0x90] sm:$0xff]   ;;  %v2003_v14 = vld [vmem:[%s4201_s0 + $0x18] sm:$0xff]  }
   0x6   :  { %v2004_v15 = vld [vmem:[%s4201_s0 + $0x20] sm:$0xff]   ;;  %v2019_v16 = vld [vmem:[%s4201_s0 + $0x98] sm:$0xff]   ;;  %v2005_v18 = vld [vmem:[%s4201_s0 + $0x28] sm:$0xff]  }
   0x7   :  { %1899 = vmatpush3.bf16.msra.mxu0 %v1993_v1  ;;  %1985 = vmatpush3.bf16.msra.mxu1 %v1993_v1  ;;  %v2020_v17 = vld [vmem:[%s4201_s0 + $0xa0] sm:$0xff]   ;;  %v2021_v19 = vld [vmem:[%s4201_s0 + $0xa8] sm:$0xff]   ;;  %v2006_v20 = vld [vmem:[%s4201_s0 + $0x30] sm:$0xff]  }
   0x8   :  { %1900 = vmatprep.subr.bf16.mxu0 %v1994_v2  ;;  %1978 = vmatprep.subr.bf16.mxu1 %v1994_v2  ;;  %v2022_v21 = vld [vmem:[%s4201_s0 + $0xb0] sm:$0xff]   ;;  %v2007_v22 = vld [vmem:[%s4201_s0 + $0x38] sm:$0xff]   ;;  %v2008_v24 = vld [vmem:[%s4201_s0 + $0x40] sm:$0xff]  }
   0x9   :  { %v2023_v23 = vld [vmem:[%s4201_s0 + $0xb8] sm:$0xff]   ;;  %v2024_v25 = vld [vmem:[%s4201_s0 + $0xc0] sm:$0xff]   ;;  %v2009_v26 = vld [vmem:[%s4201_s0 + $0x48] sm:$0xff]  }
   0xa   :  { %v2025_v27 = vld [vmem:[%s4201_s0 + $0xc8] sm:$0xff]   ;;  %v2010_v28 = vld [vmem:[%s4201_s0 + $0x50] sm:$0xff]   ;;  %v2011_v30 = vld [vmem:[%s4201_s0 + $0x58] sm:$0xff]  }
   0xb   :  { %1901 = vmatpush3.bf16.msra.mxu0 %v1994_v2  ;;  %1986 = vmatpush3.bf16.msra.mxu1 %v1994_v2  ;;  %v2026_v29 = vld [vmem:[%s4201_s0 + $0xd0] sm:$0xff]   ;;  %v2027_v31 = vld [vmem:[%s4201_s0 + $0xd8] sm:$0xff]   ;;  %v2012_v32 = vld [vmem:[%s4201_s0 + $0x60] sm:$0xff]  }
   0xc   :  { %1902 = vmatprep.subr.bf16.mxu0 %v1995_v3  ;;  %1979 = vmatprep.subr.bf16.mxu1 %v1995_v3  ;;  %v2028_v33 = vld [vmem:[%s4201_s0 + $0xe0] sm:$0xff]   ;;  %v2013_v34 = vld [vmem:[%s4201_s0 + $0x68] sm:$0xff]   ;;  %v2014_v36 = vld [vmem:[%s4201_s0 + $0x70] sm:$0xff]  }
   0xd   :  { %v2029_v35 = vld [vmem:[%s4201_s0 + $0xe8] sm:$0xff]   ;;  %v2030_v37 = vld [vmem:[%s4201_s0 + $0xf0] sm:$0xff]   ;;  %v2015_v38 = vld [vmem:[%s4201_s0 + $0x78] sm:$0xff]  }
   0xe   :  { %v2031_v39 = vld [vmem:[%s4201_s0 + $0xf8] sm:$0xff]  }
   0xf   :  { %1903 = vmatpush3.bf16.msra.mxu0 %v1995_v3  ;;  %1987 = vmatpush3.bf16.msra.mxu1 %v1995_v3 }
  0x10   :  { %1904 = vmatprep.subr.bf16.mxu0 %v1996_v5  ;;  %1980 = vmatprep.subr.bf16.mxu1 %v1996_v5 }
  0x13   :  { %1905 = vmatpush3.bf16.msra.mxu0 %v1996_v5  ;;  %1988 = vmatpush3.bf16.msra.mxu1 %v1996_v5 }
  0x14   :  { %1906 = vmatprep.subr.bf16.mxu0 %v1997_v6  ;;  %1981 = vmatprep.subr.bf16.mxu1 %v1997_v6 }
  0x17   :  { %1907 = vmatpush3.bf16.msra.mxu0 %v1997_v6  ;;  %1989 = vmatpush3.bf16.msra.mxu1 %v1997_v6 }
  0x18   :  { %1908 = vmatprep.subr.bf16.mxu0 %v1998_v7  ;;  %1982 = vmatprep.subr.bf16.mxu1 %v1998_v7 }
  0x1b   :  { %1909 = vmatpush3.bf16.msra.mxu0 %v1998_v7  ;;  %1990 = vmatpush3.bf16.msra.mxu1 %v1998_v7 }
  0x1c   :  { %1910 = vmatprep.subr.bf16.mxu0 %v1999_v8  ;;  %1983 = vmatprep.subr.bf16.mxu1 %v1999_v8 }
  0x1f   :  { %1911 = vmatpush3.bf16.msra.mxu0 %v1999_v8  ;;  %1991 = vmatpush3.bf16.msra.mxu1 %v1999_v8 }
  0x22   :  { %1913 = vmatmul.mubr.bf16.vlgmr.msra.gmra.mrb[0].mxu0 %v2001_v10  ;;  %1945 = vmatmul.mubr.bf16.vlgmr.msra.gmra.mrb[0].mxu1 %v2017_v12 }
  0x23   :  { %1916 = vmatprep.mubr.bf16.mxu0 %v2002_v11  ;;  %1948 = vmatprep.mubr.bf16.mxu1 %v2018_v13 }
  0x2a   :  { %1917 = vmatmul.mubr.bf16.gmra.mrb[4].mxu0 %v2003_v14  ;;  %1949 = vmatmul.mubr.bf16.gmra.mrb[4].mxu1 %v2019_v16 }
  0x2b   :  { %1920 = vmatprep.mubr.bf16.mxu0 %v2004_v15  ;;  %1952 = vmatprep.mubr.bf16.mxu1 %v2020_v17 }
  0x32   :  { %1921 = vmatmul.mubr.bf16.gmra.mrb[8].mxu0 %v2005_v18  ;;  %1953 = vmatmul.mubr.bf16.gmra.mrb[8].mxu1 %v2021_v19 }
  0x33   :  { %1924 = vmatprep.mubr.bf16.mxu0 %v2006_v20  ;;  %1956 = vmatprep.mubr.bf16.mxu1 %v2022_v21 }
  0x3a   :  { %1925 = vmatmul.mubr.bf16.gmra.mrb[12].mxu0 %v2007_v22  ;;  %1957 = vmatmul.mubr.bf16.gmra.mrb[12].mxu1 %v2023_v23 }
  0x3b   :  { %1928 = vmatprep.mubr.bf16.mxu0 %v2008_v24  ;;  %1960 = vmatprep.mubr.bf16.mxu1 %v2024_v25 }
  0x42   :  { %1929 = vmatmul.mubr.bf16.gmra.mrb[16].mxu0 %v2009_v26  ;;  %1961 = vmatmul.mubr.bf16.gmra.mrb[16].mxu1 %v2025_v27 }
  0x43   :  { %1932 = vmatprep.mubr.bf16.mxu0 %v2010_v28  ;;  %1964 = vmatprep.mubr.bf16.mxu1 %v2026_v29 }
  0x4a   :  { %1933 = vmatmul.mubr.bf16.gmra.mrb[20].mxu0 %v2011_v30  ;;  %1965 = vmatmul.mubr.bf16.gmra.mrb[20].mxu1 %v2027_v31 }
  0x4b   :  { %1936 = vmatprep.mubr.bf16.mxu0 %v2012_v32  ;;  %1968 = vmatprep.mubr.bf16.mxu1 %v2028_v33 }
  0x52   :  { %1937 = vmatmul.mubr.bf16.gmra.mrb[24].mxu0 %v2013_v34  ;;  %1969 = vmatmul.mubr.bf16.gmra.mrb[24].mxu1 %v2029_v35 }
  0x53   :  { %1940 = vmatprep.mubr.bf16.mxu0 %v2014_v36  ;;  %1972 = vmatprep.mubr.bf16.mxu1 %v2030_v37 }
  0x5a   :  { %1941 = vmatmul.mubr.bf16.gmra.mrb[28].mxu0 %v2015_v38  ;;  %1973 = vmatmul.mubr.bf16.gmra.mrb[28].mxu1 %v2031_v39 }
  0xf5   :  { %v2179_v40 = vpop.f32.mrb[0].mxu0  ;;  %v2181_v41 = vpop.f32.mrb[0].mxu1 }
  0xf6   :  { %v2183_v42 = vpop.f32.mrb[1].mxu0  ;;  %v2185_v43 = vpop.f32.mrb[1].mxu1  ;;  %v631_v51 = vsel %vm627_vm0, %v2179_v40, 0.0 }
  0xf7   :  { %v2187_v44 = vpop.f32.mrb[2].mxu0  ;;  %v2189_v45 = vpop.f32.mrb[2].mxu1  ;;  %v628_v48 = vsel %vm627_vm0, %v2183_v42, 0.0 }
  0xf8   :  { %v2191_v46 = vpop.f32.mrb[3].mxu0  ;;  %v2193_v47 = vpop.f32.mrb[3].mxu1  ;;  %v633_v53 = vsel %vm627_vm0, %v2187_v44, 0.0 }
  0xf9   :  { %v629_v49 = vsel %vm627_vm0, %v2191_v46, 0.0 }
  0xfa   :  { %v630_v50 = vadd.f32 %v629_v49, %v628_v48 }
  0xfc   :  { %v632_v52 = vadd.f32 %v631_v51, %v630_v50 }
  0xfd   :  { %v2203_v54 = vpop.f32.mrb[4].mxu0  ;;  %v2205_v55 = vpop.f32.mrb[4].mxu1 }
  0xfe   :  { %v2207_v56 = vpop.f32.mrb[5].mxu0  ;;  %v634_v57 = vadd.f32 %v633_v53, %v632_v52  ;;  %v2209_v58 = vpop.f32.mrb[5].mxu1  ;;  %v639_v3 = vsel %vm627_vm0, %v2203_v54, 0.0 }
  0xff   :  { %v635_v59 = vsel %vm627_vm0, %v2207_v56, 0.0  ;;  %v2213_v60 = vpop.f32.mrb[6].mxu0  ;;  %v2215_v61 = vpop.f32.mrb[6].mxu1 }
 0x100   :  { %v636_v62 = vadd.f32 %v635_v59, %v634_v57  ;;  %v2217_v63 = vpop.f32.mrb[7].mxu0  ;;  %v2219_v0 = vpop.f32.mrb[7].mxu1  ;;  %v641_v5 = vsel %vm627_vm0, %v2213_v60, 0.0 }
 0x101   :  { %v637_v1 = vsel %vm627_vm0, %v2217_v63, 0.0 }
 0x102   :  { %v638_v2 = vadd.f32 %v637_v1, %v636_v62 }
 0x104   :  { %v640_v4 = vadd.f32 %v639_v3, %v638_v2 }
 0x105   :  { %v2227_v6 = vpop.f32.mrb[8].mxu0  ;;  %v2229_v7 = vpop.f32.mrb[8].mxu1 }
 0x106   :  { %v2231_v8 = vpop.f32.mrb[9].mxu0  ;;  %v642_v9 = vadd.f32 %v641_v5, %v640_v4  ;;  %v2233_v10 = vpop.f32.mrb[9].mxu1  ;;  %v647_v19 = vsel %vm627_vm0, %v2227_v6, 0.0 }
 0x107   :  { %v643_v11 = vsel %vm627_vm0, %v2231_v8, 0.0  ;;  %v2237_v12 = vpop.f32.mrb[10].mxu0  ;;  %v2239_v13 = vpop.f32.mrb[10].mxu1 }
 0x108   :  { %v644_v14 = vadd.f32 %v643_v11, %v642_v9  ;;  %v2241_v15 = vpop.f32.mrb[11].mxu0  ;;  %v2243_v16 = vpop.f32.mrb[11].mxu1  ;;  %v649_v21 = vsel %vm627_vm0, %v2237_v12, 0.0 }
 0x109   :  { %v645_v17 = vsel %vm627_vm0, %v2241_v15, 0.0 }
 0x10a   :  { %v646_v18 = vadd.f32 %v645_v17, %v644_v14 }
 0x10c   :  { %v648_v20 = vadd.f32 %v647_v19, %v646_v18 }
 0x10d   :  { %v2251_v22 = vpop.f32.mrb[12].mxu0  ;;  %v2253_v23 = vpop.f32.mrb[12].mxu1 }
 0x10e   :  { %v2255_v24 = vpop.f32.mrb[13].mxu0  ;;  %v650_v25 = vadd.f32 %v649_v21, %v648_v20  ;;  %v2257_v26 = vpop.f32.mrb[13].mxu1  ;;  %v655_v35 = vsel %vm627_vm0, %v2251_v22, 0.0 }
 0x10f   :  { %v651_v27 = vsel %vm627_vm0, %v2255_v24, 0.0  ;;  %v2261_v28 = vpop.f32.mrb[14].mxu0  ;;  %v2263_v29 = vpop.f32.mrb[14].mxu1 }
 0x110   :  { %v652_v30 = vadd.f32 %v651_v27, %v650_v25  ;;  %v2265_v31 = vpop.f32.mrb[15].mxu0  ;;  %v2267_v32 = vpop.f32.mrb[15].mxu1  ;;  %v657_v37 = vsel %vm627_vm0, %v2261_v28, 0.0 }
 0x111   :  { %v653_v33 = vsel %vm627_vm0, %v2265_v31, 0.0 }
 0x112   :  { %v654_v34 = vadd.f32 %v653_v33, %v652_v30 }
 0x114   :  { %v656_v36 = vadd.f32 %v655_v35, %v654_v34 }
 0x115   :  { %v2275_v38 = vpop.f32.mrb[16].mxu0  ;;  %v2277_v39 = vpop.f32.mrb[16].mxu1 }
 0x116   :  { %4282 = vst [vmem:[#allocation2_spill] sm:$0xff] %v2275_v38  ;;  %v2279_v48 = vpop.f32.mrb[17].mxu0  ;;  %v658_v49 = vadd.f32 %v657_v37, %v656_v36  ;;  %v2281_v50 = vpop.f32.mrb[17].mxu1  ;;  %v663_v3 = vsel %vm627_vm0, %v2275_v38, 0.0 }
 0x117   :  { %v659_v51 = vsel %vm627_vm0, %v2279_v48, 0.0  ;;  %v2285_v52 = vpop.f32.mrb[18].mxu0  ;;  %v2287_v53 = vpop.f32.mrb[18].mxu1 }
 0x118   :  { %4283 = vst [vmem:[#allocation3_spill] sm:$0xff] %v2285_v52  ;;  %v660_v57 = vadd.f32 %v659_v51, %v658_v49  ;;  %v2289_v59 = vpop.f32.mrb[19].mxu0  ;;  %v2291_v62 = vpop.f32.mrb[19].mxu1  ;;  %v665_v5 = vsel %vm627_vm0, %v2285_v52, 0.0 }
 0x119   :  { %v661_v1 = vsel %vm627_vm0, %v2289_v59, 0.0 }
 0x11a   :  { %v662_v2 = vadd.f32 %v661_v1, %v660_v57 }
 0x11c   :  { %v664_v4 = vadd.f32 %v663_v3, %v662_v2 }
 0x11d   :  { %v2299_v9 = vpop.f32.mrb[20].mxu0  ;;  %v2301_v11 = vpop.f32.mrb[20].mxu1 }
 0x11e   :  { %4284 = vst [vmem:[#allocation4_spill] sm:$0xff] %v2299_v9  ;;  %v2303_v14 = vpop.f32.mrb[21].mxu0  ;;  %v666_v17 = vadd.f32 %v665_v5, %v664_v4  ;;  %v2305_v18 = vpop.f32.mrb[21].mxu1  ;;  %v671_v35 = vsel %vm627_vm0, %v2299_v9, 0.0 }
 0x11f   :  { %4285 = vst [vmem:[#allocation5_spill] sm:$0xff] %v2303_v14  ;;  %v667_v19 = vsel %vm627_vm0, %v2303_v14, 0.0  ;;  %v2309_v20 = vpop.f32.mrb[22].mxu0  ;;  %v2311_v21 = vpop.f32.mrb[22].mxu1  ;;  %v691_v14 = vsel %vm627_vm0, %v2185_v43, 0.0 }
 0x120   :  { %4286 = vst [vmem:[#allocation6_spill] sm:$0xff] %v2309_v20  ;;  %v668_v25 = vadd.f32 %v667_v19, %v666_v17  ;;  %v2313_v27 = vpop.f32.mrb[23].mxu0  ;;  %v2315_v30 = vpop.f32.mrb[23].mxu1  ;;  %v673_v37 = vsel %vm627_vm0, %v2309_v20, 0.0 }
 0x121   :  { %4287 = vst [vmem:[#allocation7_spill] sm:$0xff] %v2313_v27  ;;  %v669_v33 = vsel %vm627_vm0, %v2313_v27, 0.0 }
 0x122   :  { %v670_v34 = vadd.f32 %v669_v33, %v668_v25 }
 0x124   :  { %v672_v36 = vadd.f32 %v671_v35, %v670_v34 }
 0x125   :  { %v2323_v49 = vpop.f32.mrb[24].mxu0  ;;  %v2325_v51 = vpop.f32.mrb[24].mxu1 }
 0x126   :  { %4288 = vst [vmem:[#allocation8_spill] sm:$0xff] %v2323_v49  ;;  %4289 = vst [vmem:[#allocation9_spill] sm:$0xff] %v2325_v51  ;;  %v2327_v57 = vpop.f32.mrb[25].mxu0  ;;  %v674_v1 = vadd.f32 %v673_v37, %v672_v36  ;;  %v2329_v2 = vpop.f32.mrb[25].mxu1  ;;  %v679_v35 = vsel %vm627_vm0, %v2323_v49, 0.0 }
 0x127   :  { %4290 = vst [vmem:[#allocation10_spill] sm:$0xff] %v2327_v57  ;;  %v675_v3 = vsel %vm627_vm0, %v2327_v57, 0.0  ;;  %v2333_v4 = vpop.f32.mrb[26].mxu0  ;;  %v2335_v5 = vpop.f32.mrb[26].mxu1 }
 0x128   :  { %4291 = vst [vmem:[#allocation11_spill] sm:$0xff] %v2333_v4  ;;  %4292 = vst [vmem:[#allocation12_spill] sm:$0xff] %v2335_v5  ;;  %v676_v17 = vadd.f32 %v675_v3, %v674_v1  ;;  %v2337_v19 = vpop.f32.mrb[27].mxu0  ;;  %v2339_v25 = vpop.f32.mrb[27].mxu1  ;;  %v681_v37 = vsel %vm627_vm0, %v2333_v4, 0.0 }
 0x129   :  { %4293 = vst [vmem:[#allocation13_spill] sm:$0xff] %v2337_v19  ;;  %4294 = vst [vmem:[#allocation14_spill] sm:$0xff] %v2339_v25  ;;  %v677_v33 = vsel %vm627_vm0, %v2337_v19, 0.0 }
 0x12a   :  { %v678_v34 = vadd.f32 %v677_v33, %v676_v17 }
 0x12c   :  { %v680_v36 = vadd.f32 %v679_v35, %v678_v34 }
 0x12d   :  { %v2347_v57 = vpop.f32.mrb[28].mxu0  ;;  %v2349_v20 = vpop.f32.mrb[28].mxu1 }
 0x12e   :  { %v2351_v1 = vpop.f32.mrb[29].mxu0  ;;  %v682_v3 = vadd.f32 %v681_v37, %v680_v36  ;;  %v2353_v9 = vpop.f32.mrb[29].mxu1  ;;  %v687_v36 = vsel %vm627_vm0, %v2347_v57, 0.0 }
 0x12f   :  { %4295 = vst [vmem:[#allocation15_spill] sm:$0xff] %v2351_v1  ;;  %4296 = vst [vmem:[#allocation16_spill] sm:$0xff] %v2353_v9  ;;  %v683_v19 = vsel %vm627_vm0, %v2351_v1, 0.0  ;;  %v2357_v17 = vpop.f32.mrb[30].mxu0  ;;  %v2359_v33 = vpop.f32.mrb[30].mxu1 }
 0x130   :  { %4297 = vst [vmem:[#allocation17_spill] sm:$0xff] %v2357_v17  ;;  %v684_v34 = vadd.f32 %v683_v19, %v682_v3  ;;  %v2361_v35 = vpop.f32.mrb[31].mxu0  ;;  %v2363_v4 = vpop.f32.mrb[31].mxu1  ;;  %v689_v1 = vsel %vm627_vm0, %v2357_v17, 0.0  ;;  %v693_v3 = vsel %vm627_vm0, %v2193_v47, 0.0 }
 0x131   :  { %4298 = vst [vmem:[#allocation18_spill] sm:$0xff] %v2361_v35  ;;  %v685_v49 = vsel %vm627_vm0, %v2361_v35, 0.0  ;;  %v695_v35 = vsel %vm627_vm0, %v2181_v41, 0.0 }
 0x132   :  { %v686_v27 = vadd.f32 %v685_v49, %v684_v34  ;;  %v697_v34 = vsel %vm627_vm0, %v2189_v45, 0.0 }
 0x134   :  { %v688_v37 = vadd.f32 %v687_v36, %v686_v27  ;;  %v699_v27 = vsel %vm627_vm0, %v2209_v58, 0.0 }
 0x136   :  { %v690_v52 = vadd.f32 %v689_v1, %v688_v37  ;;  %v701_v1 = vsel %vm627_vm0, %v2219_v0, 0.0 }
 0x138   :  { %v692_v19 = vadd.f32 %v691_v14, %v690_v52  ;;  %v703_v14 = vsel %vm627_vm0, %v2205_v55, 0.0 }
 0x13a   :  { %v694_v38 = vadd.f32 %v693_v3, %v692_v19  ;;  %v705_v19 = vsel %vm627_vm0, %v2215_v61, 0.0 }
 0x13c   :  { %v696_v49 = vadd.f32 %v695_v35, %v694_v38  ;;  %v707_v38 = vsel %vm627_vm0, %v2233_v10, 0.0 }
 0x13e   :  { %v698_v36 = vadd.f32 %v697_v34, %v696_v49  ;;  %v709_v49 = vsel %vm627_vm0, %v2243_v16, 0.0 }
 0x140   :  { %v700_v17 = vadd.f32 %v699_v27, %v698_v36  ;;  %v711_v27 = vsel %vm627_vm0, %v2229_v7, 0.0  ;;  %v713_v36 = vsel %vm627_vm0, %v2239_v13, 0.0 }
 0x142   :  { %v702_v52 = vadd.f32 %v701_v1, %v700_v17  ;;  %v715_v1 = vsel %vm627_vm0, %v2257_v26, 0.0 }
 0x144   :  { %v704_v37 = vadd.f32 %v703_v14, %v702_v52 }
 0x146   :  { %v706_v35 = vadd.f32 %v705_v19, %v704_v37  ;;  %v717_v37 = vsel %vm627_vm0, %v2267_v32, 0.0 }
 0x148   :  { %v708_v3 = vadd.f32 %v707_v38, %v706_v35  ;;  %v719_v38 = vsel %vm627_vm0, %v2253_v23, 0.0 }
 0x14a   :  { %v710_v34 = vadd.f32 %v709_v49, %v708_v3  ;;  %v721_v3 = vsel %vm627_vm0, %v2263_v29, 0.0  ;;  %v723_v49 = vsel %vm627_vm0, %v2281_v50, 0.0 }
 0x14c   :  { %v712_v17 = vadd.f32 %v711_v27, %v710_v34 }
 0x14e   :  { %v714_v52 = vadd.f32 %v713_v36, %v712_v17  ;;  %v725_v17 = vsel %vm627_vm0, %v2291_v62, 0.0 }
 0x150   :  { %v716_v14 = vadd.f32 %v715_v1, %v714_v52  ;;  %v727_v1 = vsel %vm627_vm0, %v2277_v39, 0.0 }
 0x152   :  { %v718_v19 = vadd.f32 %v717_v37, %v716_v14  ;;  %v729_v14 = vsel %vm627_vm0, %v2287_v53, 0.0  ;;  %v731_v37 = vsel %vm627_vm0, %v2305_v18, 0.0 }
 0x154   :  { %v720_v35 = vadd.f32 %v719_v38, %v718_v19 }
 0x156   :  { %v722_v34 = vadd.f32 %v721_v3, %v720_v35  ;;  %v733_v35 = vsel %vm627_vm0, %v2315_v30, 0.0 }
 0x158   :  { %v724_v27 = vadd.f32 %v723_v49, %v722_v34  ;;  %v735_v49 = vsel %vm627_vm0, %v2301_v11, 0.0 }
 0x15a   :  { %v726_v36 = vadd.f32 %v725_v17, %v724_v27  ;;  %v737_v27 = vsel %vm627_vm0, %v2311_v21, 0.0  ;;  %v739_v17 = vsel %vm627_vm0, %v2329_v2, 0.0 }
 0x15c   :  { %v728_v52 = vadd.f32 %v727_v1, %v726_v36 }
 0x15e   :  { %v730_v19 = vadd.f32 %v729_v14, %v728_v52  ;;  %v741_v52 = vsel %vm627_vm0, %v2339_v25, 0.0 }
 0x160   :  { %v732_v38 = vadd.f32 %v731_v37, %v730_v19  ;;  %v743_v37 = vsel %vm627_vm0, %v2325_v51, 0.0 }
 0x162   :  { %v734_v3 = vadd.f32 %v733_v35, %v732_v38  ;;  %v745_v38 = vsel %vm627_vm0, %v2335_v5, 0.0  ;;  %v747_v35 = vsel %vm627_vm0, %v2353_v9, 0.0 }
 0x164   :  { %v736_v34 = vadd.f32 %v735_v49, %v734_v3 }
 0x166   :  { %v738_v36 = vadd.f32 %v737_v27, %v736_v34  ;;  %v749_v34 = vsel %vm627_vm0, %v2363_v4, 0.0 }
 0x168   :  { %v740_v1 = vadd.f32 %v739_v17, %v738_v36  ;;  %v751_v17 = vsel %vm627_vm0, %v2349_v20, 0.0 }
 0x16a   :  { %v742_v14 = vadd.f32 %v741_v52, %v740_v1  ;;  %v753_v1 = vsel %vm627_vm0, %v2359_v33, 0.0 }
 0x16c   :  { %v744_v19 = vadd.f32 %v743_v37, %v742_v14 }
 0x16e   :  { %v746_v3 = vadd.f32 %v745_v38, %v744_v19 }
 0x170   :  { %v748_v49 = vadd.f32 %v747_v35, %v746_v3 }
 0x172   :  { %v750_v27 = vadd.f32 %v749_v34, %v748_v49  ;;  %v4307_v34 = vld [vmem:[#allocation7_spill] sm:$0xff] }
 0x174   :  { %v752_v36 = vadd.f32 %v751_v17, %v750_v27  ;;  %v4308_v27 = vld [vmem:[#allocation4_spill] sm:$0xff]  ;;  %v4310_v17 = vld [vmem:[#allocation6_spill] sm:$0xff] }
 0x176   :  { %v754_v52 = vadd.f32 %v753_v1, %v752_v36  ;;  %v4312_v1 = vld [vmem:[#allocation10_spill] sm:$0xff] }
 0x178   :  { %v755_v14 = vrot.slane %v754_v52, 4 }
 0x17a   :  { %v756_v37 = vadd.f32 %v755_v14, %v754_v52  ;;  %v4313_v14 = vld [vmem:[#allocation13_spill] sm:$0xff] }
 0x17c   :  { %v757_v5 = vrot.slane %v756_v37, 2 }
 0x17e   :  { %v758_v51 = vadd.f32 %v757_v5, %v756_v37  ;;  %v4304_v5 = vld [vmem:[#allocation3_spill] sm:$0xff] }
 0x180   :  { %v759_v25 = vrot.slane %v758_v51, 1 }
 0x182   :  { %v760_v9 = vadd.f32 %v759_v25, %v758_v51  ;;  %v4303_v51 = vld [vmem:[#allocation2_spill] sm:$0xff]  ;;  %v4305_v25 = vld [vmem:[#allocation5_spill] sm:$0xff] }
 0x184   :  { %v2435_v19 = vmul.f32 0.001953125, %v760_v9 }
 0x186   :  { %v2439_v38 = vsub.f32 %v2183_v42, %v2435_v19  ;;  %v2443_v35 = vsub.f32 %v2191_v46, %v2435_v19  ;;  %v2447_v3 = vsub.f32 %v2179_v40, %v2435_v19  ;;  %v2451_v49 = vsub.f32 %v2187_v44, %v2435_v19 }
 0x187   :  { %v2455_v9 = vsub.f32 %v2207_v56, %v2435_v19  ;;  %v2459_v42 = vsub.f32 %v2217_v63, %v2435_v19  ;;  %v2463_v46 = vsub.f32 %v2203_v54, %v2435_v19  ;;  %v2467_v40 = vsub.f32 %v2213_v60, %v2435_v19 }
 0x188   :  { %4299 = vst [vmem:[#allocation19_spill] sm:$0xff] %v2439_v38  ;;  %4300 = vst [vmem:[#allocation20_spill] sm:$0xff] %v2443_v35  ;;  %v2471_v44 = vsub.f32 %v2231_v8, %v2435_v19  ;;  %v2475_v56 = vsub.f32 %v2241_v15, %v2435_v19  ;;  %v2479_v63 = vsub.f32 %v2227_v6, %v2435_v19 }
 0x189   :  { %4301 = vst [vmem:[#allocation21_spill] sm:$0xff] %v2447_v3  ;;  %4302 = vst [vmem:[#allocation22_spill] sm:$0xff] %v2451_v49  ;;  %v2483_v54 = vsub.f32 %v2237_v12, %v2435_v19  ;;  %v2487_v60 = vsub.f32 %v2255_v24, %v2435_v19  ;;  %v2491_v8 = vsub.f32 %v2265_v31, %v2435_v19 }
 0x18a   :  { %v2495_v15 = vsub.f32 %v2251_v22, %v2435_v19  ;;  %v2499_v6 = vsub.f32 %v2261_v28, %v2435_v19  ;;  %v2503_v12 = vsub.f32 %v2279_v48, %v2435_v19  ;;  %v2507_v24 = vsub.f32 %v2289_v59, %v2435_v19 }
 0x18b   :  { %v2511_v31 = vsub.f32 %v4303_v51, %v2435_v19  ;;  %v2515_v22 = vsub.f32 %v4304_v5, %v2435_v19  ;;  %v2519_v28 = vsub.f32 %v4305_v25, %v2435_v19  ;;  %v2523_v48 = vsub.f32 %v4307_v34, %v2435_v19  ;;  %v4315_v51 = vld [vmem:[#allocation8_spill] sm:$0xff]  ;;  %v4316_v25 = vld [vmem:[#allocation11_spill] sm:$0xff] }
 0x18c   :  { %v2527_v59 = vsub.f32 %v4308_v27, %v2435_v19  ;;  %v2531_v36 = vsub.f32 %v4310_v17, %v2435_v19  ;;  %v2535_v52 = vsub.f32 %v4312_v1, %v2435_v19  ;;  %v2539_v37 = vsub.f32 %v4313_v14, %v2435_v19  ;;  %v4317_v27 = vld [vmem:[#allocation15_spill] sm:$0xff] }
 0x18d   :  { %4306 = vst [vmem:[#allocation2_spill] sm:$0xff] %v2519_v28  ;;  %v2543_v5 = vsub.f32 %v4315_v51, %v2435_v19  ;;  %v2547_v34 = vsub.f32 %v4316_v25, %v2435_v19  ;;  %v2551_v17 = vsub.f32 %v4317_v27, %v2435_v19  ;;  %v2559_v14 = vsub.f32 %v2347_v57, %v2435_v19 }
 0x18e   :  { %4309 = vst [vmem:[#allocation3_spill] sm:$0xff] %v2527_v59  ;;  %4311 = vst [vmem:[#allocation5_spill] sm:$0xff] %v2531_v36  ;;  %v4318_v36 = vld [vmem:[#allocation18_spill] sm:$0xff]  ;;  %v2567_v25 = vsub.f32 %v2185_v43, %v2435_v19  ;;  %v2571_v27 = vsub.f32 %v2193_v47, %v2435_v19  ;;  %v2579_v57 = vsub.f32 %v2189_v45, %v2435_v19 }
 0x18f   :  { %4314 = vst [vmem:[#allocation7_spill] sm:$0xff] %v2539_v37  ;;  %v2555_v1 = vsub.f32 %v4318_v36, %v2435_v19  ;;  %v4319_v37 = vld [vmem:[#allocation17_spill] sm:$0xff]  ;;  %v2575_v36 = vsub.f32 %v2181_v41, %v2435_v19  ;;  %v2587_v43 = vsub.f32 %v2219_v0, %v2435_v19  ;;  %v2591_v47 = vsub.f32 %v2205_v55, %v2435_v19 }
 0x190   :  { %v2563_v51 = vsub.f32 %v4319_v37, %v2435_v19  ;;  %v2583_v37 = vsub.f32 %v2209_v58, %v2435_v19  ;;  %v2595_v41 = vsub.f32 %v2215_v61, %v2435_v19  ;;  %v2599_v45 = vsub.f32 %v2233_v10, %v2435_v19 }
 0x191   :  { %v2603_v58 = vsub.f32 %v2243_v16, %v2435_v19  ;;  %v2607_v0 = vsub.f32 %v2229_v7, %v2435_v19  ;;  %v2611_v55 = vsub.f32 %v2239_v13, %v2435_v19  ;;  %v2615_v61 = vsub.f32 %v2257_v26, %v2435_v19 }
 0x192   :  { %v2619_v10 = vsub.f32 %v2267_v32, %v2435_v19  ;;  %v2623_v16 = vsub.f32 %v2253_v23, %v2435_v19  ;;  %v2627_v7 = vsub.f32 %v2263_v29, %v2435_v19  ;;  %v2631_v13 = vsub.f32 %v2281_v50, %v2435_v19 }
 0x193   :  { %4320 = vst [vmem:[#allocation4_spill] sm:$0xff] %v2603_v58  ;;  %4321 = vst [vmem:[#allocation6_spill] sm:$0xff] %v2607_v0  ;;  %v2635_v26 = vsub.f32 %v2291_v62, %v2435_v19  ;;  %v2639_v32 = vsub.f32 %v2277_v39, %v2435_v19  ;;  %v2643_v23 = vsub.f32 %v2287_v53, %v2435_v19 }
 0x194   :  { %4322 = vst [vmem:[#allocation10_spill] sm:$0xff] %v2611_v55  ;;  %4323 = vst [vmem:[#allocation13_spill] sm:$0xff] %v2615_v61  ;;  %v2647_v29 = vsub.f32 %v2305_v18, %v2435_v19  ;;  %v2651_v50 = vsub.f32 %v2315_v30, %v2435_v19  ;;  %v2655_v62 = vsub.f32 %v2301_v11, %v2435_v19 }
 0x195   :  { %4324 = vst [vmem:[#allocation8_spill] sm:$0xff] %v2619_v10  ;;  %4325 = vst [vmem:[#allocation11_spill] sm:$0xff] %v2623_v16  ;;  %v2659_v39 = vsub.f32 %v2311_v21, %v2435_v19  ;;  %v2663_v53 = vsub.f32 %v2329_v2, %v2435_v19  ;;  %v2683_v2 = vsub.f32 %v2363_v4, %v2435_v19 }
 0x196   :  { %4326 = vst [vmem:[#allocation15_spill] sm:$0xff] %v2627_v7  ;;  %4327 = vst [vmem:[#allocation18_spill] sm:$0xff] %v2631_v13  ;;  %v830_v4 = vmul.f32 %v2451_v49, %v2451_v49  ;;  %v833_v49 = vmul.f32 %v2463_v46, %v2463_v46 }
 0x197   :  { %4328 = vst [vmem:[#allocation17_spill] sm:$0xff] %v2635_v26  ;;  %4329 = vst [vmem:[#allocation23_spill] sm:$0xff] %v2639_v32 }
 0x198   :  { %4330 = vst [vmem:[#allocation24_spill] sm:$0xff] %v2643_v23  ;;  %4331 = vst [vmem:[#allocation25_spill] sm:$0xff] %v2647_v29  ;;  %v4335_v23 = vld [vmem:[#allocation14_spill] sm:$0xff]  ;;  %v4336_v29 = vld [vmem:[#allocation9_spill] sm:$0xff] }
 0x199   :  { %4332 = vst [vmem:[#allocation26_spill] sm:$0xff] %v2651_v50  ;;  %4333 = vst [vmem:[#allocation27_spill] sm:$0xff] %v2655_v62  ;;  %v2667_v18 = vsub.f32 %v4335_v23, %v2435_v19  ;;  %v2671_v30 = vsub.f32 %v4336_v29, %v2435_v19  ;;  %v4337_v50 = vld [vmem:[#allocation12_spill] sm:$0xff]  ;;  %v2687_v23 = vsub.f32 %v2349_v20, %v2435_v19 }
 0x19a   :  { %4334 = vst [vmem:[#allocation28_spill] sm:$0xff] %v2659_v39  ;;  %v2675_v11 = vsub.f32 %v4337_v50, %v2435_v19  ;;  %v4339_v62 = vld [vmem:[#allocation16_spill] sm:$0xff]  ;;  %4341 = vst [vmem:[#allocation12_spill] sm:$0xff] %v2683_v2  ;;  %v2691_v29 = vsub.f32 %v2359_v33, %v2435_v19  ;;  %v827_v50 = vmul.f32 %v2439_v38, %v2439_v38 }
 0x19b   :  { %v2679_v21 = vsub.f32 %v4339_v62, %v2435_v19  ;;  %4342 = vst [vmem:[#allocation16_spill] sm:$0xff] %v2687_v23  ;;  %v829_v62 = vmul.f32 %v2447_v3, %v2447_v3  ;;  %v831_v33 = vmul.f32 %v2455_v9, %v2455_v9 }
 0x19c   :  { %4338 = vst [vmem:[#allocation14_spill] sm:$0xff] %v2675_v11  ;;  %4343 = vst [vmem:[#allocation29_spill] sm:$0xff] %v2691_v29  ;;  %v828_v11 = vmul.f32 %v2443_v35, %v2443_v35  ;;  %v891_v2 = vsel %vm627_vm0, %v827_v50, 0.0  ;;  %v832_v35 = vmul.f32 %v2459_v42, %v2459_v42  ;;  %v896_v29 = vsel %vm627_vm0, %v830_v4, 0.0 }
 0x19d   :  { %4340 = vst [vmem:[#allocation9_spill] sm:$0xff] %v2679_v21  ;;  %v894_v19 = vsel %vm627_vm0, %v829_v62, 0.0  ;;  %v898_v50 = vsel %vm627_vm0, %v831_v33, 0.0  ;;  %v902_v62 = vsel %vm627_vm0, %v833_v49, 0.0  ;;  %v839_v49 = vmul.f32 %v2487_v60, %v2487_v60 }
 0x19e   :  { %v892_v20 = vsel %vm627_vm0, %v828_v11, 0.0  ;;  %v834_v11 = vmul.f32 %v2467_v40, %v2467_v40 }
 0x19f   :  { %v893_v23 = vadd.f32 %v892_v20, %v891_v2  ;;  %v900_v2 = vsel %vm627_vm0, %v832_v35, 0.0  ;;  %v838_v35 = vmul.f32 %v2483_v54, %v2483_v54 }
 0x1a1   :  { %v895_v38 = vadd.f32 %v894_v19, %v893_v23  ;;  %v835_v23 = vmul.f32 %v2471_v44, %v2471_v44 }
 0x1a3   :  { %v897_v3 = vadd.f32 %v896_v29, %v895_v38  ;;  %v836_v38 = vmul.f32 %v2475_v56, %v2475_v56  ;;  %v904_v29 = vsel %vm627_vm0, %v834_v11, 0.0  ;;  %v906_v33 = vsel %vm627_vm0, %v835_v23, 0.0 }
 0x1a4   :  { %v840_v11 = vmul.f32 %v2491_v8, %v2491_v8  ;;  %v841_v23 = vmul.f32 %v2495_v15, %v2495_v15 }
 0x1a5   :  { %v899_v21 = vadd.f32 %v898_v50, %v897_v3  ;;  %v837_v3 = vmul.f32 %v2479_v63, %v2479_v63 }
 0x1a7   :  { %v901_v20 = vadd.f32 %v900_v2, %v899_v21  ;;  %v908_v21 = vsel %vm627_vm0, %v836_v38, 0.0  ;;  %v842_v38 = vmul.f32 %v2499_v6, %v2499_v6 }
 0x1a9   :  { %v903_v19 = vadd.f32 %v902_v62, %v901_v20  ;;  %v910_v20 = vsel %vm627_vm0, %v837_v3, 0.0  ;;  %v843_v3 = vmul.f32 %v2503_v12, %v2503_v12 }
 0x1ab   :  { %v905_v4 = vadd.f32 %v904_v29, %v903_v19  ;;  %v912_v19 = vsel %vm627_vm0, %v838_v35, 0.0  ;;  %v844_v35 = vmul.f32 %v2507_v24, %v2507_v24 }
 0x1ad   :  { %v907_v50 = vadd.f32 %v906_v33, %v905_v4  ;;  %v914_v4 = vsel %vm627_vm0, %v839_v49, 0.0  ;;  %v845_v49 = vmul.f32 %v2511_v31, %v2511_v31 }
 0x1af   :  { %v909_v2 = vadd.f32 %v908_v21, %v907_v50  ;;  %v916_v50 = vsel %vm627_vm0, %v840_v11, 0.0  ;;  %v846_v11 = vmul.f32 %v2515_v22, %v2515_v22 }
 0x1b1   :  { %v911_v62 = vadd.f32 %v910_v20, %v909_v2  ;;  %v918_v2 = vsel %vm627_vm0, %v841_v23, 0.0  ;;  %v847_v23 = vmul.f32 %v2519_v28, %v2519_v28 }
 0x1b3   :  { %v913_v29 = vadd.f32 %v912_v19, %v911_v62  ;;  %v920_v62 = vsel %vm627_vm0, %v842_v38, 0.0  ;;  %v848_v38 = vmul.f32 %v2523_v48, %v2523_v48 }
 0x1b5   :  { %v915_v33 = vadd.f32 %v914_v4, %v913_v29  ;;  %v922_v29 = vsel %vm627_vm0, %v843_v3, 0.0  ;;  %v849_v3 = vmul.f32 %v2527_v59, %v2527_v59 }
 0x1b7   :  { %v917_v21 = vadd.f32 %v916_v50, %v915_v33  ;;  %v924_v33 = vsel %vm627_vm0, %v844_v35, 0.0  ;;  %v4344_v35 = vld [vmem:[#allocation5_spill] sm:$0xff] }
 0x1b9   :  { %v919_v20 = vadd.f32 %v918_v2, %v917_v21  ;;  %v926_v21 = vsel %vm627_vm0, %v845_v49, 0.0  ;;  %v851_v49 = vmul.f32 %v2535_v52, %v2535_v52 }
 0x1bb   :  { %v921_v19 = vadd.f32 %v920_v62, %v919_v20  ;;  %v928_v20 = vsel %vm627_vm0, %v846_v11, 0.0  ;;  %v4345_v11 = vld [vmem:[#allocation7_spill] sm:$0xff] }
 0x1bd   :  { %v923_v4 = vadd.f32 %v922_v29, %v921_v19  ;;  %v930_v19 = vsel %vm627_vm0, %v847_v23, 0.0  ;;  %v853_v23 = vmul.f32 %v2543_v5, %v2543_v5 }
 0x1bf   :  { %v925_v50 = vadd.f32 %v924_v33, %v923_v4  ;;  %v850_v4 = vmul.f32 %v4344_v35, %v4344_v35  ;;  %v932_v33 = vsel %vm627_vm0, %v848_v38, 0.0  ;;  %v854_v38 = vmul.f32 %v2547_v34, %v2547_v34 }
 0x1c1   :  { %v927_v2 = vadd.f32 %v926_v21, %v925_v50  ;;  %v934_v50 = vsel %vm627_vm0, %v849_v3, 0.0  ;;  %v942_v3 = vsel %vm627_vm0, %v853_v23, 0.0  ;;  %v859_v23 = vmul.f32 %v2567_v25, %v2567_v25 }
 0x1c3   :  { %v929_v62 = vadd.f32 %v928_v20, %v927_v2  ;;  %v852_v2 = vmul.f32 %v4345_v11, %v4345_v11  ;;  %v936_v20 = vsel %vm627_vm0, %v850_v4, 0.0  ;;  %v856_v4 = vmul.f32 %v2555_v1, %v2555_v1 }
 0x1c5   :  { %v931_v29 = vadd.f32 %v930_v19, %v929_v62  ;;  %v938_v62 = vsel %vm627_vm0, %v851_v49, 0.0 }
 0x1c7   :  { %v933_v28 = vadd.f32 %v932_v33, %v931_v29  ;;  %v940_v29 = vsel %vm627_vm0, %v852_v2, 0.0  ;;  %v858_v2 = vmul.f32 %v2563_v51, %v2563_v51 }
 0x1c9   :  { %v935_v21 = vadd.f32 %v934_v50, %v933_v28  ;;  %v855_v28 = vmul.f32 %v2551_v17, %v2551_v17 }
 0x1cb   :  { %v937_v59 = vadd.f32 %v936_v20, %v935_v21  ;;  %v944_v21 = vsel %vm627_vm0, %v854_v38, 0.0  ;;  %v946_v49 = vsel %vm627_vm0, %v855_v28, 0.0  ;;  %v860_v38 = vmul.f32 %v2571_v27, %v2571_v27 }
 0x1cc   :  { %v861_v28 = vmul.f32 %v2575_v36, %v2575_v36 }
 0x1cd   :  { %v939_v19 = vadd.f32 %v938_v62, %v937_v59  ;;  %v857_v59 = vmul.f32 %v2559_v14, %v2559_v14 }
 0x1cf   :  { %v941_v33 = vadd.f32 %v940_v29, %v939_v19  ;;  %v948_v19 = vsel %vm627_vm0, %v856_v4, 0.0  ;;  %v862_v4 = vmul.f32 %v2579_v57, %v2579_v57 }
 0x1d1   :  { %v943_v50 = vadd.f32 %v942_v3, %v941_v33  ;;  %v950_v33 = vsel %vm627_vm0, %v857_v59, 0.0  ;;  %v863_v59 = vmul.f32 %v2583_v37, %v2583_v37 }
 0x1d3   :  { %v945_v20 = vadd.f32 %v944_v21, %v943_v50  ;;  %v952_v50 = vsel %vm627_vm0, %v858_v2, 0.0  ;;  %v864_v2 = vmul.f32 %v2587_v43, %v2587_v43 }
 0x1d5   :  { %v947_v62 = vadd.f32 %v946_v49, %v945_v20  ;;  %v954_v20 = vsel %vm627_vm0, %v859_v23, 0.0  ;;  %v865_v23 = vmul.f32 %v2591_v47, %v2591_v47 }
 0x1d7   :  { %v949_v29 = vadd.f32 %v948_v19, %v947_v62  ;;  %v956_v62 = vsel %vm627_vm0, %v860_v38, 0.0  ;;  %v866_v38 = vmul.f32 %v2595_v41, %v2595_v41 }
 0x1d9   :  { %v951_v3 = vadd.f32 %v950_v33, %v949_v29  ;;  %v958_v29 = vsel %vm627_vm0, %v861_v28, 0.0  ;;  %v867_v28 = vmul.f32 %v2599_v45, %v2599_v45 }
 0x1db   :  { %v953_v21 = vadd.f32 %v952_v50, %v951_v3  ;;  %v960_v3 = vsel %vm627_vm0, %v862_v4, 0.0  ;;  %v868_v4 = vmul.f32 %v2603_v58, %v2603_v58 }
 0x1dd   :  { %v955_v49 = vadd.f32 %v954_v20, %v953_v21  ;;  %v962_v21 = vsel %vm627_vm0, %v863_v59, 0.0  ;;  %v869_v59 = vmul.f32 %v2607_v0, %v2607_v0 }
 0x1df   :  { %v957_v19 = vadd.f32 %v956_v62, %v955_v49  ;;  %v964_v49 = vsel %vm627_vm0, %v864_v2, 0.0  ;;  %v870_v2 = vmul.f32 %v2611_v55, %v2611_v55 }
 0x1e1   :  { %v959_v33 = vadd.f32 %v958_v29, %v957_v19  ;;  %v966_v19 = vsel %vm627_vm0, %v865_v23, 0.0  ;;  %v871_v23 = vmul.f32 %v2615_v61, %v2615_v61 }
 0x1e3   :  { %v961_v50 = vadd.f32 %v960_v3, %v959_v33  ;;  %v968_v33 = vsel %vm627_vm0, %v866_v38, 0.0  ;;  %v872_v38 = vmul.f32 %v2619_v10, %v2619_v10 }
 0x1e5   :  { %v963_v20 = vadd.f32 %v962_v21, %v961_v50  ;;  %v970_v50 = vsel %vm627_vm0, %v867_v28, 0.0  ;;  %v873_v28 = vmul.f32 %v2623_v16, %v2623_v16 }
 0x1e7   :  { %v965_v62 = vadd.f32 %v964_v49, %v963_v20  ;;  %v972_v20 = vsel %vm627_vm0, %v868_v4, 0.0  ;;  %v874_v4 = vmul.f32 %v2627_v7, %v2627_v7 }
 0x1e9   :  { %v967_v29 = vadd.f32 %v966_v19, %v965_v62  ;;  %v974_v62 = vsel %vm627_vm0, %v869_v59, 0.0  ;;  %v875_v59 = vmul.f32 %v2631_v13, %v2631_v13 }
 0x1eb   :  { %v969_v3 = vadd.f32 %v968_v33, %v967_v29  ;;  %v976_v29 = vsel %vm627_vm0, %v870_v2, 0.0  ;;  %v876_v2 = vmul.f32 %v2635_v26, %v2635_v26 }
 0x1ed   :  { %v971_v21 = vadd.f32 %v970_v50, %v969_v3  ;;  %v978_v3 = vsel %vm627_vm0, %v871_v23, 0.0  ;;  %v877_v23 = vmul.f32 %v2639_v32, %v2639_v32 }
 0x1ef   :  { %v973_v49 = vadd.f32 %v972_v20, %v971_v21  ;;  %v980_v21 = vsel %vm627_vm0, %v872_v38, 0.0  ;;  %v4346_v38 = vld [vmem:[#allocation24_spill] sm:$0xff] }
 0x1f1   :  { %v975_v19 = vadd.f32 %v974_v62, %v973_v49  ;;  %v982_v49 = vsel %vm627_vm0, %v873_v28, 0.0  ;;  %v4347_v28 = vld [vmem:[#allocation25_spill] sm:$0xff] }
 0x1f3   :  { %v977_v33 = vadd.f32 %v976_v29, %v975_v19  ;;  %v984_v19 = vsel %vm627_vm0, %v874_v4, 0.0  ;;  %v4348_v4 = vld [vmem:[#allocation26_spill] sm:$0xff] }
 0x1f5   :  { %v979_v50 = vadd.f32 %v978_v3, %v977_v33  ;;  %v986_v33 = vsel %vm627_vm0, %v875_v59, 0.0  ;;  %v4349_v59 = vld [vmem:[#allocation27_spill] sm:$0xff] }
 0x1f7   :  { %v981_v20 = vadd.f32 %v980_v21, %v979_v50  ;;  %v878_v50 = vmul.f32 %v4346_v38, %v4346_v38  ;;  %v988_v21 = vsel %vm627_vm0, %v876_v2, 0.0  ;;  %v882_v2 = vmul.f32 %v2659_v39, %v2659_v39 }
 0x1f9   :  { %v983_v62 = vadd.f32 %v982_v49, %v981_v20  ;;  %v879_v20 = vmul.f32 %v4347_v28, %v4347_v28  ;;  %v990_v49 = vsel %vm627_vm0, %v877_v23, 0.0 }
 0x1fb   :  { %v985_v29 = vadd.f32 %v984_v19, %v983_v62  ;;  %v880_v62 = vmul.f32 %v4348_v4, %v4348_v4  ;;  %v992_v19 = vsel %vm627_vm0, %v878_v50, 0.0  ;;  %v1000_v50 = vsel %vm627_vm0, %v882_v2, 0.0  ;;  %v4352_v2 = vld [vmem:[#allocation12_spill] sm:$0xff] }
 0x1fd   :  { %v987_v3 = vadd.f32 %v986_v33, %v985_v29  ;;  %v881_v29 = vmul.f32 %v4349_v59, %v4349_v59  ;;  %v994_v33 = vsel %vm627_vm0, %v879_v20, 0.0 }
 0x1ff   :  { %v989_v13 = vadd.f32 %v988_v21, %v987_v3  ;;  %v996_v3 = vsel %vm627_vm0, %v880_v62, 0.0  ;;  %v998_v23 = vsel %vm627_vm0, %v881_v29, 0.0  ;;  %v4350_v62 = vld [vmem:[#allocation14_spill] sm:$0xff]  ;;  %v4351_v29 = vld [vmem:[#allocation9_spill] sm:$0xff] }
 0x201   :  { %v991_v26 = vadd.f32 %v990_v49, %v989_v13  ;;  %v883_v13 = vmul.f32 %v2663_v53, %v2663_v53 }
 0x203   :  { %v993_v32 = vadd.f32 %v992_v19, %v991_v26  ;;  %v884_v26 = vmul.f32 %v2667_v18, %v2667_v18  ;;  %v1002_v20 = vsel %vm627_vm0, %v883_v13, 0.0  ;;  %v4353_v13 = vld [vmem:[#allocation16_spill] sm:$0xff] }
 0x205   :  { %v995_v38 = vadd.f32 %v994_v33, %v993_v32  ;;  %v885_v32 = vmul.f32 %v2671_v30, %v2671_v30 }
 0x207   :  { %v997_v21 = vadd.f32 %v996_v3, %v995_v38  ;;  %v886_v38 = vmul.f32 %v4350_v62, %v4350_v62  ;;  %v1004_v3 = vsel %vm627_vm0, %v884_v26, 0.0  ;;  %v4354_v26 = vld [vmem:[#allocation29_spill] sm:$0xff] }
 0x209   :  { %v999_v49 = vadd.f32 %v998_v23, %v997_v21  ;;  %v887_v21 = vmul.f32 %v4351_v29, %v4351_v29  ;;  %v1006_v23 = vsel %vm627_vm0, %v885_v32, 0.0 }
 0x20b   :  { %v1001_v19 = vadd.f32 %v1000_v50, %v999_v49  ;;  %v888_v49 = vmul.f32 %v4352_v2, %v4352_v2  ;;  %v1008_v50 = vsel %vm627_vm0, %v886_v38, 0.0 }
 0x20d   :  { %v1003_v33 = vadd.f32 %v1002_v20, %v1001_v19  ;;  %v889_v19 = vmul.f32 %v4353_v13, %v4353_v13  ;;  %v1010_v20 = vsel %vm627_vm0, %v887_v21, 0.0 }
 0x20f   :  { %v1005_v39 = vadd.f32 %v1004_v3, %v1003_v33  ;;  %v890_v33 = vmul.f32 %v4354_v26, %v4354_v26  ;;  %v1012_v3 = vsel %vm627_vm0, %v888_v49, 0.0 }
 0x211   :  { %v1007_v59 = vadd.f32 %v1006_v23, %v1005_v39  ;;  %v1014_v39 = vsel %vm627_vm0, %v889_v19, 0.0  ;;  %v1016_v23 = vsel %vm627_vm0, %v890_v33, 0.0  ;;  %v4364_v33 = vld [vmem:[#allocation20_spill] sm:$0xff] }
 0x213   :  { %v1009_v4 = vadd.f32 %v1008_v50, %v1007_v59 }
 0x215   :  { %v1011_v28 = vadd.f32 %v1010_v20, %v1009_v4  ;;  %v1030_v20 = vlaneseq }
 0x217   :  { %v1013_v7 = vadd.f32 %v1012_v3, %v1011_v28  ;;  %v1031_v0 = vshrl.u32 %v1030_v20, 7  ;;  %v1025_v28 = vld [vmem:[%s4202_s2] sm:$0x1]  ;;  %v4368_v20 = vld [vmem:[#allocation3_spill] sm:$0xff] }
 0x219   :  { %v1015_v32 = vadd.f32 %v1014_v39, %v1013_v7  ;;  %v1032_v49 = vsub.s32 0, %v1031_v0 }
 0x21b   :  { %v1017_v16 = vadd.f32 %v1016_v23, %v1015_v32  ;;  %v4366_v32 = vld [vmem:[#allocation22_spill] sm:$0xff] }
 0x21d   :  { %v1018_v38 = vrot.slane %v1017_v16, 4 }
 0x21f   :  { %v1019_v59 = vadd.f32 %v1018_v38, %v1017_v16 }
 0x221   :  { %v1020_v50 = vrot.slane %v1019_v59, 2 }
 0x223   :  { %v1021_v10 = vadd.f32 %v1020_v50, %v1019_v59 }
 0x225   :  { %v1022_v61 = vrot.slane %v1021_v10, 1 }
 0x227   :  { %v1023_v55 = vadd.f32 %v1022_v61, %v1021_v10 }
 0x229   :  { %v1024_v21 = vmul.f32 0.001953125, %v1023_v55 }
 0x22b   :  { %v1026_v4 = vadd.f32 1e-05, %v1024_v21 }
 0x22d   :  { %2032 = vrsqrt.f32 %v1026_v4  ;;  %v4367_v4 = vld [vmem:[#allocation2_spill] sm:$0xff] }
 0x237   :  { %v2033_v58 = vpop.eup %2032 }
 0x238   :  { %v1028_v7 = vmul.f32 %v2033_v58, %v1025_v28 }
 0x23a   :  { %v2888_v19 = vrot.slane %v1028_v7, %v1032_v49  ;;  %v4369_v49 = vld [vmem:[#allocation4_spill] sm:$0xff] }
 0x23c   :  { %v2892_v16 = vmul.f32 %v2888_v19, %v2663_v53  ;;  %v2896_v55 = vmul.f32 %v2888_v19, %v2667_v18  ;;  %v2900_v61 = vmul.f32 %v2888_v19, %v2671_v30  ;;  %v2904_v10 = vmul.f32 %v2888_v19, %v4350_v62  ;;  %v4363_v30 = vld [vmem:[#allocation19_spill] sm:$0xff] }
 0x23d   :  { %v2908_v58 = vmul.f32 %v2888_v19, %v4351_v29  ;;  %v2912_v0 = vmul.f32 %v2888_v19, %v4352_v2  ;;  %v2916_v53 = vmul.f32 %v2888_v19, %v4353_v13  ;;  %v2920_v18 = vmul.f32 %v2888_v19, %v4354_v26  ;;  %v4365_v29 = vld [vmem:[#allocation21_spill] sm:$0xff] }
 0x23e   :  { %4355 = vst [vmem:[#allocation5_spill] sm:$0xff] %v2892_v16  ;;  %4356 = vst [vmem:[#allocation7_spill] sm:$0xff] %v2896_v55  ;;  %v1035_v62 = vmul.f32 %v2888_v19, %v4363_v30  ;;  %v1036_v3 = vmul.f32 %v2888_v19, %v4364_v33  ;;  %v1037_v39 = vmul.f32 %v2888_v19, %v4365_v29  ;;  %v4370_v30 = vld [vmem:[#allocation6_spill] sm:$0xff]  ;;  %v4372_v29 = vld [vmem:[#allocation13_spill] sm:$0xff] }
 0x23f   :  { %4357 = vst [vmem:[#allocation14_spill] sm:$0xff] %v2900_v61  ;;  %4358 = vst [vmem:[#allocation9_spill] sm:$0xff] %v2904_v10  ;;  %v1038_v2 = vmul.f32 %v2888_v19, %v4366_v32  ;;  %v1039_v13 = vmul.f32 %v2888_v19, %v2455_v9  ;;  %v1040_v23 = vmul.f32 %v2888_v19, %v2459_v42  ;;  %v4371_v33 = vld [vmem:[#allocation10_spill] sm:$0xff]  ;;  %v4373_v32 = vld [vmem:[#allocation8_spill] sm:$0xff] }
 0x240   :  { %4359 = vst [vmem:[#allocation12_spill] sm:$0xff] %v2908_v58  ;;  %4360 = vst [vmem:[#allocation16_spill] sm:$0xff] %v2912_v0  ;;  %v1041_v26 = vmul.f32 %v2888_v19, %v2463_v46  ;;  %v1042_v38 = vmul.f32 %v2888_v19, %v2467_v40  ;;  %v1043_v59 = vmul.f32 %v2888_v19, %v2471_v44  ;;  %v4380_v0 = vld [vmem:[#allocation24_spill] sm:$0xff]  ;;  %v4381_v58 = vld [vmem:[#allocation25_spill] sm:$0xff] }
 0x241   :  { %4361 = vst [vmem:[#allocation29_spill] sm:$0xff] %v2916_v53  ;;  %4362 = vst [vmem:[#allocation30_spill] sm:$0xff] %v2920_v18  ;;  %v1044_v50 = vmul.f32 %v2888_v19, %v2475_v56  ;;  %v1045_v21 = vmul.f32 %v2888_v19, %v2479_v63  ;;  %v1046_v9 = vmul.f32 %v2888_v19, %v2483_v54  ;;  %v4378_v18 = vld [vmem:[#allocation17_spill] sm:$0xff]  ;;  %v4379_v53 = vld [vmem:[#allocation23_spill] sm:$0xff] }
 0x242   :  { %v1047_v42 = vmul.f32 %v2888_v19, %v2487_v60  ;;  %v1048_v46 = vmul.f32 %v2888_v19, %v2491_v8  ;;  %v1049_v40 = vmul.f32 %v2888_v19, %v2495_v15  ;;  %v1050_v44 = vmul.f32 %v2888_v19, %v2499_v6  ;;  %v4382_v61 = vld [vmem:[#allocation26_spill] sm:$0xff]  ;;  %v4383_v16 = vld [vmem:[#allocation27_spill] sm:$0xff] }
 0x243   :  { %v1051_v56 = vmul.f32 %v2888_v19, %v2503_v12  ;;  %v1052_v63 = vmul.f32 %v2888_v19, %v2507_v24  ;;  %v1053_v54 = vmul.f32 %v2888_v19, %v2511_v31  ;;  %v1054_v60 = vmul.f32 %v2888_v19, %v2515_v22 }
 0x244   :  { %v1055_v8 = vmul.f32 %v2888_v19, %v4367_v4  ;;  %v1056_v15 = vmul.f32 %v2888_v19, %v2523_v48  ;;  %v1057_v6 = vmul.f32 %v2888_v19, %v4368_v20  ;;  %v1058_v12 = vmul.f32 %v2888_v19, %v4344_v35  ;;  %v4374_v4 = vld [vmem:[#allocation11_spill] sm:$0xff] }
 0x245   :  { %v1059_v24 = vmul.f32 %v2888_v19, %v2535_v52  ;;  %v1060_v31 = vmul.f32 %v2888_v19, %v4345_v11  ;;  %v1061_v22 = vmul.f32 %v2888_v19, %v2543_v5  ;;  %v1062_v28 = vmul.f32 %v2888_v19, %v2547_v34  ;;  %v4376_v20 = vld [vmem:[#allocation15_spill] sm:$0xff] }
 0x246   :  { %v1063_v48 = vmul.f32 %v2888_v19, %v2551_v17  ;;  %v1064_v7 = vmul.f32 %v2888_v19, %v2555_v1  ;;  %v1065_v35 = vmul.f32 %v2888_v19, %v2559_v14  ;;  %v1066_v52 = vmul.f32 %v2888_v19, %v2563_v51 }
 0x247   :  { %v1067_v11 = vmul.f32 %v2888_v19, %v2567_v25  ;;  %v1068_v5 = vmul.f32 %v2888_v19, %v2571_v27  ;;  %v1069_v34 = vmul.f32 %v2888_v19, %v2575_v36  ;;  %v1070_v17 = vmul.f32 %v2888_v19, %v2579_v57 }
 0x248   :  { %v1071_v1 = vmul.f32 %v2888_v19, %v2583_v37  ;;  %v1072_v14 = vmul.f32 %v2888_v19, %v2587_v43  ;;  %v1073_v51 = vmul.f32 %v2888_v19, %v2591_v47  ;;  %v1074_v25 = vmul.f32 %v2888_v19, %v2595_v41 }
 0x249   :  { %v1075_v27 = vmul.f32 %v2888_v19, %v2599_v45  ;;  %v1076_v36 = vmul.f32 %v2888_v19, %v4369_v49  ;;  %v1077_v57 = vmul.f32 %v2888_v19, %v4370_v30  ;;  %v1078_v37 = vmul.f32 %v2888_v19, %v4371_v33  ;;  %v3019_v45 = vld [vmem:[%s4203_s3] ss:$0 sm:$0xff] }
 0x24a   :  { %v1079_v43 = vmul.f32 %v2888_v19, %v4372_v29  ;;  %v1080_v47 = vmul.f32 %v2888_v19, %v4373_v32  ;;  %v1081_v41 = vmul.f32 %v2888_v19, %v4374_v4  ;;  %4375 = vst [vmem:[#allocation19_spill] sm:$0xff] %v3019_v45  ;;  %v1082_v49 = vmul.f32 %v2888_v19, %v4376_v20  ;;  %v4377_v30 = vld [vmem:[#allocation18_spill] sm:$0xff]  ;;  %v4384_v45 = vld [vmem:[#allocation28_spill] sm:$0xff] }
 0x24b   :  { %v1083_v33 = vmul.f32 %v2888_v19, %v4377_v30  ;;  %v1084_v29 = vmul.f32 %v2888_v19, %v4378_v18  ;;  %v1085_v32 = vmul.f32 %v2888_v19, %v4379_v53  ;;  %v1086_v4 = vmul.f32 %v2888_v19, %v4380_v0 }
 0x24c   :  { %v1087_v10 = vmul.f32 %v2888_v19, %v4381_v58  ;;  %v1088_v55 = vmul.f32 %v2888_v19, %v4382_v61  ;;  %v1089_v20 = vmul.f32 %v2888_v19, %v4383_v16  ;;  %v1090_v30 = vmul.f32 %v2888_v19, %v4384_v45 }
 0x251   :  { %v4385_v18 = vld [vmem:[#allocation19_spill] sm:$0xff] }
 0x252   :  { %v3040_v53 = vadd.f32 %v4385_v18, %v1035_v62  ;;  %v3043_v0 = vadd.f32 %v4385_v18, %v1036_v3  ;;  %v3046_v58 = vadd.f32 %v4385_v18, %v1037_v39  ;;  %v3049_v61 = vadd.f32 %v4385_v18, %v1038_v2 }
 0x253   :  { %v3052_v16 = vadd.f32 %v4385_v18, %v1039_v13  ;;  %v3055_v19 = vadd.f32 %v4385_v18, %v1040_v23  ;;  %v3058_v45 = vadd.f32 %v4385_v18, %v1041_v26  ;;  %v3061_v62 = vadd.f32 %v4385_v18, %v1042_v38 }
 0x254   :  { %v3064_v3 = vadd.f32 %v4385_v18, %v1043_v59  ;;  %v3067_v39 = vadd.f32 %v4385_v18, %v1044_v50  ;;  %v3070_v2 = vadd.f32 %v4385_v18, %v1045_v21  ;;  %v3073_v13 = vadd.f32 %v4385_v18, %v1046_v9 }
 0x255   :  { %v3076_v23 = vadd.f32 %v4385_v18, %v1047_v42  ;;  %v3079_v26 = vadd.f32 %v4385_v18, %v1048_v46  ;;  %v3082_v38 = vadd.f32 %v4385_v18, %v1049_v40  ;;  %v3085_v59 = vadd.f32 %v4385_v18, %v1050_v44 }
 0x256   :  { %v3088_v50 = vadd.f32 %v4385_v18, %v1051_v56  ;;  %v3091_v21 = vadd.f32 %v4385_v18, %v1052_v63  ;;  %v3094_v9 = vadd.f32 %v4385_v18, %v1053_v54  ;;  %v3097_v42 = vadd.f32 %v4385_v18, %v1054_v60 }
 0x257   :  { %v3100_v46 = vadd.f32 %v4385_v18, %v1055_v8  ;;  %v3103_v40 = vadd.f32 %v4385_v18, %v1056_v15  ;;  %v3106_v44 = vadd.f32 %v4385_v18, %v1057_v6  ;;  %v3109_v56 = vadd.f32 %v4385_v18, %v1058_v12 }
 0x258   :  { %v3112_v63 = vadd.f32 %v4385_v18, %v1059_v24  ;;  %v3115_v54 = vadd.f32 %v4385_v18, %v1060_v31  ;;  %v3118_v60 = vadd.f32 %v4385_v18, %v1061_v22  ;;  %v3121_v8 = vadd.f32 %v4385_v18, %v1062_v28 }
 0x259   :  { %v3124_v15 = vadd.f32 %v4385_v18, %v1063_v48  ;;  %v3127_v6 = vadd.f32 %v4385_v18, %v1064_v7  ;;  %v3130_v12 = vadd.f32 %v4385_v18, %v1065_v35  ;;  %v3133_v24 = vadd.f32 %v4385_v18, %v1066_v52 }
 0x25a   :  { %v3136_v31 = vadd.f32 %v4385_v18, %v1067_v11  ;;  %v3139_v22 = vadd.f32 %v4385_v18, %v1068_v5  ;;  %v3142_v28 = vadd.f32 %v4385_v18, %v1069_v34  ;;  %v3145_v48 = vadd.f32 %v4385_v18, %v1070_v17 }
 0x25b   :  { %v3148_v7 = vadd.f32 %v4385_v18, %v1071_v1  ;;  %v3151_v35 = vadd.f32 %v4385_v18, %v1072_v14  ;;  %v3154_v52 = vadd.f32 %v4385_v18, %v1073_v51  ;;  %v3157_v11 = vadd.f32 %v4385_v18, %v1074_v25 }
 0x25c   :  { %v3160_v5 = vadd.f32 %v4385_v18, %v1075_v27  ;;  %v3163_v34 = vadd.f32 %v4385_v18, %v1076_v36  ;;  %v3166_v17 = vadd.f32 %v4385_v18, %v1077_v57  ;;  %v3169_v1 = vadd.f32 %v4385_v18, %v1078_v37 }
 0x25d   :  { %v3172_v14 = vadd.f32 %v4385_v18, %v1079_v43  ;;  %v3175_v51 = vadd.f32 %v4385_v18, %v1080_v47  ;;  %v3178_v25 = vadd.f32 %v4385_v18, %v1081_v41  ;;  %v3181_v27 = vadd.f32 %v4385_v18, %v1082_v49 }
 0x25e   :  { %v3184_v36 = vadd.f32 %v4385_v18, %v1083_v33  ;;  %v3187_v57 = vadd.f32 %v4385_v18, %v1084_v29  ;;  %v3190_v37 = vadd.f32 %v4385_v18, %v1085_v32  ;;  %v3193_v43 = vadd.f32 %v4385_v18, %v1086_v4  ;;  %v4395_v29 = vld [vmem:[#allocation5_spill] sm:$0xff]  ;;  %v4397_v32 = vld [vmem:[#allocation7_spill] sm:$0xff] }
 0x25f   :  { %4386 = vst [vmem:[#allocation20_spill] sm:$0xff] %v3175_v51  ;;  %v3196_v47 = vadd.f32 %v4385_v18, %v1087_v10  ;;  %v3199_v41 = vadd.f32 %v4385_v18, %v1088_v55  ;;  %v3202_v49 = vadd.f32 %v4385_v18, %v1089_v20  ;;  %v3205_v33 = vadd.f32 %v4385_v18, %v1090_v30  ;;  %v4401_v55 = vld [vmem:[#allocation9_spill] sm:$0xff]  ;;  %v4403_v20 = vld [vmem:[#allocation12_spill] sm:$0xff] }
 0x260   :  { %4387 = vst [vmem:[#allocation21_spill] sm:$0xff] %v3184_v36  ;;  %4388 = vst [vmem:[#allocation22_spill] sm:$0xff] %v3187_v57  ;;  %v3209_v57 = vadd.f32 %v4385_v18, %v4395_v29  ;;  %v3213_v4 = vadd.f32 %v4385_v18, %v4397_v32  ;;  %v3225_v30 = vadd.f32 %v4385_v18, %v4403_v20  ;;  %vm1170_vm1 = vcmp.ge.f32.partialorder %v3040_v53, 0.0 }
 0x261   :  { %4389 = vst [vmem:[#allocation2_spill] sm:$0xff] %v3190_v37  ;;  %4390 = vst [vmem:[#allocation3_spill] sm:$0xff] %v3193_v43  ;;  %v4399_v43 = vld [vmem:[#allocation14_spill] sm:$0xff]  ;;  %vm1171_vm2 = vcmp.ge.f32.partialorder %v3043_v0, 0.0  ;;  %vm1172_vm3 = vcmp.ge.f32.partialorder %v3046_v58, 0.0  ;;  %vm1173_vm4 = vcmp.ge.f32.partialorder %v3049_v61, 0.0 }
 0x262   :  { %4391 = vst [vmem:[#allocation4_spill] sm:$0xff] %v3196_v47  ;;  %4392 = vst [vmem:[#allocation6_spill] sm:$0xff] %v3199_v41  ;;  %v3217_v10 = vadd.f32 %v4385_v18, %v4399_v43  ;;  %v3221_v41 = vadd.f32 %v4385_v18, %v4401_v55  ;;  %vm1174_vm5 = vcmp.ge.f32.partialorder %v3052_v16, 0.0  ;;  %vm1175_vm6 = vcmp.ge.f32.partialorder %v3055_v19, 0.0  ;;  %v4407_v43 = vld [vmem:[#allocation29_spill] sm:$0xff] }
 0x263   :  { %4393 = vst [vmem:[#allocation10_spill] sm:$0xff] %v3202_v49  ;;  %4394 = vst [vmem:[#allocation13_spill] sm:$0xff] %v3205_v33  ;;  %v4405_v33 = vld [vmem:[#allocation16_spill] sm:$0xff]  ;;  %vm1176_vm7 = vcmp.ge.f32.partialorder %v3058_v45, 0.0  ;;  %vm1177_vm8 = vcmp.ge.f32.partialorder %v3061_v62, 0.0  ;;  %vm1178_vm9 = vcmp.ge.f32.partialorder %v3064_v3, 0.0 }
 0x264   :  { %4396 = vst [vmem:[#allocation8_spill] sm:$0xff] %v3209_v57  ;;  %4398 = vst [vmem:[#allocation11_spill] sm:$0xff] %v3213_v4  ;;  %v3229_v29 = vadd.f32 %v4385_v18, %v4405_v33  ;;  %v3242_v33 = vadd.f32 %v4385_v18, %v4407_v43  ;;  %vm1179_vm10 = vcmp.ge.f32.partialorder %v3067_v39, 0.0  ;;  %v1234_v32 = vmul.f32 0.2, %v3040_v53 }
 0x265   :  { %4400 = vst [vmem:[#allocation15_spill] sm:$0xff] %v3217_v10  ;;  %4402 = vst [vmem:[#allocation18_spill] sm:$0xff] %v3221_v41  ;;  %v1235_v55 = vmul.f32 0.2, %v3043_v0  ;;  %v1236_v20 = vmul.f32 0.2, %v3046_v58 }
 0x266   :  { %4404 = vst [vmem:[#allocation17_spill] sm:$0xff] %v3225_v30  ;;  %4406 = vst [vmem:[#allocation23_spill] sm:$0xff] %v3229_v29  ;;  %v4409_v29 = vld [vmem:[#allocation30_spill] sm:$0xff]  ;;  %vm1180_vm11 = vcmp.ge.f32.partialorder %v3070_v2, 0.0  ;;  %v1237_v41 = vmul.f32 0.2, %v3049_v61 }
 0x267   :  { %4408 = vst [vmem:[#allocation24_spill] sm:$0xff] %v3242_v33  ;;  %v3250_v30 = vadd.f32 %v4385_v18, %v4409_v29  ;;  %v1238_v10 = vmul.f32 0.2, %v3052_v16  ;;  %v1239_v43 = vmul.f32 0.2, %v3055_v19  ;;  %vm1181_vm12 = vcmp.ge.f32.partialorder %v3073_v13, 0.0 }
 0x268   :  { %v1240_v33 = vmul.f32 0.2, %v3058_v45  ;;  %v1241_v4 = vmul.f32 0.2, %v3061_v62  ;;  %v1242_v57 = vmul.f32 0.2, %v3064_v3  ;;  %v3263_v18 = vsel %vm1170_vm1, %v3040_v53, %v1234_v32 }
 0x269   :  { %4410 = vst [vmem:[#allocation25_spill] sm:$0xff] %v3250_v30  ;;  %4411 = vst [vmem:[#allocation26_spill] sm:$0xff] %v3263_v18  ;;  %vm1182_vm13 = vcmp.ge.f32.partialorder %v3076_v23, 0.0  ;;  %v1243_v29 = vmul.f32 0.2, %v3067_v39  ;;  %v3274_v47 = vsel %vm1171_vm2, %v3043_v0, %v1235_v55  ;;  %vm1183_vm14 = vcmp.ge.f32.partialorder %v3079_v26, 0.0 }
 0x26a   :  { %v1244_v30 = vmul.f32 0.2, %v3070_v2  ;;  %v3269_v49 = vmul.f32 0.2, %v3073_v13  ;;  %4412 = vst [vmem:[#allocation27_spill] sm:$0xff] %v3274_v47  ;;  %v3289_v18 = vsel %vm1172_vm3, %v3046_v58, %v1236_v20  ;;  %vm1184_vm15 = vcmp.ge.f32.partialorder %v3082_v38, 0.0 }
 0x26b   :  { %v3278_v37 = vmul.f32 0.2, %v3076_v23  ;;  %v3281_v53 = vmul.f32 0.2, %v3079_v26  ;;  %v3284_v32 = vmul.f32 0.2, %v3082_v38 }
 0x26c   :  { %4414 = vst [vmem:[#allocation19_spill] sm:$0xff] %v3289_v18  ;;  %v3293_v0 = vmul.f32 0.2, %v3085_v59  ;;  %v3296_v55 = vmul.f32 0.2, %v3088_v50  ;;  %vm1185_vm0 = vcmp.ge.f32.partialorder %v3085_v59, 0.0 }
 0x26d   :  { %4413 = vst [vmem:[#allocation28_spill] sm:$0xff] %v3284_v32  ;;  %v3299_v47 = vmul.f32 0.2, %v3091_v21  ;;  %v3304_v32 = vsel %vm1173_vm4, %v3049_v61, %v1237_v41  ;;  %v3308_v58 = vmul.f32 0.2, %v3094_v9  ;;  %vm1186_vm1 = vcmp.ge.f32.partialorder %v3088_v50, 0.0 }
 0x26e   :  { %4416 = vst [vmem:[#allocation7_spill] sm:$0xff] %v3304_v32  ;;  %v3311_v20 = vmul.f32 0.2, %v3097_v42  ;;  %v3314_v18 = vmul.f32 0.2, %v3100_v46  ;;  %vm1187_vm2 = vcmp.ge.f32.partialorder %v3091_v21, 0.0 }
 0x26f   :  { %4415 = vst [vmem:[#allocation5_spill] sm:$0xff] %v3299_v47  ;;  %v3319_v47 = vsel %vm1174_vm5, %v3052_v16, %v1238_v10  ;;  %v3323_v61 = vmul.f32 0.2, %v3103_v40  ;;  %v3326_v41 = vmul.f32 0.2, %v3106_v44  ;;  %vm1188_vm3 = vcmp.ge.f32.partialorder %v3094_v9, 0.0 }
 0x270   :  { %4417 = vst [vmem:[#allocation14_spill] sm:$0xff] %v3314_v18  ;;  %4418 = vst [vmem:[#allocation9_spill] sm:$0xff] %v3319_v47  ;;  %v3329_v32 = vmul.f32 0.2, %v3109_v56  ;;  %v3334_v18 = vsel %vm1175_vm6, %v3055_v19, %v1239_v43  ;;  %v3338_v16 = vmul.f32 0.2, %v3112_v63 }
 0x271   :  { %4420 = vst [vmem:[#allocation16_spill] sm:$0xff] %v3334_v18  ;;  %v3341_v10 = vmul.f32 0.2, %v3115_v54  ;;  %v3344_v47 = vmul.f32 0.2, %v3118_v60  ;;  %vm1189_vm4 = vcmp.ge.f32.partialorder %v3097_v42, 0.0 }
 0x272   :  { %4419 = vst [vmem:[#allocation12_spill] sm:$0xff] %v3329_v32  ;;  %v3349_v32 = vsel %vm1176_vm7, %v3058_v45, %v1240_v33  ;;  %v3353_v19 = vmul.f32 0.2, %v3121_v8  ;;  %v3356_v43 = vmul.f32 0.2, %v3124_v15  ;;  %vm1192_vm7 = vcmp.ge.f32.partialorder %v3106_v44, 0.0 }
 0x273   :  { %4421 = vst [vmem:[#allocation29_spill] sm:$0xff] %v3344_v47  ;;  %4422 = vst [vmem:[#allocation30_spill] sm:$0xff] %v3349_v32  ;;  %v3359_v18 = vmul.f32 0.2, %v3127_v6  ;;  %v3364_v47 = vsel %vm1177_vm8, %v3061_v62, %v1241_v4  ;;  %v3370_v45 = vmul.f32 0.2, %v3130_v12  ;;  %v3381_v62 = vsel %vm1178_vm9, %v3064_v3, %v1242_v57 }
 0x274   :  { %4423 = vst [vmem:[#allocation31_spill] sm:$0xff] %v3364_v47  ;;  %v3373_v33 = vmul.f32 0.2, %v3133_v24  ;;  %v3376_v32 = vmul.f32 0.2, %v3136_v31  ;;  %4425 = vst [vmem:[#allocation33_spill] sm:$0xff] %v3381_v62  ;;  %v3399_v3 = vsel %vm1179_vm10, %v3067_v39, %v1243_v29  ;;  %v3417_v39 = vsel %vm1180_vm11, %v3070_v2, %v1244_v30 }
 0x275   :  { %v3388_v4 = vmul.f32 0.2, %v3139_v22  ;;  %v3391_v47 = vmul.f32 0.2, %v3142_v28  ;;  %4427 = vst [vmem:[#allocation35_spill] sm:$0xff] %v3399_v3  ;;  %vm1196_vm9 = vcmp.ge.f32.partialorder %v3118_v60, 0.0  ;;  %v3436_v2 = vsel %vm1181_vm12, %v3073_v13, %v3269_v49 }
 0x276   :  { %4424 = vst [vmem:[#allocation32_spill] sm:$0xff] %v3376_v32  ;;  %v3394_v32 = vmul.f32 0.2, %v3145_v48  ;;  %v3406_v57 = vmul.f32 0.2, %v3148_v7  ;;  %4429 = vst [vmem:[#allocation37_spill] sm:$0xff] %v3417_v39  ;;  %v3455_v13 = vsel %vm1182_vm13, %v3076_v23, %v3278_v37  ;;  %v3474_v23 = vsel %vm1183_vm14, %v3079_v26, %v3281_v53 }
 0x277   :  { %v3409_v62 = vmul.f32 0.2, %v3151_v35  ;;  %vm1200_vm10 = vcmp.ge.f32.partialorder %v3130_v12, 0.0  ;;  %v3424_v29 = vmul.f32 0.2, %v3157_v11  ;;  %4431 = vst [vmem:[#allocation39_spill] sm:$0xff] %v3436_v2 }
 0x278   :  { %4426 = vst [vmem:[#allocation34_spill] sm:$0xff] %v3394_v32  ;;  %v3412_v32 = vmul.f32 0.2, %v3154_v52  ;;  %v3427_v3 = vmul.f32 0.2, %v3160_v5  ;;  %vm1204_vm11 = vcmp.ge.f32.partialorder %v3142_v28, 0.0 }
 0x279   :  { %v3443_v30 = vmul.f32 0.2, %v3166_v17  ;;  %v3446_v39 = vmul.f32 0.2, %v3169_v1  ;;  %4434 = vst [vmem:[#allocation42_spill] sm:$0xff] %v3455_v13  ;;  %vm1208_vm12 = vcmp.ge.f32.partialorder %v3154_v52, 0.0 }
 0x27a   :  { %4428 = vst [vmem:[#allocation36_spill] sm:$0xff] %v3412_v32  ;;  %v3430_v32 = vmul.f32 0.2, %v3163_v34  ;;  %v3462_v49 = vmul.f32 0.2, %v3175_v51  ;;  %4438 = vst [vmem:[#allocation46_spill] sm:$0xff] %v3474_v23 }
 0x27b   :  { %4432 = vst [vmem:[#allocation40_spill] sm:$0xff] %v3446_v39  ;;  %v3465_v2 = vmul.f32 0.2, %v3178_v25  ;;  %vm1212_vm13 = vcmp.ge.f32.partialorder %v3166_v17, 0.0  ;;  %v3481_v37 = vmul.f32 0.2, %v3184_v36 }
 0x27c   :  { %4430 = vst [vmem:[#allocation38_spill] sm:$0xff] %v3430_v32  ;;  %v3449_v32 = vmul.f32 0.2, %v3172_v14  ;;  %4435 = vst [vmem:[#allocation43_spill] sm:$0xff] %v3462_v49  ;;  %v4440_v13 = vld [vmem:[#allocation22_spill] sm:$0xff]  ;;  %v4444_v39 = vld [vmem:[#allocation28_spill] sm:$0xff] }
 0x27d   :  { %4436 = vst [vmem:[#allocation44_spill] sm:$0xff] %v3465_v2  ;;  %4439 = vst [vmem:[#allocation47_spill] sm:$0xff] %v3481_v37  ;;  %v3484_v2 = vmul.f32 0.2, %v4440_v13  ;;  %v3493_v26 = vsel %vm1184_vm15, %v3082_v38, %v4444_v39  ;;  %vm1216_vm14 = vcmp.ge.f32.partialorder %v3178_v25, 0.0  ;;  %v4446_v53 = vld [vmem:[#allocation3_spill] sm:$0xff]  ;;  %v3512_v38 = vsel %vm1185_vm0, %v3085_v59, %v3293_v0 }
 0x27e   :  { %4433 = vst [vmem:[#allocation41_spill] sm:$0xff] %v3449_v32  ;;  %v3468_v32 = vmul.f32 0.2, %v3181_v27  ;;  %4445 = vst [vmem:[#allocation28_spill] sm:$0xff] %v3493_v26  ;;  %v3500_v23 = vmul.f32 0.2, %v4446_v53  ;;  %v3525_v59 = vsel %vm1186_vm1, %v3088_v50, %v3296_v55 }
 0x27f   :  { %4441 = vst [vmem:[#allocation48_spill] sm:$0xff] %v3484_v2  ;;  %v4448_v2 = vld [vmem:[#allocation4_spill] sm:$0xff]  ;;  %4452 = vst [vmem:[#allocation53_spill] sm:$0xff] %v3512_v38  ;;  %v4453_v39 = vld [vmem:[#allocation10_spill] sm:$0xff]  ;;  %vm4467_vm8 = vcmp.ge.f32.partialorder %v3100_v46, 0.0 }
 0x280   :  { %4437 = vst [vmem:[#allocation45_spill] sm:$0xff] %v3468_v32  ;;  %v4442_v32 = vld [vmem:[#allocation2_spill] sm:$0xff]  ;;  %4447 = vst [vmem:[#allocation50_spill] sm:$0xff] %v3500_v23  ;;  %v3503_v37 = vmul.f32 0.2, %v4448_v2  ;;  %v4455_v13 = vld [vmem:[#allocation8_spill] sm:$0xff] }
 0x281   :  { %v3487_v49 = vmul.f32 0.2, %v4442_v32  ;;  %vm1220_vm15 = vcmp.ge.f32.partialorder %v4442_v32, 0.0  ;;  %v1288_v26 = vmul.f32 0.2, %v4453_v39  ;;  %4456 = vst [vmem:[#allocation54_spill] sm:$0xff] %v3525_v59 }
 0x282   :  { %4449 = vst [vmem:[#allocation51_spill] sm:$0xff] %v3503_v37  ;;  %v4454_v37 = vld [vmem:[#allocation13_spill] sm:$0xff]  ;;  %vm1224_vm0 = vcmp.ge.f32.partialorder %v4453_v39, 0.0  ;;  %v4457_v0 = vld [vmem:[#allocation11_spill] sm:$0xff]  ;;  %v4459_v53 = vld [vmem:[#allocation18_spill] sm:$0xff] }
 0x283   :  { %4443 = vst [vmem:[#allocation49_spill] sm:$0xff] %v3487_v49  ;;  %v4450_v49 = vld [vmem:[#allocation6_spill] sm:$0xff]  ;;  %v1289_v23 = vmul.f32 0.2, %v4454_v37  ;;  %v1291_v38 = vmul.f32 0.2, %v4457_v0 }
 0x284   :  { %v3506_v51 = vmul.f32 0.2, %v4450_v49  ;;  %v4458_v49 = vld [vmem:[#allocation15_spill] sm:$0xff]  ;;  %v1293_v32 = vmul.f32 0.2, %v4459_v53  ;;  %v4460_v36 = vld [vmem:[#allocation5_spill] sm:$0xff] }
 0x285   :  { %v1292_v2 = vmul.f32 0.2, %v4458_v49  ;;  %v3538_v50 = vsel %vm1187_vm2, %v3091_v21, %v4460_v36  ;;  %vm1228_vm1 = vcmp.ge.f32.partialorder %v4458_v49, 0.0  ;;  %v4462_v55 = vld [vmem:[#allocation17_spill] sm:$0xff]  ;;  %v4463_v59 = vld [vmem:[#allocation23_spill] sm:$0xff]  ;;  %v4464_v37 = vld [vmem:[#allocation24_spill] sm:$0xff]  ;;  %v3551_v21 = vsel %vm1188_vm3, %v3094_v9, %v3308_v58 }
 0x286   :  { %4451 = vst [vmem:[#allocation52_spill] sm:$0xff] %v3506_v51  ;;  %v1290_v51 = vmul.f32 0.2, %v4455_v13  ;;  %4461 = vst [vmem:[#allocation15_spill] sm:$0xff] %v3538_v50  ;;  %vm1230_vm5 = vcmp.ge.f32.partialorder %v4462_v55, 0.0  ;;  %vm1232_vm2 = vcmp.ge.f32.partialorder %v4464_v37, 0.0  ;;  %v3578_v58 = vsel %vm1192_vm7, %v3106_v44, %v3326_v41 }
 0x287   :  { %v1294_v0 = vmul.f32 0.2, %v4462_v55  ;;  %v1295_v13 = vmul.f32 0.2, %v4463_v59  ;;  %v1296_v39 = vmul.f32 0.2, %v4464_v37  ;;  %v3560_v55 = vsel %vm1189_vm4, %v3097_v42, %v3311_v20 }
 0x288   :  { %v4465_v36 = vld [vmem:[#allocation25_spill] sm:$0xff]  ;;  %v4466_v59 = vld [vmem:[#allocation14_spill] sm:$0xff]  ;;  %vm4468_vm3 = vcmp.ge.f32.partialorder %v3103_v40, 0.0  ;;  %v4469_v42 = vld [vmem:[#allocation12_spill] sm:$0xff]  ;;  %vm4470_vm4 = vcmp.ge.f32.partialorder %v3109_v56, 0.0  ;;  %vm4474_vm7 = vcmp.ge.f32.partialorder %v3121_v8, 0.0 }
 0x289   :  { %vm1233_vm6 = vcmp.ge.f32.partialorder %v4465_v36, 0.0  ;;  %v1297_v50 = vmul.f32 0.2, %v4465_v36  ;;  %v3566_v53 = vsel %vm4467_vm8, %v3100_v46, %v4466_v59  ;;  %v3572_v9 = vsel %vm4468_vm3, %v3103_v40, %v3323_v61  ;;  %v4473_v44 = vld [vmem:[#allocation29_spill] sm:$0xff]  ;;  %v4507_v59 = vld [vmem:[#allocation2_spill] sm:$0xff] }
 0x28a   :  { %v3584_v20 = vsel %vm4470_vm4, %v3109_v56, %v4469_v42  ;;  %vm4471_vm8 = vcmp.ge.f32.partialorder %v3112_v63, 0.0  ;;  %vm4472_vm3 = vcmp.ge.f32.partialorder %v3115_v54, 0.0  ;;  %v3602_v61 = vsel %vm1196_vm9, %v3118_v60, %v4473_v44  ;;  %v4509_v44 = vld [vmem:[#allocation3_spill] sm:$0xff] }
 0x28b   :  { %v3590_v46 = vsel %vm4471_vm8, %v3112_v63, %v3338_v16  ;;  %v3596_v40 = vsel %vm4472_vm3, %v3115_v54, %v3341_v10  ;;  %v3608_v56 = vsel %vm4474_vm7, %v3121_v8, %v3353_v19  ;;  %vm4475_vm4 = vcmp.ge.f32.partialorder %v3124_v15, 0.0 }
 0x28c   :  { %v3614_v63 = vsel %vm4475_vm4, %v3124_v15, %v3356_v43  ;;  %vm4476_vm8 = vcmp.ge.f32.partialorder %v3127_v6, 0.0  ;;  %vm1618_vm9 = vcmask 125952   ;;  %v3626_v60 = vsel %vm1200_vm10, %v3130_v12, %v3370_v45  ;;  %v4478_v15 = vld [vmem:[#allocation32_spill] sm:$0xff] }
 0x28d   :  { %v3620_v54 = vsel %vm4476_vm8, %v3127_v6, %v3359_v18  ;;  %vm4477_vm3 = vcmp.ge.f32.partialorder %v3133_v24, 0.0  ;;  %vm4479_vm7 = vcmp.ge.f32.partialorder %v3136_v31, 0.0  ;;  %vm4480_vm4 = vcmp.ge.f32.partialorder %v3139_v22, 0.0  ;;  %v4495_v43 = vld [vmem:[#allocation20_spill] sm:$0xff] }
 0x28e   :  { %v3632_v8 = vsel %vm4477_vm3, %v3133_v24, %v3373_v33  ;;  %v3638_v41 = vsel %vm4479_vm7, %v3136_v31, %v4478_v15  ;;  %v3644_v6 = vsel %vm4480_vm4, %v3139_v22, %v3388_v4  ;;  %v3650_v12 = vsel %vm1204_vm11, %v3142_v28, %v3391_v47  ;;  %v4481_v24 = vld [vmem:[#allocation34_spill] sm:$0xff]  ;;  %v4485_v28 = vld [vmem:[#allocation36_spill] sm:$0xff]  ;;  %v4501_v4 = vld [vmem:[#allocation21_spill] sm:$0xff] }
 0x28f   :  { %vm4482_vm10 = vcmp.ge.f32.partialorder %v3145_v48, 0.0  ;;  %vm4483_vm8 = vcmp.ge.f32.partialorder %v3148_v7, 0.0  ;;  %vm4484_vm3 = vcmp.ge.f32.partialorder %v3151_v35, 0.0  ;;  %v3674_v47 = vsel %vm1208_vm12, %v3154_v52, %v4485_v28  ;;  %v4512_v28 = vld [vmem:[#allocation4_spill] sm:$0xff] }
 0x290   :  { %v3656_v18 = vsel %vm4482_vm10, %v3145_v48, %v4481_v24  ;;  %v3662_v31 = vsel %vm4483_vm8, %v3148_v7, %v3406_v57  ;;  %v3668_v22 = vsel %vm4484_vm3, %v3151_v35, %v3409_v62  ;;  %vm4486_vm11 = vcmp.ge.f32.partialorder %v3157_v11, 0.0  ;;  %v4488_v35 = vld [vmem:[#allocation38_spill] sm:$0xff]  ;;  %v4503_v57 = vld [vmem:[#allocation48_spill] sm:$0xff]  ;;  %v4511_v24 = vld [vmem:[#allocation51_spill] sm:$0xff] }
 0x291   :  { %v3680_v48 = vsel %vm4486_vm11, %v3157_v11, %v3424_v29  ;;  %vm4487_vm7 = vcmp.ge.f32.partialorder %v3160_v5, 0.0  ;;  %vm4489_vm4 = vcmp.ge.f32.partialorder %v3163_v34, 0.0  ;;  %v3698_v52 = vsel %vm1212_vm13, %v3166_v17, %v3443_v30  ;;  %v4490_v11 = vld [vmem:[#allocation40_spill] sm:$0xff]  ;;  %v4504_v29 = vld [vmem:[#allocation22_spill] sm:$0xff] }
 0x292   :  { %v3686_v7 = vsel %vm4487_vm7, %v3160_v5, %v3427_v3  ;;  %v3692_v16 = vsel %vm4489_vm4, %v3163_v34, %v4488_v35  ;;  %vm4491_vm12 = vcmp.ge.f32.partialorder %v3169_v1, 0.0  ;;  %v4492_v5 = vld [vmem:[#allocation41_spill] sm:$0xff]  ;;  %vm4493_vm10 = vcmp.ge.f32.partialorder %v3172_v14, 0.0  ;;  %v4494_v34 = vld [vmem:[#allocation43_spill] sm:$0xff]  ;;  %v4497_v17 = vld [vmem:[#allocation44_spill] sm:$0xff] }
 0x293   :  { %v3704_v10 = vsel %vm4491_vm12, %v3169_v1, %v4490_v11  ;;  %v3710_v19 = vsel %vm4493_vm10, %v3172_v14, %v4492_v5  ;;  %vm4496_vm8 = vcmp.ge.f32.partialorder %v4495_v43, 0.0  ;;  %v3722_v33 = vsel %vm1216_vm14, %v3178_v25, %v4497_v17  ;;  %v4498_v1 = vld [vmem:[#allocation45_spill] sm:$0xff]  ;;  %v4500_v14 = vld [vmem:[#allocation47_spill] sm:$0xff]  ;;  %v4514_v11 = vld [vmem:[#allocation52_spill] sm:$0xff] }
 0x294   :  { %v3716_v45 = vsel %vm4496_vm8, %v4495_v43, %v4494_v34  ;;  %vm4499_vm13 = vcmp.ge.f32.partialorder %v3181_v27, 0.0  ;;  %vm4502_vm3 = vcmp.ge.f32.partialorder %v4501_v4, 0.0  ;;  %vm4505_vm11 = vcmp.ge.f32.partialorder %v4504_v29, 0.0  ;;  %v4506_v25 = vld [vmem:[#allocation49_spill] sm:$0xff]  ;;  %v4515_v5 = vld [vmem:[#allocation6_spill] sm:$0xff] }
 0x295   :  { %v3728_v62 = vsel %vm4499_vm13, %v3181_v27, %v4498_v1  ;;  %v3734_v3 = vsel %vm4502_vm3, %v4501_v4, %v4500_v14  ;;  %v3740_v30 = vsel %vm4505_vm11, %v4504_v29, %v4503_v57  ;;  %v3746_v42 = vsel %vm1220_vm15, %v4507_v59, %v4506_v25  ;;  %v4508_v27 = vld [vmem:[#allocation50_spill] sm:$0xff]  ;;  %v4518_v1 = vld [vmem:[#allocation13_spill] sm:$0xff]  ;;  %v4520_v4 = vld [vmem:[#allocation8_spill] sm:$0xff] }
 0x296   :  { %vm4510_vm14 = vcmp.ge.f32.partialorder %v4509_v44, 0.0  ;;  %vm4513_vm7 = vcmp.ge.f32.partialorder %v4512_v28, 0.0  ;;  %vm4516_vm4 = vcmp.ge.f32.partialorder %v4515_v5, 0.0  ;;  %v4517_v43 = vld [vmem:[#allocation10_spill] sm:$0xff]  ;;  %vm4519_vm15 = vcmp.ge.f32.partialorder %v4518_v1, 0.0  ;;  %v4522_v29 = vld [vmem:[#allocation11_spill] sm:$0xff] }
 0x297   :  { %v3752_v15 = vsel %vm4510_vm14, %v4509_v44, %v4508_v27  ;;  %v3758_v35 = vsel %vm4513_vm7, %v4512_v28, %v4511_v24  ;;  %v3764_v34 = vsel %vm4516_vm4, %v4515_v5, %v4514_v11  ;;  %v3769_v17 = vsel %vm1224_vm0, %v4517_v43, %v1288_v26  ;;  %v4524_v59 = vld [vmem:[#allocation18_spill] sm:$0xff]  ;;  %v4526_v27 = vld [vmem:[#allocation17_spill] sm:$0xff]  ;;  %v4527_v44 = vld [vmem:[#allocation23_spill] sm:$0xff] }
 0x298   :  { %v3774_v14 = vsel %vm4519_vm15, %v4518_v1, %v1289_v23  ;;  %vm4521_vm12 = vcmp.ge.f32.partialorder %v4520_v4, 0.0  ;;  %vm4523_vm10 = vcmp.ge.f32.partialorder %v4522_v29, 0.0  ;;  %v3789_v26 = vsel %vm1228_vm1, %v4458_v49, %v1292_v2  ;;  %v4529_v49 = vld [vmem:[#allocation26_spill] sm:$0xff]  ;;  %v4531_v11 = vld [vmem:[#allocation19_spill] sm:$0xff]  ;;  %v4533_v1 = vld [vmem:[#allocation9_spill] sm:$0xff] }
 0x299   :  { %v3779_v57 = vsel %vm4521_vm12, %v4520_v4, %v1290_v51  ;;  %v3784_v25 = vsel %vm4523_vm10, %v4522_v29, %v1291_v38  ;;  %vm4525_vm0 = vcmp.ge.f32.partialorder %v4524_v59, 0.0  ;;  %v3799_v51 = vsel %vm1230_vm5, %v4526_v27, %v1294_v0  ;;  %v4530_v0 = vld [vmem:[#allocation27_spill] sm:$0xff]  ;;  %v4537_v27 = vld [vmem:[#allocation33_spill] sm:$0xff] }
 0x29a   :  { %v3794_v23 = vsel %vm4525_vm0, %v4524_v59, %v1293_v32  ;;  %vm4528_vm8 = vcmp.ge.f32.partialorder %v4527_v44, 0.0  ;;  %v3809_v2 = vsel %vm1232_vm2, %v4464_v37, %v1296_v39  ;;  %v3814_v32 = vsel %vm1233_vm6, %v4465_v36, %v1297_v50  ;;  %v4532_v5 = vld [vmem:[#allocation7_spill] sm:$0xff]  ;;  %v4534_v39 = vld [vmem:[#allocation16_spill] sm:$0xff]  ;;  %v4535_v50 = vld [vmem:[#allocation30_spill] sm:$0xff] }
 0x29b   :  { %v3804_v38 = vsel %vm4528_vm8, %v4527_v44, %v1295_v13  ;;  %v1792_v24 = vpack.c.bf16 %v4529_v49, %v4529_v49  ;;  %v1793_v28 = vpack.c.bf16 %v4530_v0, %v4530_v0  ;;  %v1794_v13 = vpack.c.bf16 %v4531_v11, %v4531_v11  ;;  %v4536_v29 = vld [vmem:[#allocation31_spill] sm:$0xff]  ;;  %v4539_v11 = vld [vmem:[#allocation37_spill] sm:$0xff] }
 0x29c   :  { %v1795_v43 = vpack.c.bf16 %v4532_v5, %v4532_v5  ;;  %v1796_v37 = vpack.c.bf16 %v4533_v1, %v4533_v1  ;;  %v1797_v4 = vpack.c.bf16 %v4534_v39, %v4534_v39  ;;  %v1798_v36 = vpack.c.bf16 %v4535_v50, %v4535_v50  ;;  %v4538_v49 = vld [vmem:[#allocation35_spill] sm:$0xff]  ;;  %v4541_v50 = vld [vmem:[#allocation42_spill] sm:$0xff] }
 0x29d   :  { %v1799_v59 = vpack.c.bf16 %v4536_v29, %v4536_v29  ;;  %v1800_v44 = vpack.c.bf16 %v4537_v27, %v4537_v27  ;;  %v1801_v0 = vpack.c.bf16 %v4538_v49, %v4538_v49  ;;  %1619 = vst.msk [vmem:[%s4204_s4] sm:$0xf] %vm1618_vm9, %v1792_v24  ;;  %1620 = vst.msk [vmem:[%s4204_s4 + $0x4] sm:$0xf] %vm1618_vm9, %v1793_v28  ;;  %v4540_v1 = vld [vmem:[#allocation39_spill] sm:$0xff]  ;;  %v4542_v27 = vld [vmem:[#allocation46_spill] sm:$0xff] }
 0x29e   :  { %v1802_v5 = vpack.c.bf16 %v4539_v11, %v4539_v11  ;;  %v1803_v39 = vpack.c.bf16 %v4540_v1, %v4540_v1  ;;  %v1804_v29 = vpack.c.bf16 %v4541_v50, %v4541_v50  ;;  %v1805_v49 = vpack.c.bf16 %v4542_v27, %v4542_v27  ;;  %1621 = vst.msk [vmem:[%s4204_s4 + $0x8] sm:$0xf] %vm1618_vm9, %v1794_v13  ;;  %v4543_v24 = vld [vmem:[#allocation28_spill] sm:$0xff]  ;;  %v4544_v11 = vld [vmem:[#allocation53_spill] sm:$0xff]  ;;  %v4545_v1 = vld [vmem:[#allocation54_spill] sm:$0xff] }
 0x29f   :  { %1622 = vst.msk [vmem:[%s4204_s4 + $0xc] sm:$0xf] %vm1618_vm9, %v1795_v43  ;;  %1623 = vst.msk [vmem:[%s4204_s4 + $0x10] sm:$0xf] %vm1618_vm9, %v1796_v37  ;;  %v1806_v28 = vpack.c.bf16 %v4543_v24, %v4543_v24  ;;  %v1807_v13 = vpack.c.bf16 %v4544_v11, %v4544_v11  ;;  %v1808_v50 = vpack.c.bf16 %v4545_v1, %v4545_v1  ;;  %v4546_v43 = vld [vmem:[#allocation15_spill] sm:$0xff] }
 0x2a0   :  { %1624 = vst.msk [vmem:[%s4204_s4 + $0x14] sm:$0xf] %vm1618_vm9, %v1797_v4  ;;  %v1809_v27 = vpack.c.bf16 %v4546_v43, %v4546_v43  ;;  %1625 = vst.msk [vmem:[%s4204_s4 + $0x18] sm:$0xf] %vm1618_vm9, %v1798_v36  ;;  %v1810_v37 = vpack.c.bf16 %v3551_v21, %v3551_v21  ;;  %v1811_v4 = vpack.c.bf16 %v3560_v55, %v3560_v55 }
 0x2a1   :  { %1626 = vst.msk [vmem:[%s4204_s4 + $0x1c] sm:$0xf] %vm1618_vm9, %v1799_v59  ;;  %1627 = vst.msk [vmem:[%s4204_s4 + $0x20] sm:$0xf] %vm1618_vm9, %v1800_v44  ;;  %v1812_v36 = vpack.c.bf16 %v3566_v53, %v3566_v53  ;;  %v1813_v59 = vpack.c.bf16 %v3572_v9, %v3572_v9  ;;  %v1814_v53 = vpack.c.bf16 %v3578_v58, %v3578_v58 }
 0x2a2   :  { %1628 = vst.msk [vmem:[%s4204_s4 + $0x24] sm:$0xf] %vm1618_vm9, %v1801_v0  ;;  %1629 = vst.msk [vmem:[%s4204_s4 + $0x28] sm:$0xf] %vm1618_vm9, %v1802_v5  ;;  %v1815_v55 = vpack.c.bf16 %v3584_v20, %v3584_v20  ;;  %v1816_v21 = vpack.c.bf16 %v3590_v46, %v3590_v46  ;;  %v1817_v9 = vpack.c.bf16 %v3596_v40, %v3596_v40 }
 0x2a3   :  { %1630 = vst.msk [vmem:[%s4204_s4 + $0x2c] sm:$0xf] %vm1618_vm9, %v1803_v39  ;;  %1631 = vst.msk [vmem:[%s4204_s4 + $0x30] sm:$0xf] %vm1618_vm9, %v1804_v29  ;;  %v1818_v58 = vpack.c.bf16 %v3602_v61, %v3602_v61  ;;  %v1819_v20 = vpack.c.bf16 %v3608_v56, %v3608_v56  ;;  %v1820_v46 = vpack.c.bf16 %v3614_v63, %v3614_v63 }
 0x2a4   :  { %1632 = vst.msk [vmem:[%s4204_s4 + $0x34] sm:$0xf] %vm1618_vm9, %v1805_v49  ;;  %1633 = vst.msk [vmem:[%s4204_s4 + $0x38] sm:$0xf] %vm1618_vm9, %v1806_v28  ;;  %v1821_v40 = vpack.c.bf16 %v3620_v54, %v3620_v54  ;;  %v1822_v61 = vpack.c.bf16 %v3626_v60, %v3626_v60  ;;  %v1823_v56 = vpack.c.bf16 %v3632_v8, %v3632_v8 }
 0x2a5   :  { %1634 = vst.msk [vmem:[%s4204_s4 + $0x3c] sm:$0xf] %vm1618_vm9, %v1807_v13  ;;  %1635 = vst.msk [vmem:[%s4204_s4 + $0x40] sm:$0xf] %vm1618_vm9, %v1808_v50  ;;  %v1824_v63 = vpack.c.bf16 %v3638_v41, %v3638_v41  ;;  %v1825_v54 = vpack.c.bf16 %v3644_v6, %v3644_v6  ;;  %v1826_v60 = vpack.c.bf16 %v3650_v12, %v3650_v12 }
 0x2a6   :  { %1636 = vst.msk [vmem:[%s4204_s4 + $0x44] sm:$0xf] %vm1618_vm9, %v1809_v27  ;;  %1637 = vst.msk [vmem:[%s4204_s4 + $0x48] sm:$0xf] %vm1618_vm9, %v1810_v37  ;;  %v1827_v8 = vpack.c.bf16 %v3656_v18, %v3656_v18  ;;  %v1828_v41 = vpack.c.bf16 %v3662_v31, %v3662_v31  ;;  %v1829_v6 = vpack.c.bf16 %v3668_v22, %v3668_v22 }
 0x2a7   :  { %1638 = vst.msk [vmem:[%s4204_s4 + $0x4c] sm:$0xf] %vm1618_vm9, %v1811_v4  ;;  %1639 = vst.msk [vmem:[%s4204_s4 + $0x50] sm:$0xf] %vm1618_vm9, %v1812_v36  ;;  %v1830_v12 = vpack.c.bf16 %v3674_v47, %v3674_v47  ;;  %v1831_v18 = vpack.c.bf16 %v3680_v48, %v3680_v48  ;;  %v1832_v31 = vpack.c.bf16 %v3686_v7, %v3686_v7 }
 0x2a8   :  { %1640 = vst.msk [vmem:[%s4204_s4 + $0x54] sm:$0xf] %vm1618_vm9, %v1813_v59  ;;  %1641 = vst.msk [vmem:[%s4204_s4 + $0x58] sm:$0xf] %vm1618_vm9, %v1814_v53  ;;  %v1833_v22 = vpack.c.bf16 %v3692_v16, %v3692_v16  ;;  %v1834_v47 = vpack.c.bf16 %v3698_v52, %v3698_v52  ;;  %v1835_v48 = vpack.c.bf16 %v3704_v10, %v3704_v10 }
 0x2a9   :  { %1642 = vst.msk [vmem:[%s4204_s4 + $0x5c] sm:$0xf] %vm1618_vm9, %v1815_v55  ;;  %1643 = vst.msk [vmem:[%s4204_s4 + $0x60] sm:$0xf] %vm1618_vm9, %v1816_v21  ;;  %v1836_v7 = vpack.c.bf16 %v3710_v19, %v3710_v19  ;;  %v1837_v16 = vpack.c.bf16 %v3716_v45, %v3716_v45  ;;  %v1838_v52 = vpack.c.bf16 %v3722_v33, %v3722_v33 }
 0x2aa   :  { %1644 = vst.msk [vmem:[%s4204_s4 + $0x64] sm:$0xf] %vm1618_vm9, %v1817_v9  ;;  %1645 = vst.msk [vmem:[%s4204_s4 + $0x68] sm:$0xf] %vm1618_vm9, %v1818_v58  ;;  %v1839_v10 = vpack.c.bf16 %v3728_v62, %v3728_v62  ;;  %v1840_v19 = vpack.c.bf16 %v3734_v3, %v3734_v3  ;;  %v1841_v45 = vpack.c.bf16 %v3740_v30, %v3740_v30 }
 0x2ab   :  { %1646 = vst.msk [vmem:[%s4204_s4 + $0x6c] sm:$0xf] %vm1618_vm9, %v1819_v20  ;;  %1647 = vst.msk [vmem:[%s4204_s4 + $0x70] sm:$0xf] %vm1618_vm9, %v1820_v46  ;;  %v1842_v33 = vpack.c.bf16 %v3746_v42, %v3746_v42  ;;  %v1843_v62 = vpack.c.bf16 %v3752_v15, %v3752_v15  ;;  %v1844_v3 = vpack.c.bf16 %v3758_v35, %v3758_v35 }
 0x2ac   :  { %1648 = vst.msk [vmem:[%s4204_s4 + $0x74] sm:$0xf] %vm1618_vm9, %v1821_v40  ;;  %1649 = vst.msk [vmem:[%s4204_s4 + $0x78] sm:$0xf] %vm1618_vm9, %v1822_v61  ;;  %v1845_v30 = vpack.c.bf16 %v3764_v34, %v3764_v34  ;;  %v1846_v42 = vpack.c.bf16 %v3769_v17, %v3769_v17  ;;  %v1847_v15 = vpack.c.bf16 %v3774_v14, %v3774_v14 }
 0x2ad   :  { %1650 = vst.msk [vmem:[%s4204_s4 + $0x7c] sm:$0xf] %vm1618_vm9, %v1823_v56  ;;  %1651 = vst.msk [vmem:[%s4204_s4 + $0x80] sm:$0xf] %vm1618_vm9, %v1824_v63  ;;  %v1848_v35 = vpack.c.bf16 %v3779_v57, %v3779_v57  ;;  %v1849_v34 = vpack.c.bf16 %v3784_v25, %v3784_v25  ;;  %v1850_v17 = vpack.c.bf16 %v3789_v26, %v3789_v26 }
 0x2ae   :  { %1652 = vst.msk [vmem:[%s4204_s4 + $0x84] sm:$0xf] %vm1618_vm9, %v1825_v54  ;;  %1653 = vst.msk [vmem:[%s4204_s4 + $0x88] sm:$0xf] %vm1618_vm9, %v1826_v60  ;;  %v1851_v14 = vpack.c.bf16 %v3794_v23, %v3794_v23  ;;  %v1852_v57 = vpack.c.bf16 %v3799_v51, %v3799_v51  ;;  %v1853_v25 = vpack.c.bf16 %v3804_v38, %v3804_v38 }
 0x2af   :  { %1654 = vst.msk [vmem:[%s4204_s4 + $0x8c] sm:$0xf] %vm1618_vm9, %v1827_v8  ;;  %1655 = vst.msk [vmem:[%s4204_s4 + $0x90] sm:$0xf] %vm1618_vm9, %v1828_v41  ;;  %v1854_v26 = vpack.c.bf16 %v3809_v2, %v3809_v2  ;;  %v1855_v23 = vpack.c.bf16 %v3814_v32, %v3814_v32 }
 0x2b0   :  { %1656 = vst.msk [vmem:[%s4204_s4 + $0x94] sm:$0xf] %vm1618_vm9, %v1829_v6  ;;  %1657 = vst.msk [vmem:[%s4204_s4 + $0x98] sm:$0xf] %vm1618_vm9, %v1830_v12 }
 0x2b1   :  { %1658 = vst.msk [vmem:[%s4204_s4 + $0x9c] sm:$0xf] %vm1618_vm9, %v1831_v18  ;;  %1659 = vst.msk [vmem:[%s4204_s4 + $0xa0] sm:$0xf] %vm1618_vm9, %v1832_v31 }
 0x2b2   :  { %1660 = vst.msk [vmem:[%s4204_s4 + $0xa4] sm:$0xf] %vm1618_vm9, %v1833_v22  ;;  %1661 = vst.msk [vmem:[%s4204_s4 + $0xa8] sm:$0xf] %vm1618_vm9, %v1834_v47 }
 0x2b3   :  { %1662 = vst.msk [vmem:[%s4204_s4 + $0xac] sm:$0xf] %vm1618_vm9, %v1835_v48  ;;  %1663 = vst.msk [vmem:[%s4204_s4 + $0xb0] sm:$0xf] %vm1618_vm9, %v1836_v7 }
 0x2b4   :  { %1664 = vst.msk [vmem:[%s4204_s4 + $0xb4] sm:$0xf] %vm1618_vm9, %v1837_v16  ;;  %1665 = vst.msk [vmem:[%s4204_s4 + $0xb8] sm:$0xf] %vm1618_vm9, %v1838_v52 }
 0x2b5   :  { %1666 = vst.msk [vmem:[%s4204_s4 + $0xbc] sm:$0xf] %vm1618_vm9, %v1839_v10  ;;  %1667 = vst.msk [vmem:[%s4204_s4 + $0xc0] sm:$0xf] %vm1618_vm9, %v1840_v19 }
 0x2b6   :  { %1668 = vst.msk [vmem:[%s4204_s4 + $0xc4] sm:$0xf] %vm1618_vm9, %v1841_v45  ;;  %1669 = vst.msk [vmem:[%s4204_s4 + $0xc8] sm:$0xf] %vm1618_vm9, %v1842_v33 }
 0x2b7   :  { %1670 = vst.msk [vmem:[%s4204_s4 + $0xcc] sm:$0xf] %vm1618_vm9, %v1843_v62  ;;  %1671 = vst.msk [vmem:[%s4204_s4 + $0xd0] sm:$0xf] %vm1618_vm9, %v1844_v3 }
 0x2b8   :  { %1672 = vst.msk [vmem:[%s4204_s4 + $0xd4] sm:$0xf] %vm1618_vm9, %v1845_v30  ;;  %1673 = vst.msk [vmem:[%s4204_s4 + $0xd8] sm:$0xf] %vm1618_vm9, %v1846_v42 }
 0x2b9   :  { %1674 = vst.msk [vmem:[%s4204_s4 + $0xdc] sm:$0xf] %vm1618_vm9, %v1847_v15  ;;  %1675 = vst.msk [vmem:[%s4204_s4 + $0xe0] sm:$0xf] %vm1618_vm9, %v1848_v35 }
 0x2ba   :  { %1676 = vst.msk [vmem:[%s4204_s4 + $0xe4] sm:$0xf] %vm1618_vm9, %v1849_v34  ;;  %1677 = vst.msk [vmem:[%s4204_s4 + $0xe8] sm:$0xf] %vm1618_vm9, %v1850_v17 }
 0x2bb   :  { %1678 = vst.msk [vmem:[%s4204_s4 + $0xec] sm:$0xf] %vm1618_vm9, %v1851_v14  ;;  %1679 = vst.msk [vmem:[%s4204_s4 + $0xf0] sm:$0xf] %vm1618_vm9, %v1852_v57 }
 0x2bc   :  { %1680 = vst.msk [vmem:[%s4204_s4 + $0xf4] sm:$0xf] %vm1618_vm9, %v1853_v25  ;;  %1681 = vst.msk [vmem:[%s4204_s4 + $0xf8] sm:$0xf] %vm1618_vm9, %v1854_v26 }
 0x2bd   :  { %1682 = vst.msk [vmem:[%s4204_s4 + $0xfc] sm:$0xf] %vm1618_vm9, %v1855_v23 }

// kernel: discriminator_forward.7
= control target key start
LH: loop header
LB: loop body
LE: loop exit
PB: predicated region body
PF: predicated region fallthrough
CT: control target
= control target key end

     0   :  { %vm339_vm0 = vcmask 261120   ;;  %s1169_s1 = inlined_call_operand.vmem [shape: bf16[256,32], index: 1, kind: input, shape index: {}]   ;;  %s1170_s0 = inlined_call_operand.vmem [shape: bf16[128,256], index: 0, kind: input, shape index: {}]   ;;  %s1171_s2 = inlined_call_operand.vmem [shape: f32[1,32], index: 2, kind: input, shape index: {}]   ;;  %s1172_s3 = inlined_call_operand.vmem [shape: f32[1,32], index: 3, kind: input, shape index: {}]   ;;  %s1173_s4 = inlined_call_operand.vmem [shape: bf16[128,32], index: 4, kind: output, shape index: {}]  }
   0x1   :  { %v776_v0 = vld [vmem:[%s1169_s1 + $0x40] sm:$0xff]   ;;  %v778_v2 = vld [vmem:[%s1169_s1 + $0x48] sm:$0xff]   ;;  %v780_v4 = vld [vmem:[%s1169_s1 + $0x50] sm:$0xff]  }
   0x2   :  { %v777_v1 = vld [vmem:[%s1169_s1] sm:$0xff]   ;;  %696 = vmatprep.subr.bf16.mxu0 %v776_v0  ;;  %760 = vmatprep.subr.bf16.mxu1 %v776_v0  ;;  %v779_v3 = vld [vmem:[%s1169_s1 + $0x8] sm:$0xff]   ;;  %v781_v5 = vld [vmem:[%s1169_s1 + $0x10] sm:$0xff]  }
   0x3   :  { %697 = vmatpush3.bf16.msra.mxu0 %v777_v1  ;;  %768 = vmatpush3.bf16.msra.mxu1 %v777_v1  ;;  %v782_v6 = vld [vmem:[%s1169_s1 + $0x58] sm:$0xff]   ;;  %v784_v8 = vld [vmem:[%s1169_s1 + $0x60] sm:$0xff]   ;;  %v786_v10 = vld [vmem:[%s1169_s1 + $0x68] sm:$0xff]  }
   0x4   :  { %698 = vmatprep.subr.bf16.mxu0 %v778_v2  ;;  %761 = vmatprep.subr.bf16.mxu1 %v778_v2  ;;  %v783_v7 = vld [vmem:[%s1169_s1 + $0x18] sm:$0xff]   ;;  %v785_v9 = vld [vmem:[%s1169_s1 + $0x20] sm:$0xff]   ;;  %v787_v12 = vld [vmem:[%s1169_s1 + $0x28] sm:$0xff]  }
   0x5   :  { %v794_v11 = vld [vmem:[%s1170_s0 + $0x4] ss:$8 sps:$4 sm:$0xff]   ;;  %v788_v14 = vld [vmem:[%s1169_s1 + $0x70] sm:$0xff]   ;;  %v790_v16 = vld [vmem:[%s1169_s1 + $0x78] sm:$0xff]  }
   0x6   :  { %v800_v13 = vld [vmem:[%s1170_s0 + $0x44] ss:$8 sps:$4 sm:$0xff]   ;;  %274 = vmatprep.mubr.bf16.mxu0 %v794_v11  ;;  %v789_v15 = vld [vmem:[%s1169_s1 + $0x30] sm:$0xff]   ;;  %v791_v17 = vld [vmem:[%s1169_s1 + $0x38] sm:$0xff]  }
   0x7   :  { %699 = vmatpush3.bf16.msra.mxu0 %v779_v3  ;;  %769 = vmatpush3.bf16.msra.mxu1 %v779_v3  ;;  %v792_v18 = vld [vmem:[%s1170_s0] ss:$8 sps:$4 sm:$0xff]   ;;  %v795_v20 = vld [vmem:[%s1170_s0 + $0x14] ss:$8 sps:$4 sm:$0xff]   ;;  %v797_v22 = vld [vmem:[%s1170_s0 + $0x10] ss:$8 sps:$4 sm:$0xff]  }
   0x8   :  { %700 = vmatprep.subr.bf16.mxu0 %v780_v4  ;;  %762 = vmatprep.subr.bf16.mxu1 %v780_v4  ;;  %v798_v19 = vld [vmem:[%s1170_s0 + $0x40] ss:$8 sps:$4 sm:$0xff]   ;;  %v804_v21 = vld [vmem:[%s1170_s0 + $0x54] ss:$8 sps:$4 sm:$0xff]   ;;  %v806_v23 = vld [vmem:[%s1170_s0 + $0x50] ss:$8 sps:$4 sm:$0xff]  }
   0x9   :  { %306 = vmatprep.mubr.bf16.mxu1 %v800_v13  ;;  %v801_v24 = vld [vmem:[%s1170_s0 + $0x24] ss:$8 sps:$4 sm:$0xff]   ;;  %v803_v26 = vld [vmem:[%s1170_s0 + $0x20] ss:$8 sps:$4 sm:$0xff]   ;;  %v807_v28 = vld [vmem:[%s1170_s0 + $0x34] ss:$8 sps:$4 sm:$0xff]  }
   0xa   :  { %v810_v25 = vld [vmem:[%s1170_s0 + $0x64] ss:$8 sps:$4 sm:$0xff]   ;;  %v812_v27 = vld [vmem:[%s1170_s0 + $0x60] ss:$8 sps:$4 sm:$0xff]   ;;  %v813_v29 = vld [vmem:[%s1170_s0 + $0x74] ss:$8 sps:$4 sm:$0xff]  }
   0xb   :  { %701 = vmatpush3.bf16.msra.mxu0 %v781_v5  ;;  %770 = vmatpush3.bf16.msra.mxu1 %v781_v5  ;;  %v809_v30 = vld [vmem:[%s1170_s0 + $0x30] ss:$8 sps:$4 sm:$0xff]  }
   0xc   :  { %702 = vmatprep.subr.bf16.mxu0 %v782_v6  ;;  %763 = vmatprep.subr.bf16.mxu1 %v782_v6  ;;  %v815_v31 = vld [vmem:[%s1170_s0 + $0x70] ss:$8 sps:$4 sm:$0xff]  }
   0xf   :  { %703 = vmatpush3.bf16.msra.mxu0 %v783_v7  ;;  %771 = vmatpush3.bf16.msra.mxu1 %v783_v7 }
  0x10   :  { %704 = vmatprep.subr.bf16.mxu0 %v784_v8  ;;  %764 = vmatprep.subr.bf16.mxu1 %v784_v8 }
  0x13   :  { %705 = vmatpush3.bf16.msra.mxu0 %v785_v9  ;;  %772 = vmatpush3.bf16.msra.mxu1 %v785_v9 }
  0x14   :  { %706 = vmatprep.subr.bf16.mxu0 %v786_v10  ;;  %765 = vmatprep.subr.bf16.mxu1 %v786_v10 }
  0x17   :  { %707 = vmatpush3.bf16.msra.mxu0 %v787_v12  ;;  %773 = vmatpush3.bf16.msra.mxu1 %v787_v12 }
  0x18   :  { %708 = vmatprep.subr.bf16.mxu0 %v788_v14  ;;  %766 = vmatprep.subr.bf16.mxu1 %v788_v14 }
  0x1b   :  { %709 = vmatpush3.bf16.msra.mxu0 %v789_v15  ;;  %774 = vmatpush3.bf16.msra.mxu1 %v789_v15 }
  0x1c   :  { %710 = vmatprep.subr.bf16.mxu0 %v790_v16  ;;  %767 = vmatprep.subr.bf16.mxu1 %v790_v16 }
  0x1f   :  { %711 = vmatpush3.bf16.msra.mxu0 %v791_v17  ;;  %775 = vmatpush3.bf16.msra.mxu1 %v791_v17 }
  0x22   :  { %275 = vmatmul.mubr.bf16.vlgmr.msra.gmra.mrb[0].mxu0 %v792_v18  ;;  %307 = vmatmul.mubr.bf16.vlgmr.msra.gmra.mrb[0].mxu1 %v798_v19 }
  0x23   :  { %282 = vmatprep.mubr.bf16.mxu0 %v795_v20  ;;  %314 = vmatprep.mubr.bf16.mxu1 %v804_v21 }
  0x2a   :  { %283 = vmatmul.mubr.bf16.gmra.mrb[4].mxu0 %v797_v22  ;;  %315 = vmatmul.mubr.bf16.gmra.mrb[4].mxu1 %v806_v23 }
  0x2b   :  { %290 = vmatprep.mubr.bf16.mxu0 %v801_v24  ;;  %322 = vmatprep.mubr.bf16.mxu1 %v810_v25 }
  0x32   :  { %291 = vmatmul.mubr.bf16.gmra.mrb[8].mxu0 %v803_v26  ;;  %323 = vmatmul.mubr.bf16.gmra.mrb[8].mxu1 %v812_v27 }
  0x33   :  { %298 = vmatprep.mubr.bf16.mxu0 %v807_v28  ;;  %330 = vmatprep.mubr.bf16.mxu1 %v813_v29 }
  0x3a   :  { %299 = vmatmul.mubr.bf16.gmra.mrb[12].mxu0 %v809_v30  ;;  %331 = vmatmul.mubr.bf16.gmra.mrb[12].mxu1 %v815_v31 }
  0xf5   :  { %v712_v32 = vpop.f32.mrb[0].mxu0  ;;  %v736_v33 = vpop.f32.mrb[0].mxu1 }
  0xf6   :  { %v713_v34 = vpop.f32.mrb[1].mxu0  ;;  %v737_v35 = vpop.f32.mrb[1].mxu1 }
  0xf7   :  { %v939_v36 = vadd.f32 %v713_v34, %v712_v32  ;;  %v715_v37 = vpop.f32.mrb[2].mxu0  ;;  %v941_v38 = vadd.f32 %v737_v35, %v736_v33  ;;  %v739_v39 = vpop.f32.mrb[2].mxu1 }
  0xf8   :  { %v716_v40 = vpop.f32.mrb[3].mxu0  ;;  %v740_v41 = vpop.f32.mrb[3].mxu1 }
  0xf9   :  { %v943_v42 = vadd.f32 %v716_v40, %v715_v37  ;;  %v945_v43 = vadd.f32 %v740_v41, %v739_v39  ;;  %v340_v44 = vsel %vm339_vm0, %v939_v36, 0.0  ;;  %v355_v31 = vsel %vm339_vm0, %v941_v38, 0.0 }
  0xfb   :  { %v341_v45 = vsel %vm339_vm0, %v943_v42, 0.0  ;;  %v357_v33 = vsel %vm339_vm0, %v945_v43, 0.0 }
  0xfc   :  { %v342_v46 = vadd.f32 %v341_v45, %v340_v44 }
  0xfd   :  { %v718_v47 = vpop.f32.mrb[4].mxu0  ;;  %v742_v48 = vpop.f32.mrb[4].mxu1 }
  0xfe   :  { %v719_v49 = vpop.f32.mrb[5].mxu0  ;;  %v743_v50 = vpop.f32.mrb[5].mxu1 }
  0xff   :  { %v951_v51 = vadd.f32 %v719_v49, %v718_v47  ;;  %v721_v52 = vpop.f32.mrb[6].mxu0  ;;  %v953_v53 = vadd.f32 %v743_v50, %v742_v48  ;;  %v745_v54 = vpop.f32.mrb[6].mxu1 }
 0x100   :  { %v722_v55 = vpop.f32.mrb[7].mxu0  ;;  %v746_v56 = vpop.f32.mrb[7].mxu1 }
 0x101   :  { %v343_v57 = vsel %vm339_vm0, %v951_v51, 0.0  ;;  %v957_v58 = vadd.f32 %v722_v55, %v721_v52  ;;  %v959_v59 = vadd.f32 %v746_v56, %v745_v54  ;;  %v359_v35 = vsel %vm339_vm0, %v953_v53, 0.0 }
 0x102   :  { %v344_v60 = vadd.f32 %v343_v57, %v342_v46 }
 0x103   :  { %v345_v61 = vsel %vm339_vm0, %v957_v58, 0.0  ;;  %v361_v39 = vsel %vm339_vm0, %v959_v59, 0.0 }
 0x104   :  { %v346_v62 = vadd.f32 %v345_v61, %v344_v60 }
 0x105   :  { %v724_v63 = vpop.f32.mrb[8].mxu0  ;;  %v748_v0 = vpop.f32.mrb[8].mxu1 }
 0x106   :  { %v725_v1 = vpop.f32.mrb[9].mxu0  ;;  %v749_v2 = vpop.f32.mrb[9].mxu1 }
 0x107   :  { %v726_v3 = vadd.f32 %v725_v1, %v724_v63  ;;  %v727_v4 = vpop.f32.mrb[10].mxu0  ;;  %v750_v5 = vadd.f32 %v749_v2, %v748_v0  ;;  %v751_v6 = vpop.f32.mrb[10].mxu1 }
 0x108   :  { %v728_v7 = vpop.f32.mrb[11].mxu0  ;;  %v752_v8 = vpop.f32.mrb[11].mxu1 }
 0x109   :  { %v347_v9 = vsel %vm339_vm0, %v726_v3, 0.0  ;;  %v729_v10 = vadd.f32 %v728_v7, %v727_v4  ;;  %v753_v11 = vadd.f32 %v752_v8, %v751_v6  ;;  %v363_v41 = vsel %vm339_vm0, %v750_v5, 0.0 }
 0x10a   :  { %v348_v12 = vadd.f32 %v347_v9, %v346_v62 }
 0x10b   :  { %v349_v13 = vsel %vm339_vm0, %v729_v10, 0.0  ;;  %v365_v45 = vsel %vm339_vm0, %v753_v11, 0.0 }
 0x10c   :  { %v350_v14 = vadd.f32 %v349_v13, %v348_v12 }
 0x10d   :  { %v730_v15 = vpop.f32.mrb[12].mxu0  ;;  %v754_v16 = vpop.f32.mrb[12].mxu1 }
 0x10e   :  { %v731_v17 = vpop.f32.mrb[13].mxu0  ;;  %v755_v18 = vpop.f32.mrb[13].mxu1 }
 0x10f   :  { %v732_v19 = vadd.f32 %v731_v17, %v730_v15  ;;  %v733_v20 = vpop.f32.mrb[14].mxu0  ;;  %v756_v21 = vadd.f32 %v755_v18, %v754_v16  ;;  %v757_v22 = vpop.f32.mrb[14].mxu1 }
 0x110   :  { %v734_v23 = vpop.f32.mrb[15].mxu0  ;;  %v758_v24 = vpop.f32.mrb[15].mxu1 }
 0x111   :  { %v351_v25 = vsel %vm339_vm0, %v732_v19, 0.0  ;;  %v735_v26 = vadd.f32 %v734_v23, %v733_v20  ;;  %v759_v27 = vadd.f32 %v758_v24, %v757_v22  ;;  %v367_v46 = vsel %vm339_vm0, %v756_v21, 0.0 }
 0x112   :  { %v352_v28 = vadd.f32 %v351_v25, %v350_v14 }
 0x113   :  { %v353_v29 = vsel %vm339_vm0, %v735_v26, 0.0  ;;  %v369_v49 = vsel %vm339_vm0, %v759_v27, 0.0 }
 0x114   :  { %v354_v30 = vadd.f32 %v353_v29, %v352_v28 }
 0x116   :  { %v356_v32 = vadd.f32 %v355_v31, %v354_v30 }
 0x118   :  { %v358_v34 = vadd.f32 %v357_v33, %v356_v32 }
 0x11a   :  { %v360_v37 = vadd.f32 %v359_v35, %v358_v34 }
 0x11c   :  { %v362_v40 = vadd.f32 %v361_v39, %v360_v37 }
 0x11e   :  { %v364_v44 = vadd.f32 %v363_v41, %v362_v40 }
 0x120   :  { %v366_v47 = vadd.f32 %v365_v45, %v364_v44 }
 0x122   :  { %v368_v48 = vadd.f32 %v367_v46, %v366_v47 }
 0x124   :  { %v370_v50 = vadd.f32 %v369_v49, %v368_v48 }
 0x126   :  { %v371_v52 = vrot.slane %v370_v50, 4 }
 0x128   :  { %v372_v54 = vadd.f32 %v371_v52, %v370_v50 }
 0x12a   :  { %v373_v55 = vrot.slane %v372_v54, 2 }
 0x12c   :  { %v374_v56 = vadd.f32 %v373_v55, %v372_v54 }
 0x12e   :  { %v375_v57 = vrot.slane %v374_v56, 1 }
 0x130   :  { %v376_v60 = vadd.f32 %v375_v57, %v374_v56 }
 0x132   :  { %v378_v61 = vmul.f32 0.0078125, %v376_v60 }
 0x134   :  { %v980_v62 = vsub.f32 %v939_v36, %v378_v61  ;;  %v983_v63 = vsub.f32 %v943_v42, %v378_v61  ;;  %v986_v0 = vsub.f32 %v951_v51, %v378_v61  ;;  %v989_v1 = vsub.f32 %v957_v58, %v378_v61 }
 0x135   :  { %v991_v2 = vsub.f32 %v726_v3, %v378_v61  ;;  %v993_v4 = vsub.f32 %v729_v10, %v378_v61  ;;  %v995_v6 = vsub.f32 %v732_v19, %v378_v61  ;;  %v997_v7 = vsub.f32 %v735_v26, %v378_v61 }
 0x136   :  { %v1000_v36 = vsub.f32 %v941_v38, %v378_v61  ;;  %v1003_v42 = vsub.f32 %v945_v43, %v378_v61  ;;  %v1006_v51 = vsub.f32 %v953_v53, %v378_v61  ;;  %v1009_v58 = vsub.f32 %v959_v59, %v378_v61 }
 0x137   :  { %v1011_v3 = vsub.f32 %v750_v5, %v378_v61  ;;  %v1013_v8 = vsub.f32 %v753_v11, %v378_v61  ;;  %v1015_v9 = vsub.f32 %v756_v21, %v378_v61  ;;  %v1017_v10 = vsub.f32 %v759_v27, %v378_v61 }
 0x138   :  { %v395_v38 = vmul.f32 %v980_v62, %v980_v62  ;;  %v396_v43 = vmul.f32 %v983_v63, %v983_v63  ;;  %v397_v53 = vmul.f32 %v986_v0, %v986_v0  ;;  %v398_v59 = vmul.f32 %v989_v1, %v989_v1 }
 0x139   :  { %v399_v13 = vmul.f32 %v991_v2, %v991_v2  ;;  %v400_v16 = vmul.f32 %v993_v4, %v993_v4  ;;  %v401_v19 = vmul.f32 %v995_v6, %v995_v6  ;;  %v402_v22 = vmul.f32 %v997_v7, %v997_v7 }
 0x13a   :  { %v411_v5 = vsel %vm339_vm0, %v395_v38, 0.0  ;;  %v412_v11 = vsel %vm339_vm0, %v396_v43, 0.0  ;;  %v414_v14 = vsel %vm339_vm0, %v397_v53, 0.0  ;;  %v416_v17 = vsel %vm339_vm0, %v398_v59, 0.0 }
 0x13b   :  { %v413_v12 = vadd.f32 %v412_v11, %v411_v5  ;;  %v418_v20 = vsel %vm339_vm0, %v399_v13, 0.0  ;;  %v420_v23 = vsel %vm339_vm0, %v400_v16, 0.0  ;;  %v403_v25 = vmul.f32 %v1000_v36, %v1000_v36 }
 0x13c   :  { %v422_v26 = vsel %vm339_vm0, %v401_v19, 0.0  ;;  %v404_v28 = vmul.f32 %v1003_v42, %v1003_v42  ;;  %v424_v29 = vsel %vm339_vm0, %v402_v22, 0.0  ;;  %v405_v31 = vmul.f32 %v1006_v51, %v1006_v51 }
 0x13d   :  { %v415_v15 = vadd.f32 %v414_v14, %v413_v12  ;;  %v426_v32 = vsel %vm339_vm0, %v403_v25, 0.0  ;;  %v406_v34 = vmul.f32 %v1009_v58, %v1009_v58  ;;  %v407_v39 = vmul.f32 %v1011_v3, %v1011_v3 }
 0x13e   :  { %v428_v35 = vsel %vm339_vm0, %v404_v28, 0.0  ;;  %v430_v40 = vsel %vm339_vm0, %v405_v31, 0.0  ;;  %v408_v44 = vmul.f32 %v1013_v8, %v1013_v8  ;;  %v409_v47 = vmul.f32 %v1015_v9, %v1015_v9  ;;  %v663_v28 = vld [vmem:[%s1172_s3] ss:$0 sm:$0xff] }
 0x13f   :  { %v417_v18 = vadd.f32 %v416_v17, %v415_v15  ;;  %v432_v45 = vsel %vm339_vm0, %v406_v34, 0.0  ;;  %v434_v48 = vsel %vm339_vm0, %v407_v39, 0.0  ;;  %v410_v50 = vmul.f32 %v1017_v10, %v1017_v10  ;;  %v449_v15 = vld [vmem:[%s1171_s2] sm:$0x1] }
 0x140   :  { %v436_v52 = vsel %vm339_vm0, %v408_v44, 0.0  ;;  %v438_v55 = vsel %vm339_vm0, %v409_v47, 0.0  ;;  %v454_v13 = vlaneseq }
 0x141   :  { %v419_v21 = vadd.f32 %v418_v20, %v417_v18  ;;  %v440_v57 = vsel %vm339_vm0, %v410_v50, 0.0 }
 0x142   :  { %v455_v14 = vshrl.u32 %v454_v13, 7 }
 0x143   :  { %v421_v24 = vadd.f32 %v420_v23, %v419_v21 }
 0x144   :  { %v456_v16 = vsub.s32 0, %v455_v14 }
 0x145   :  { %v423_v27 = vadd.f32 %v422_v26, %v421_v24 }
 0x147   :  { %v425_v30 = vadd.f32 %v424_v29, %v423_v27 }
 0x149   :  { %v427_v33 = vadd.f32 %v426_v32, %v425_v30 }
 0x14b   :  { %v429_v37 = vadd.f32 %v428_v35, %v427_v33 }
 0x14d   :  { %v431_v41 = vadd.f32 %v430_v40, %v429_v37 }
 0x14f   :  { %v433_v46 = vadd.f32 %v432_v45, %v431_v41 }
 0x151   :  { %v435_v49 = vadd.f32 %v434_v48, %v433_v46 }
 0x153   :  { %v437_v54 = vadd.f32 %v436_v52, %v435_v49 }
 0x155   :  { %v439_v56 = vadd.f32 %v438_v55, %v437_v54 }
 0x157   :  { %v441_v60 = vadd.f32 %v440_v57, %v439_v56 }
 0x159   :  { %v442_v61 = vrot.slane %v441_v60, 4 }
 0x15b   :  { %v443_v38 = vadd.f32 %v442_v61, %v441_v60 }
 0x15d   :  { %v444_v43 = vrot.slane %v443_v38, 2 }
 0x15f   :  { %v445_v53 = vadd.f32 %v444_v43, %v443_v38 }
 0x161   :  { %v446_v59 = vrot.slane %v445_v53, 1 }
 0x163   :  { %v447_v5 = vadd.f32 %v446_v59, %v445_v53 }
 0x165   :  { %v448_v11 = vmul.f32 0.0078125, %v447_v5 }
 0x167   :  { %v450_v12 = vadd.f32 1e-05, %v448_v11 }
 0x169   :  { %816 = vrsqrt.f32 %v450_v12 }
 0x173   :  { %v817_v17 = vpop.eup %816 }
 0x174   :  { %v452_v18 = vmul.f32 %v817_v17, %v449_v15 }
 0x176   :  { %v457_v19 = vrot.slane %v452_v18, %v456_v16 }
 0x178   :  { %v459_v20 = vmul.f32 %v457_v19, %v980_v62  ;;  %v460_v21 = vmul.f32 %v457_v19, %v983_v63  ;;  %v461_v22 = vmul.f32 %v457_v19, %v986_v0  ;;  %v462_v23 = vmul.f32 %v457_v19, %v989_v1 }
 0x179   :  { %v463_v24 = vmul.f32 %v457_v19, %v991_v2  ;;  %v464_v25 = vmul.f32 %v457_v19, %v993_v4  ;;  %v465_v26 = vmul.f32 %v457_v19, %v995_v6  ;;  %v466_v27 = vmul.f32 %v457_v19, %v997_v7 }
 0x17a   :  { %v467_v62 = vmul.f32 %v457_v19, %v1000_v36  ;;  %v468_v63 = vmul.f32 %v457_v19, %v1003_v42  ;;  %v469_v0 = vmul.f32 %v457_v19, %v1006_v51  ;;  %v470_v1 = vmul.f32 %v457_v19, %v1009_v58 }
 0x17b   :  { %v471_v2 = vmul.f32 %v457_v19, %v1011_v3  ;;  %v472_v4 = vmul.f32 %v457_v19, %v1013_v8  ;;  %v473_v6 = vmul.f32 %v457_v19, %v1015_v9  ;;  %v474_v7 = vmul.f32 %v457_v19, %v1017_v10 }
 0x17c   :  { %v482_v29 = vadd.f32 %v663_v28, %v459_v20  ;;  %v483_v30 = vadd.f32 %v663_v28, %v460_v21  ;;  %v484_v31 = vadd.f32 %v663_v28, %v461_v22  ;;  %v485_v32 = vadd.f32 %v663_v28, %v462_v23 }
 0x17d   :  { %v486_v33 = vadd.f32 %v663_v28, %v463_v24  ;;  %v487_v36 = vadd.f32 %v663_v28, %v464_v25  ;;  %v488_v34 = vadd.f32 %v663_v28, %v465_v26  ;;  %v489_v42 = vadd.f32 %v663_v28, %v466_v27 }
 0x17e   :  { %v490_v35 = vadd.f32 %v663_v28, %v467_v62  ;;  %v491_v51 = vadd.f32 %v663_v28, %v468_v63  ;;  %v492_v37 = vadd.f32 %v663_v28, %v469_v0  ;;  %v493_v58 = vadd.f32 %v663_v28, %v470_v1 }
 0x17f   :  { %v494_v39 = vadd.f32 %v663_v28, %v471_v2  ;;  %v495_v3 = vadd.f32 %v663_v28, %v472_v4  ;;  %v496_v40 = vadd.f32 %v663_v28, %v473_v6  ;;  %v497_v8 = vadd.f32 %v663_v28, %v474_v7 }
 0x180   :  { %vm499_vm2 = vcmp.ge.f32.partialorder %v483_v30, 0.0  ;;  %vm500_vm3 = vcmp.ge.f32.partialorder %v484_v31, 0.0  ;;  %vm501_vm4 = vcmp.ge.f32.partialorder %v485_v32, 0.0  ;;  %vm502_vm5 = vcmp.ge.f32.partialorder %v486_v33, 0.0 }
 0x181   :  { %vm503_vm6 = vcmp.ge.f32.partialorder %v487_v36, 0.0  ;;  %vm505_vm8 = vcmp.ge.f32.partialorder %v489_v42, 0.0  ;;  %vm506_vm9 = vcmp.ge.f32.partialorder %v490_v35, 0.0  ;;  %vm507_vm10 = vcmp.ge.f32.partialorder %v491_v51, 0.0 }
 0x182   :  { %vm508_vm11 = vcmp.ge.f32.partialorder %v492_v37, 0.0  ;;  %vm509_vm12 = vcmp.ge.f32.partialorder %v493_v58, 0.0  ;;  %vm510_vm13 = vcmp.ge.f32.partialorder %v494_v39, 0.0  ;;  %vm511_vm14 = vcmp.ge.f32.partialorder %v495_v3, 0.0 }
 0x183   :  { %vm512_vm15 = vcmp.ge.f32.partialorder %v496_v40, 0.0  ;;  %vm513_vm0 = vcmp.ge.f32.partialorder %v497_v8, 0.0  ;;  %v514_v9 = vmul.f32 0.2, %v482_v29  ;;  %v515_v10 = vmul.f32 0.2, %v483_v30 }
 0x184   :  { %v516_v41 = vmul.f32 0.2, %v484_v31  ;;  %v517_v44 = vmul.f32 0.2, %v485_v32  ;;  %v518_v45 = vmul.f32 0.2, %v486_v33 }
 0x185   :  { %v519_v46 = vmul.f32 0.2, %v487_v36  ;;  %v520_v47 = vmul.f32 0.2, %v488_v34  ;;  %v521_v48 = vmul.f32 0.2, %v489_v42  ;;  %v531_v56 = vsel %vm499_vm2, %v483_v30, %v515_v10 }
 0x186   :  { %v522_v49 = vmul.f32 0.2, %v490_v35  ;;  %vm1174_vm7 = vcmp.ge.f32.partialorder %v482_v29, 0.0  ;;  %v523_v52 = vmul.f32 0.2, %v491_v51  ;;  %v532_v38 = vsel %vm500_vm3, %v484_v31, %v516_v41 }
 0x187   :  { %v530_v50 = vsel %vm1174_vm7, %v482_v29, %v514_v9  ;;  %v524_v54 = vmul.f32 0.2, %v492_v37  ;;  %v525_v55 = vmul.f32 0.2, %v493_v58  ;;  %v526_v57 = vmul.f32 0.2, %v494_v39 }
 0x188   :  { %v527_v60 = vmul.f32 0.2, %v495_v3  ;;  %v528_v61 = vmul.f32 0.2, %v496_v40  ;;  %v529_v43 = vmul.f32 0.2, %v497_v8  ;;  %v533_v53 = vsel %vm501_vm4, %v485_v32, %v517_v44 }
 0x189   :  { %v534_v59 = vsel %vm502_vm5, %v486_v33, %v518_v45  ;;  %v535_v5 = vsel %vm503_vm6, %v487_v36, %v519_v46  ;;  %vm1175_vm1 = vcmp.ge.f32.partialorder %v488_v34, 0.0  ;;  %v537_v12 = vsel %vm505_vm8, %v489_v42, %v521_v48 }
 0x18a   :  { %v536_v11 = vsel %vm1175_vm1, %v488_v34, %v520_v47  ;;  %v538_v13 = vsel %vm506_vm9, %v490_v35, %v522_v49  ;;  %v539_v14 = vsel %vm507_vm10, %v491_v51, %v523_v52  ;;  %v540_v15 = vsel %vm508_vm11, %v492_v37, %v524_v54 }
 0x18b   :  { %v541_v16 = vsel %vm509_vm12, %v493_v58, %v525_v55  ;;  %v542_v17 = vsel %vm510_vm13, %v494_v39, %v526_v57  ;;  %v543_v18 = vsel %vm511_vm14, %v495_v3, %v527_v60  ;;  %v544_v19 = vsel %vm512_vm15, %v496_v40, %v528_v61 }
 0x18c   :  { %v545_v20 = vsel %vm513_vm0, %v497_v8, %v529_v43  ;;  %v680_v21 = vpack.c.bf16 %v530_v50, %v530_v50  ;;  %v681_v22 = vpack.c.bf16 %v531_v56, %v531_v56  ;;  %v682_v23 = vpack.c.bf16 %v532_v38, %v532_v38 }
 0x18d   :  { %v683_v24 = vpack.c.bf16 %v533_v53, %v533_v53  ;;  %v684_v25 = vpack.c.bf16 %v534_v59, %v534_v59  ;;  %v685_v26 = vpack.c.bf16 %v535_v5, %v535_v5  ;;  %v686_v27 = vpack.c.bf16 %v536_v11, %v536_v11 }
 0x18e   :  { %v687_v28 = vpack.c.bf16 %v537_v12, %v537_v12  ;;  %v688_v62 = vpack.c.bf16 %v538_v13, %v538_v13  ;;  %v689_v63 = vpack.c.bf16 %v539_v14, %v539_v14  ;;  %vm1176_vm1 = vcmask 257024  }
 0x18f   :  { %611 = vst.msk [vmem:[%s1173_s4] sm:$0xf] %vm1176_vm1, %v680_v21  ;;  %vm1177_vm2 = vmmov %vm1176_vm1  ;;  %v690_v0 = vpack.c.bf16 %v540_v15, %v540_v15  ;;  %v691_v1 = vpack.c.bf16 %v541_v16, %v541_v16  ;;  %v692_v2 = vpack.c.bf16 %v542_v17, %v542_v17  ;;  %v693_v4 = vpack.c.bf16 %v543_v18, %v543_v18 }
 0x190   :  { %612 = vst.msk [vmem:[%s1173_s4 + $0x4] sm:$0xf] %vm1177_vm2, %v681_v22  ;;  %vm1178_vm3 = vmmov %vm1176_vm1  ;;  %v694_v6 = vpack.c.bf16 %v544_v19, %v544_v19  ;;  %v695_v7 = vpack.c.bf16 %v545_v20, %v545_v20 }
 0x191   :  { %613 = vst.msk [vmem:[%s1173_s4 + $0x8] sm:$0xf] %vm1178_vm3, %v682_v23  ;;  %vm1179_vm4 = vmmov %vm1176_vm1 }
 0x192   :  { %614 = vst.msk [vmem:[%s1173_s4 + $0xc] sm:$0xf] %vm1179_vm4, %v683_v24  ;;  %vm1180_vm5 = vmmov %vm1176_vm1 }
 0x193   :  { %615 = vst.msk [vmem:[%s1173_s4 + $0x10] sm:$0xf] %vm1180_vm5, %v684_v25  ;;  %vm1181_vm6 = vmmov %vm1176_vm1 }
 0x194   :  { %616 = vst.msk [vmem:[%s1173_s4 + $0x14] sm:$0xf] %vm1181_vm6, %v685_v26  ;;  %vm1182_vm7 = vmmov %vm1176_vm1 }
 0x195   :  { %617 = vst.msk [vmem:[%s1173_s4 + $0x18] sm:$0xf] %vm1182_vm7, %v686_v27  ;;  %vm1183_vm8 = vmmov %vm1176_vm1 }
 0x196   :  { %618 = vst.msk [vmem:[%s1173_s4 + $0x1c] sm:$0xf] %vm1183_vm8, %v687_v28  ;;  %vm1184_vm9 = vmmov %vm1176_vm1 }
 0x197   :  { %619 = vst.msk [vmem:[%s1173_s4 + $0x20] sm:$0xf] %vm1184_vm9, %v688_v62  ;;  %vm1185_vm10 = vmmov %vm1176_vm1 }
 0x198   :  { %620 = vst.msk [vmem:[%s1173_s4 + $0x24] sm:$0xf] %vm1185_vm10, %v689_v63  ;;  %vm1186_vm11 = vmmov %vm1176_vm1 }
 0x199   :  { %621 = vst.msk [vmem:[%s1173_s4 + $0x28] sm:$0xf] %vm1186_vm11, %v690_v0  ;;  %vm1187_vm12 = vmmov %vm1176_vm1 }
 0x19a   :  { %622 = vst.msk [vmem:[%s1173_s4 + $0x2c] sm:$0xf] %vm1187_vm12, %v691_v1  ;;  %vm1188_vm13 = vmmov %vm1176_vm1 }
 0x19b   :  { %623 = vst.msk [vmem:[%s1173_s4 + $0x30] sm:$0xf] %vm1188_vm13, %v692_v2  ;;  %vm1189_vm14 = vmmov %vm1176_vm1 }
 0x19c   :  { %624 = vst.msk [vmem:[%s1173_s4 + $0x34] sm:$0xf] %vm1189_vm14, %v693_v4  ;;  %vm1190_vm15 = vmmov %vm1176_vm1 }
 0x19d   :  { %625 = vst.msk [vmem:[%s1173_s4 + $0x38] sm:$0xf] %vm1190_vm15, %v694_v6  ;;  %vm1191_vm0 = vmmov %vm1176_vm1 }
 0x19e   :  { %626 = vst.msk [vmem:[%s1173_s4 + $0x3c] sm:$0xf] %vm1191_vm0, %v695_v7 }

// kernel: discriminator_forward.8
= control target key start
LH: loop header
LB: loop body
LE: loop exit
PB: predicated region body
PF: predicated region fallthrough
CT: control target
= control target key end

     0   :  { %vm420_vm0 = vcmask 523264   ;;  %vm511_vm5 = vcmask 519168   ;;  %s842_s1 = inlined_call_operand.vmem [shape: bf16[512,64], index: 1, kind: input, shape index: {}]   ;;  %s843_s0 = inlined_call_operand.vmem [shape: bf16[32,512], index: 0, kind: input, shape index: {}]   ;;  %s844_s2 = inlined_call_operand.vmem [shape: f32[1,64], index: 2, kind: input, shape index: {}]   ;;  %s845_s3 = inlined_call_operand.vmem [shape: f32[1,64], index: 3, kind: input, shape index: {}]   ;;  %s846_s4 = inlined_call_operand.vmem [shape: bf16[32,64], index: 4, kind: output, shape index: {}]  }
   0x1   :  { %v625_v0 = vld [vmem:[%s842_s1 + $0x40] sm:$0xff]   ;;  %v629_v4 = vld [vmem:[%s842_s1 + $0x48] sm:$0xff]   ;;  %v633_v8 = vld [vmem:[%s842_s1 + $0x50] sm:$0xff]  }
   0x2   :  { %v626_v1 = vld [vmem:[%s842_s1 + $0xc0] sm:$0xff]   ;;  %569 = vmatprep.subr.bf16.mxu0 %v625_v0  ;;  %v630_v5 = vld [vmem:[%s842_s1 + $0xc8] sm:$0xff]   ;;  %v634_v9 = vld [vmem:[%s842_s1 + $0xd0] sm:$0xff]  }
   0x3   :  { %v627_v2 = vld [vmem:[%s842_s1] sm:$0xff]   ;;  %597 = vmatprep.subr.bf16.mxu1 %v626_v1  ;;  %v631_v6 = vld [vmem:[%s842_s1 + $0x8] sm:$0xff]   ;;  %v635_v10 = vld [vmem:[%s842_s1 + $0x10] sm:$0xff]  }
   0x4   :  { %v628_v3 = vld [vmem:[%s842_s1 + $0x80] sm:$0xff]   ;;  %570 = vmatpush3.bf16.msra.mxu0 %v627_v2  ;;  %v632_v7 = vld [vmem:[%s842_s1 + $0x88] sm:$0xff]   ;;  %v636_v11 = vld [vmem:[%s842_s1 + $0x90] sm:$0xff]  }
   0x5   :  { %598 = vmatpush3.bf16.msra.mxu1 %v628_v3  ;;  %571 = vmatprep.subr.bf16.mxu0 %v629_v4  ;;  %v637_v12 = vld [vmem:[%s842_s1 + $0x58] sm:$0xff]   ;;  %v641_v16 = vld [vmem:[%s842_s1 + $0x60] sm:$0xff]   ;;  %v645_v20 = vld [vmem:[%s842_s1 + $0x68] sm:$0xff]  }
   0x6   :  { %599 = vmatprep.subr.bf16.mxu1 %v630_v5  ;;  %v638_v13 = vld [vmem:[%s842_s1 + $0xd8] sm:$0xff]   ;;  %v642_v17 = vld [vmem:[%s842_s1 + $0xe0] sm:$0xff]   ;;  %v646_v21 = vld [vmem:[%s842_s1 + $0xe8] sm:$0xff]  }
   0x7   :  { %v639_v14 = vld [vmem:[%s842_s1 + $0x18] sm:$0xff]   ;;  %v643_v18 = vld [vmem:[%s842_s1 + $0x20] sm:$0xff]   ;;  %v647_v22 = vld [vmem:[%s842_s1 + $0x28] sm:$0xff]  }
   0x8   :  { %572 = vmatpush3.bf16.msra.mxu0 %v631_v6  ;;  %v640_v15 = vld [vmem:[%s842_s1 + $0x98] sm:$0xff]   ;;  %v644_v19 = vld [vmem:[%s842_s1 + $0xa0] sm:$0xff]   ;;  %v648_v23 = vld [vmem:[%s842_s1 + $0xa8] sm:$0xff]  }
   0x9   :  { %600 = vmatpush3.bf16.msra.mxu1 %v632_v7  ;;  %573 = vmatprep.subr.bf16.mxu0 %v633_v8  ;;  %v649_v24 = vld [vmem:[%s842_s1 + $0x70] sm:$0xff]   ;;  %v653_v28 = vld [vmem:[%s842_s1 + $0x78] sm:$0xff]  }
   0xa   :  { %601 = vmatprep.subr.bf16.mxu1 %v634_v9  ;;  %v650_v25 = vld [vmem:[%s842_s1 + $0xf0] sm:$0xff]   ;;  %v654_v29 = vld [vmem:[%s842_s1 + $0xf8] sm:$0xff]  }
   0xb   :  { %v651_v26 = vld [vmem:[%s842_s1 + $0x30] sm:$0xff]   ;;  %v655_v30 = vld [vmem:[%s842_s1 + $0x38] sm:$0xff]  }
   0xc   :  { %574 = vmatpush3.bf16.msra.mxu0 %v635_v10  ;;  %v652_v27 = vld [vmem:[%s842_s1 + $0xb0] sm:$0xff]   ;;  %v656_v31 = vld [vmem:[%s842_s1 + $0xb8] sm:$0xff]  }
   0xd   :  { %602 = vmatpush3.bf16.msra.mxu1 %v636_v11  ;;  %575 = vmatprep.subr.bf16.mxu0 %v637_v12  ;;  %v657_v32 = vld [vmem:[%s843_s0] ss:$16 sps:$4 sm:$0xff]   ;;  %v659_v33 = vld [vmem:[%s843_s0 + $0x4] ss:$16 sps:$4 sm:$0xff]   ;;  %v660_v34 = vld [vmem:[%s843_s0 + $0x8] ss:$16 sps:$4 sm:$0xff]  }
   0xe   :  { %603 = vmatprep.subr.bf16.mxu1 %v638_v13  ;;  %v662_v35 = vld [vmem:[%s843_s0 + $0xc] ss:$16 sps:$4 sm:$0xff]   ;;  %354 = vmatprep.mubr.bf16.mxu0 %v659_v33  ;;  %v663_v36 = vld [vmem:[%s843_s0 + $0x24] ss:$16 sps:$4 sm:$0xff]   ;;  %v667_v38 = vld [vmem:[%s843_s0 + $0x20] ss:$16 sps:$4 sm:$0xff]  }
   0xf   :  { %403 = vmatprep.mubr.bf16.mxu1 %v662_v35  ;;  %v665_v37 = vld [vmem:[%s843_s0 + $0x2c] ss:$16 sps:$4 sm:$0xff]   ;;  %v668_v39 = vld [vmem:[%s843_s0 + $0x28] ss:$16 sps:$4 sm:$0xff]  }
  0x10   :  { %576 = vmatpush3.bf16.msra.mxu0 %v639_v14 }
  0x11   :  { %604 = vmatpush3.bf16.msra.mxu1 %v640_v15  ;;  %577 = vmatprep.subr.bf16.mxu0 %v641_v16 }
  0x12   :  { %605 = vmatprep.subr.bf16.mxu1 %v642_v17 }
  0x14   :  { %578 = vmatpush3.bf16.msra.mxu0 %v643_v18 }
  0x15   :  { %606 = vmatpush3.bf16.msra.mxu1 %v644_v19  ;;  %579 = vmatprep.subr.bf16.mxu0 %v645_v20 }
  0x16   :  { %607 = vmatprep.subr.bf16.mxu1 %v646_v21 }
  0x18   :  { %580 = vmatpush3.bf16.msra.mxu0 %v647_v22 }
  0x19   :  { %608 = vmatpush3.bf16.msra.mxu1 %v648_v23  ;;  %581 = vmatprep.subr.bf16.mxu0 %v649_v24 }
  0x1a   :  { %609 = vmatprep.subr.bf16.mxu1 %v650_v25 }
  0x1c   :  { %582 = vmatpush3.bf16.msra.mxu0 %v651_v26 }
  0x1d   :  { %610 = vmatpush3.bf16.msra.mxu1 %v652_v27  ;;  %583 = vmatprep.subr.bf16.mxu0 %v653_v28 }
  0x1e   :  { %611 = vmatprep.subr.bf16.mxu1 %v654_v29 }
  0x20   :  { %584 = vmatpush3.bf16.msra.mxu0 %v655_v30 }
  0x21   :  { %612 = vmatpush3.bf16.msra.mxu1 %v656_v31 }
  0x23   :  { %355 = vmatmul.mubr.bf16.vlgmr.msra.gmra.mrb[0].mxu0 %v657_v32 }
  0x24   :  { %404 = vmatmul.mubr.bf16.vlgmr.msra.gmra.mrb[0].mxu1 %v660_v34  ;;  %362 = vmatprep.mubr.bf16.mxu0 %v663_v36 }
  0x25   :  { %411 = vmatprep.mubr.bf16.mxu1 %v665_v37 }
  0x2b   :  { %363 = vmatmul.mubr.bf16.gmra.mrb[4].mxu0 %v667_v38 }
  0x2c   :  { %412 = vmatmul.mubr.bf16.gmra.mrb[4].mxu1 %v668_v39 }
  0xf6   :  { %v585_v40 = vpop.f32.mrb[0].mxu0 }
  0xf7   :  { %v613_v41 = vpop.f32.mrb[0].mxu1  ;;  %v586_v42 = vpop.f32.mrb[1].mxu0 }
  0xf8   :  { %v587_v43 = vadd.f32 %v586_v42, %v585_v40  ;;  %v614_v44 = vpop.f32.mrb[1].mxu1  ;;  %v588_v45 = vpop.f32.mrb[2].mxu0 }
  0xf9   :  { %v615_v46 = vadd.f32 %v614_v44, %v613_v41  ;;  %v616_v47 = vpop.f32.mrb[2].mxu1  ;;  %v589_v48 = vpop.f32.mrb[3].mxu0  ;;  %v463_v41 = vlaneseq }
  0xfa   :  { %v590_v49 = vadd.f32 %v589_v48, %v588_v45  ;;  %v617_v50 = vpop.f32.mrb[3].mxu1  ;;  %v560_v48 = vld [vmem:[%s845_s3] ss:$0 sm:$0xff] }
  0xfb   :  { %v406_v51 = vadd.f32 %v615_v46, %v587_v43  ;;  %v618_v52 = vadd.f32 %v617_v50, %v616_v47  ;;  %v464_v42 = vshrl.u32 %v463_v41, 7  ;;  %v458_v43 = vld [vmem:[%s844_s2] sm:$0x1] }
  0xfd   :  { %v409_v53 = vadd.f32 %v618_v52, %v590_v49  ;;  %v421_v55 = vsel %vm420_vm0, %v406_v51, 0.0  ;;  %v465_v44 = vsub.s32 0, %v464_v42 }
  0xfe   :  { %v591_v54 = vpop.f32.mrb[4].mxu0 }
  0xff   :  { %v422_v56 = vsel %vm420_vm0, %v409_v53, 0.0  ;;  %v619_v57 = vpop.f32.mrb[4].mxu1  ;;  %v592_v58 = vpop.f32.mrb[5].mxu0 }
 0x100   :  { %v423_v59 = vadd.f32 %v422_v56, %v421_v55  ;;  %v593_v60 = vadd.f32 %v592_v58, %v591_v54  ;;  %v620_v61 = vpop.f32.mrb[5].mxu1  ;;  %v594_v62 = vpop.f32.mrb[6].mxu0 }
 0x101   :  { %v621_v63 = vadd.f32 %v620_v61, %v619_v57  ;;  %v622_v0 = vpop.f32.mrb[6].mxu1  ;;  %v595_v1 = vpop.f32.mrb[7].mxu0 }
 0x102   :  { %v596_v2 = vadd.f32 %v595_v1, %v594_v62  ;;  %v623_v3 = vpop.f32.mrb[7].mxu1 }
 0x103   :  { %v414_v4 = vadd.f32 %v621_v63, %v593_v60  ;;  %v624_v5 = vadd.f32 %v623_v3, %v622_v0 }
 0x105   :  { %v424_v6 = vsel %vm420_vm0, %v414_v4, 0.0  ;;  %v417_v7 = vadd.f32 %v624_v5, %v596_v2 }
 0x106   :  { %v425_v8 = vadd.f32 %v424_v6, %v423_v59 }
 0x107   :  { %v426_v9 = vsel %vm420_vm0, %v417_v7, 0.0 }
 0x108   :  { %v427_v10 = vadd.f32 %v426_v9, %v425_v8 }
 0x10a   :  { %v428_v11 = vrot.slane %v427_v10, 4 }
 0x10c   :  { %v429_v12 = vadd.f32 %v428_v11, %v427_v10 }
 0x10e   :  { %v430_v13 = vrot.slane %v429_v12, 2 }
 0x110   :  { %v431_v14 = vadd.f32 %v430_v13, %v429_v12 }
 0x112   :  { %v432_v15 = vrot.slane %v431_v14, 1 }
 0x114   :  { %v433_v16 = vadd.f32 %v432_v15, %v431_v14 }
 0x116   :  { %v435_v17 = vmul.f32 0.03125, %v433_v16 }
 0x118   :  { %v436_v18 = vsub.f32 %v406_v51, %v435_v17  ;;  %v437_v19 = vsub.f32 %v409_v53, %v435_v17  ;;  %v438_v20 = vsub.f32 %v414_v4, %v435_v17  ;;  %v439_v21 = vsub.f32 %v417_v7, %v435_v17 }
 0x11a   :  { %v440_v22 = vmul.f32 %v436_v18, %v436_v18  ;;  %v441_v23 = vmul.f32 %v437_v19, %v437_v19  ;;  %v442_v24 = vmul.f32 %v438_v20, %v438_v20  ;;  %v443_v25 = vmul.f32 %v439_v21, %v439_v21 }
 0x11c   :  { %v444_v26 = vsel %vm420_vm0, %v440_v22, 0.0  ;;  %v445_v27 = vsel %vm420_vm0, %v441_v23, 0.0  ;;  %v447_v29 = vsel %vm420_vm0, %v442_v24, 0.0  ;;  %v449_v31 = vsel %vm420_vm0, %v443_v25, 0.0 }
 0x11d   :  { %v446_v28 = vadd.f32 %v445_v27, %v444_v26 }
 0x11f   :  { %v448_v30 = vadd.f32 %v447_v29, %v446_v28 }
 0x121   :  { %v450_v32 = vadd.f32 %v449_v31, %v448_v30 }
 0x123   :  { %v451_v33 = vrot.slane %v450_v32, 4 }
 0x125   :  { %v452_v34 = vadd.f32 %v451_v33, %v450_v32 }
 0x127   :  { %v453_v35 = vrot.slane %v452_v34, 2 }
 0x129   :  { %v454_v36 = vadd.f32 %v453_v35, %v452_v34 }
 0x12b   :  { %v455_v37 = vrot.slane %v454_v36, 1 }
 0x12d   :  { %v456_v38 = vadd.f32 %v455_v37, %v454_v36 }
 0x12f   :  { %v457_v39 = vmul.f32 0.03125, %v456_v38 }
 0x131   :  { %v459_v40 = vadd.f32 1e-05, %v457_v39 }
 0x133   :  { %669 = vrsqrt.f32 %v459_v40 }
 0x13d   :  { %v670_v45 = vpop.eup %669 }
 0x13e   :  { %v461_v46 = vmul.f32 %v670_v45, %v458_v43 }
 0x140   :  { %v466_v47 = vrot.slane %v461_v46, %v465_v44 }
 0x142   :  { %v468_v49 = vmul.f32 %v466_v47, %v436_v18  ;;  %v469_v50 = vmul.f32 %v466_v47, %v437_v19  ;;  %v470_v51 = vmul.f32 %v466_v47, %v438_v20  ;;  %v471_v52 = vmul.f32 %v466_v47, %v439_v21 }
 0x144   :  { %v479_v53 = vadd.f32 %v560_v48, %v468_v49  ;;  %v480_v54 = vadd.f32 %v560_v48, %v469_v50  ;;  %v481_v55 = vadd.f32 %v560_v48, %v470_v51  ;;  %v482_v56 = vadd.f32 %v560_v48, %v471_v52 }
 0x146   :  { %vm483_vm1 = vcmp.ge.f32.partialorder %v479_v53, 0.0  ;;  %vm484_vm2 = vcmp.ge.f32.partialorder %v480_v54, 0.0  ;;  %vm485_vm3 = vcmp.ge.f32.partialorder %v481_v55, 0.0  ;;  %vm486_vm4 = vcmp.ge.f32.partialorder %v482_v56, 0.0 }
 0x147   :  { %v487_v57 = vmul.f32 0.2, %v479_v53  ;;  %v488_v58 = vmul.f32 0.2, %v480_v54  ;;  %v489_v59 = vmul.f32 0.2, %v481_v55 }
 0x148   :  { %v490_v60 = vmul.f32 0.2, %v482_v56 }
 0x149   :  { %v491_v61 = vsel %vm483_vm1, %v479_v53, %v487_v57  ;;  %v492_v62 = vsel %vm484_vm2, %v480_v54, %v488_v58  ;;  %v493_v63 = vsel %vm485_vm3, %v481_v55, %v489_v59 }
 0x14a   :  { %v494_v0 = vsel %vm486_vm4, %v482_v56, %v490_v60  ;;  %v565_v1 = vpack.c.bf16 %v491_v61, %v491_v61  ;;  %v566_v2 = vpack.c.bf16 %v492_v62, %v492_v62  ;;  %v567_v3 = vpack.c.bf16 %v493_v63, %v493_v63 }
 0x14b   :  { %v568_v4 = vpack.c.bf16 %v494_v0, %v494_v0 }
 0x14c   :  { %512 = vst.msk [vmem:[%s846_s4] sm:$0xf] %vm511_vm5, %v565_v1  ;;  %513 = vst.msk [vmem:[%s846_s4 + $0x4] sm:$0xf] %vm511_vm5, %v566_v2 }
 0x14d   :  { %514 = vst.msk [vmem:[%s846_s4 + $0x8] sm:$0xf] %vm511_vm5, %v567_v3  ;;  %515 = vst.msk [vmem:[%s846_s4 + $0xc] sm:$0xf] %vm511_vm5, %v568_v4 }

// kernel: discriminator_forward.9
= control target key start
LH: loop header
LB: loop body
LE: loop exit
PB: predicated region body
PF: predicated region fallthrough
CT: control target
= control target key end

     0   :  { %v165_v28 = vlaneseq  ;;  %v1204_v36 = vmov 1966171168   ;;  %s1497_s0 = inlined_call_operand.vmem [shape: bf16[2,1024], index: 0, kind: input, shape index: {}]   ;;  %s1498_s1 = inlined_call_operand.vmem [shape: bf16[1024,128], index: 1, kind: input, shape index: {}]   ;;  %s1499_s2 = inlined_call_operand.vmem [shape: f32[1,128], index: 2, kind: input, shape index: {}]   ;;  %s1500_s3 = inlined_call_operand.vmem [shape: bf16[128,10], index: 3, kind: input, shape index: {}]   ;;  %s1501_s4 = inlined_call_operand.vmem [shape: f32[1,10], index: 4, kind: input, shape index: {}]   ;;  %s1502_s5 = inlined_call_operand.vmem [shape: f32[2,1], index: 5, kind: output, shape index: {0}]   ;;  %s1503_s6 = inlined_call_operand.hbm [shape: f32[2,10], index: 6, kind: output, shape index: {1}]  }
   0x1   :  { %v1103_v0 = vld [vmem:[%s1498_s1 + $0x40] sm:$0xff]   ;;  %v1107_v4 = vld [vmem:[%s1498_s1 + $0x48] sm:$0xff]   ;;  %v1111_v8 = vld [vmem:[%s1498_s1 + $0x50] sm:$0xff]   ;;  %v163_v37 = vunpack.c.l.s4 %v1204_v36 }
   0x2   :  { %v1104_v1 = vld [vmem:[%s1498_s1 + $0xc0] sm:$0xff]   ;;  %981 = vmatprep.subr.bf16.mxu0 %v1103_v0  ;;  %v1108_v5 = vld [vmem:[%s1498_s1 + $0xc8] sm:$0xff]   ;;  %v1112_v9 = vld [vmem:[%s1498_s1 + $0xd0] sm:$0xff]   ;;  %v166_v33 = vshrl.u32 %v165_v28, 7 }
   0x3   :  { %v1105_v2 = vld [vmem:[%s1498_s1] sm:$0xff]   ;;  %1003 = vmatprep.subr.bf16.mxu1 %v1104_v1  ;;  %v1109_v6 = vld [vmem:[%s1498_s1 + $0x8] sm:$0xff]   ;;  %v1113_v10 = vld [vmem:[%s1498_s1 + $0x10] sm:$0xff]   ;;  %v164_v40 = vunpack.c.0.s8 %v163_v37 }
   0x4   :  { %v1106_v3 = vld [vmem:[%s1498_s1 + $0x80] sm:$0xff]   ;;  %982 = vmatpush3.bf16.msra.mxu0 %v1105_v2  ;;  %v1110_v7 = vld [vmem:[%s1498_s1 + $0x88] sm:$0xff]   ;;  %v1114_v11 = vld [vmem:[%s1498_s1 + $0x90] sm:$0xff]  }
   0x5   :  { %1004 = vmatpush3.bf16.msra.mxu1 %v1106_v3  ;;  %983 = vmatprep.subr.bf16.mxu0 %v1107_v4  ;;  %v1115_v12 = vld [vmem:[%s1498_s1 + $0x58] sm:$0xff]   ;;  %v1119_v16 = vld [vmem:[%s1498_s1 + $0x60] sm:$0xff]   ;;  %v1123_v20 = vld [vmem:[%s1498_s1 + $0x68] sm:$0xff]   ;;  %v1349_v41 = vsub.s32 %v164_v40, %v166_v33 }
   0x6   :  { %1005 = vmatprep.subr.bf16.mxu1 %v1108_v5  ;;  %v1116_v13 = vld [vmem:[%s1498_s1 + $0xd8] sm:$0xff]   ;;  %v1120_v17 = vld [vmem:[%s1498_s1 + $0xe0] sm:$0xff]   ;;  %v1124_v21 = vld [vmem:[%s1498_s1 + $0xe8] sm:$0xff]  }
   0x7   :  { %v1117_v14 = vld [vmem:[%s1498_s1 + $0x18] sm:$0xff]   ;;  %v1121_v18 = vld [vmem:[%s1498_s1 + $0x20] sm:$0xff]   ;;  %v1125_v22 = vld [vmem:[%s1498_s1 + $0x28] sm:$0xff]  }
   0x8   :  { %984 = vmatpush3.bf16.msra.mxu0 %v1109_v6  ;;  %v1118_v15 = vld [vmem:[%s1498_s1 + $0x98] sm:$0xff]   ;;  %v1122_v19 = vld [vmem:[%s1498_s1 + $0xa0] sm:$0xff]   ;;  %v1126_v23 = vld [vmem:[%s1498_s1 + $0xa8] sm:$0xff]  }
   0x9   :  { %1006 = vmatpush3.bf16.msra.mxu1 %v1110_v7  ;;  %985 = vmatprep.subr.bf16.mxu0 %v1111_v8  ;;  %v1127_v24 = vld [vmem:[%s1498_s1 + $0x70] sm:$0xff]   ;;  %v1131_v29 = vld [vmem:[%s1498_s1 + $0x78] sm:$0xff]   ;;  %v24_v34 = vld [vmem:[%s1497_s0] sm:$0xff] }
   0xa   :  { %1007 = vmatprep.subr.bf16.mxu1 %v1112_v9  ;;  %v1128_v25 = vld [vmem:[%s1498_s1 + $0xf0] sm:$0xff]   ;;  %v1132_v30 = vld [vmem:[%s1498_s1 + $0xf8] sm:$0xff]   ;;  %v1136_v35 = vld [vmem:[%s1498_s1 + $0x140] sm:$0xff]   ;;  %v161_v39 = vcombine.high %v24_v34, %v24_v34  ;;  %v168_v42 = vrot.slane %v24_v34, %v1349_v41 }
   0xb   :  { %v1129_v26 = vld [vmem:[%s1498_s1 + $0x30] sm:$0xff]   ;;  %v1133_v31 = vld [vmem:[%s1498_s1 + $0x38] sm:$0xff]   ;;  %v1137_v38 = vld [vmem:[%s1498_s1 + $0x1c0] sm:$0xff]  }
   0xc   :  { %986 = vmatpush3.bf16.msra.mxu0 %v1113_v10  ;;  %v1130_v27 = vld [vmem:[%s1498_s1 + $0xb0] sm:$0xff]   ;;  %v1134_v32 = vld [vmem:[%s1498_s1 + $0xb8] sm:$0xff]   ;;  %v1353_v43 = vrot.slane %v161_v39, %v1349_v41  ;;  %v176_v44 = vcombine.high %v168_v42, %v168_v42  ;;  %v184_v45 = vrot.slane %v168_v42, %v1349_v41  ;;  %v1138_v47 = vld [vmem:[%s1498_s1 + $0x100] sm:$0xff]  }
   0xd   :  { %1008 = vmatpush3.bf16.msra.mxu1 %v1114_v11  ;;  %987 = vmatprep.subr.bf16.mxu0 %v1115_v12  ;;  %v1139_v49 = vld [vmem:[%s1498_s1 + $0x180] sm:$0xff]   ;;  %v1140_v52 = vld [vmem:[%s1498_s1 + $0x148] sm:$0xff]   ;;  %v1144_v58 = vld [vmem:[%s1498_s1 + $0x150] sm:$0xff]  }
   0xe   :  { %1009 = vmatprep.subr.bf16.mxu1 %v1116_v13  ;;  %v177_v46 = vcombine.high %v1353_v43, %v1353_v43  ;;  %v198_v48 = vrot.slane %v176_v44, %v1349_v41  ;;  %v206_v51 = vcombine.high %v184_v45, %v184_v45  ;;  %v1141_v54 = vld [vmem:[%s1498_s1 + $0x1c8] sm:$0xff]   ;;  %v1145_v59 = vld [vmem:[%s1498_s1 + $0x1d0] sm:$0xff]   ;;  %v1148_v62 = vld [vmem:[%s1498_s1 + $0x158] sm:$0xff]  }
   0xf   :  { %v1142_v55 = vld [vmem:[%s1498_s1 + $0x108] sm:$0xff]   ;;  %v1146_v60 = vld [vmem:[%s1498_s1 + $0x110] sm:$0xff]   ;;  %v1149_v63 = vld [vmem:[%s1498_s1 + $0x1d8] sm:$0xff]  }
  0x10   :  { %988 = vmatpush3.bf16.msra.mxu0 %v1117_v14  ;;  %v205_v50 = vrot.slane %v177_v46, %v1349_v41  ;;  %634 = vmatprep.mubr.bf16.mxu0 %v198_v48  ;;  %v208_v53 = vcombine.high %v198_v48, %v198_v48  ;;  %v1143_v57 = vld [vmem:[%s1498_s1 + $0x188] sm:$0xff]   ;;  %v1147_v61 = vld [vmem:[%s1498_s1 + $0x190] sm:$0xff]   ;;  %v1150_v0 = vld [vmem:[%s1498_s1 + $0x118] sm:$0xff]  }
  0x11   :  { %1010 = vmatpush3.bf16.msra.mxu1 %v1118_v15  ;;  %989 = vmatprep.subr.bf16.mxu0 %v1119_v16  ;;  %v1151_v1 = vld [vmem:[%s1498_s1 + $0x198] sm:$0xff]   ;;  %v1152_v2 = vld [vmem:[%s1498_s1 + $0x160] sm:$0xff]   ;;  %v1156_v6 = vld [vmem:[%s1498_s1 + $0x168] sm:$0xff]  }
  0x12   :  { %1011 = vmatprep.subr.bf16.mxu1 %v1120_v17  ;;  %v209_v56 = vcombine.high %v205_v50, %v205_v50  ;;  %674 = vmatprep.mubr.bf16.mxu1 %v208_v53  ;;  %v1153_v3 = vld [vmem:[%s1498_s1 + $0x1e0] sm:$0xff]   ;;  %v1157_v7 = vld [vmem:[%s1498_s1 + $0x1e8] sm:$0xff]   ;;  %v1160_v10 = vld [vmem:[%s1498_s1 + $0x170] sm:$0xff]  }
  0x13   :  { %v1154_v4 = vld [vmem:[%s1498_s1 + $0x120] sm:$0xff]   ;;  %v1158_v8 = vld [vmem:[%s1498_s1 + $0x128] sm:$0xff]   ;;  %v1161_v11 = vld [vmem:[%s1498_s1 + $0x1f0] sm:$0xff]  }
  0x14   :  { %990 = vmatpush3.bf16.msra.mxu0 %v1121_v18  ;;  %v1155_v5 = vld [vmem:[%s1498_s1 + $0x1a0] sm:$0xff]   ;;  %v1159_v9 = vld [vmem:[%s1498_s1 + $0x1a8] sm:$0xff]   ;;  %v1162_v12 = vld [vmem:[%s1498_s1 + $0x130] sm:$0xff]  }
  0x15   :  { %1012 = vmatpush3.bf16.msra.mxu1 %v1122_v19  ;;  %991 = vmatprep.subr.bf16.mxu0 %v1123_v20  ;;  %v1164_v13 = vld [vmem:[%s1498_s1 + $0x178] sm:$0xff]   ;;  %v1163_v14 = vld [vmem:[%s1498_s1 + $0x1b0] sm:$0xff]  }
  0x16   :  { %1013 = vmatprep.subr.bf16.mxu1 %v1124_v21 }
  0x18   :  { %992 = vmatpush3.bf16.msra.mxu0 %v1125_v22 }
  0x19   :  { %1014 = vmatpush3.bf16.msra.mxu1 %v1126_v23  ;;  %993 = vmatprep.subr.bf16.mxu0 %v1127_v24 }
  0x1a   :  { %1015 = vmatprep.subr.bf16.mxu1 %v1128_v25 }
  0x1c   :  { %994 = vmatpush3.bf16.msra.mxu0 %v1129_v26 }
  0x1d   :  { %1016 = vmatpush3.bf16.msra.mxu1 %v1130_v27  ;;  %995 = vmatprep.subr.bf16.mxu0 %v1131_v29 }
  0x1e   :  { %1017 = vmatprep.subr.bf16.mxu1 %v1132_v30 }
  0x20   :  { %996 = vmatpush3.bf16.msra.mxu0 %v1133_v31 }
  0x21   :  { %1018 = vmatpush3.bf16.msra.mxu1 %v1134_v32  ;;  %1025 = vmatprep.subr.bf16.mxu0 %v1136_v35 }
  0x22   :  { %1047 = vmatprep.subr.bf16.mxu1 %v1137_v38 }
  0x23   :  { %635 = vmatmul.mubr.bf16.vlgmr.msra.gmra.mrb[0].mxu0 %v184_v45 }
  0x24   :  { %1026 = vmatpush3.bf16.msra.mxu0 %v1138_v47  ;;  %675 = vmatmul.mubr.bf16.vlgmr.msra.gmra.mrb[0].mxu1 %v206_v51 }
  0x25   :  { %1027 = vmatprep.subr.bf16.mxu0 %v1140_v52  ;;  %1048 = vmatpush3.bf16.msra.mxu1 %v1139_v49 }
  0x26   :  { %714 = vmatprep.mubr.bf16.mxu0 %v205_v50  ;;  %1049 = vmatprep.subr.bf16.mxu1 %v1141_v54 }
  0x27   :  { %754 = vmatprep.mubr.bf16.mxu1 %v209_v56 }
  0x28   :  { %1028 = vmatpush3.bf16.msra.mxu0 %v1142_v55 }
  0x29   :  { %1029 = vmatprep.subr.bf16.mxu0 %v1144_v58  ;;  %1050 = vmatpush3.bf16.msra.mxu1 %v1143_v57 }
  0x2a   :  { %1051 = vmatprep.subr.bf16.mxu1 %v1145_v59 }
  0x2c   :  { %1030 = vmatpush3.bf16.msra.mxu0 %v1146_v60 }
  0x2d   :  { %1031 = vmatprep.subr.bf16.mxu0 %v1148_v62  ;;  %1052 = vmatpush3.bf16.msra.mxu1 %v1147_v61 }
  0x2e   :  { %1053 = vmatprep.subr.bf16.mxu1 %v1149_v63 }
  0x30   :  { %1032 = vmatpush3.bf16.msra.mxu0 %v1150_v0 }
  0x31   :  { %1033 = vmatprep.subr.bf16.mxu0 %v1152_v2  ;;  %1054 = vmatpush3.bf16.msra.mxu1 %v1151_v1 }
  0x32   :  { %1055 = vmatprep.subr.bf16.mxu1 %v1153_v3 }
  0x34   :  { %1034 = vmatpush3.bf16.msra.mxu0 %v1154_v4 }
  0x35   :  { %1035 = vmatprep.subr.bf16.mxu0 %v1156_v6  ;;  %1056 = vmatpush3.bf16.msra.mxu1 %v1155_v5 }
  0x36   :  { %1057 = vmatprep.subr.bf16.mxu1 %v1157_v7 }
  0x38   :  { %1036 = vmatpush3.bf16.msra.mxu0 %v1158_v8 }
  0x39   :  { %1037 = vmatprep.subr.bf16.mxu0 %v1160_v10  ;;  %1058 = vmatpush3.bf16.msra.mxu1 %v1159_v9 }
  0x3a   :  { %12 = vsyncpa [#allocation3], 0  ;;  %1059 = vmatprep.subr.bf16.mxu1 %v1161_v11  ;;  %v1165_v15 = vld [vmem:[%s1498_s1 + $0x1f8] sm:$0xff]   ;;  %v191_v17 = vrot.slane %v1353_v43, %v1349_v41  ;;  %v1168_v20 = vld [vmem:[%s1500_s3] sm:$0xff]   ;;  %v1205_v21 = vmov 0.0   ;;  %vm1206_vm0 = vmmov 0  }
  0x3b   :  { %v1166_v16 = vld [vmem:[%s1498_s1 + $0x138] sm:$0xff]   ;;  %v1169_v22 = vld [vmem:[%s1500_s3 + $0x8] sm:$0xff]   ;;  %v1170_v23 = vld [vmem:[%s1500_s3 + $0x10] sm:$0xff]   ;;  %vm772_vm1 = vcmask 1024   ;;  %s1208_s23 = smov [#allocation2]   ;;  %vm887_vm2 = vcmask 74752  }
  0x3c   :  { %1038 = vmatpush3.bf16.msra.mxu0 %v1162_v12  ;;  %v1167_v18 = vld [vmem:[%s1498_s1 + $0x1b8] sm:$0xff]   ;;  %v207_v19 = vcombine.high %v191_v17, %v191_v17  ;;  %v1172_v25 = vld [vmem:[%s1500_s3 + $0x20] sm:$0xff]   ;;  %v1173_v26 = vld [vmem:[%s1500_s3 + $0x28] sm:$0xff]   ;;  %s897_s24 = sshll.u32 %s1208_s23, 4  ;;  %s898_s24 = int_to_ptr.vmem [resolvable:$true] %s897_s24 }
  0x3d   :  { %1039 = vmatprep.subr.bf16.mxu0 %v1164_v13  ;;  %1060 = vmatpush3.bf16.msra.mxu1 %v1163_v14  ;;  %v1171_v24 = vld [vmem:[%s1500_s3 + $0x18] sm:$0xff]   ;;  %v1174_v27 = vld [vmem:[%s1500_s3 + $0x30] sm:$0xff]   ;;  %v907_v30 = vld [vmem:[%s1499_s2] ss:$0 sm:$0xff]  ;;  %s1207_s2 = smov 28   ;;  %s1180_s25 = scalar_lea.vmem %s898_s24, 32 }
  0x3e   :  { %1061 = vmatprep.subr.bf16.mxu1 %v1165_v15  ;;  %v1175_v28 = vld [vmem:[%s1500_s3 + $0x38] sm:$0xff]   ;;  %v972_v62 = vld [vmem:[%s1501_s4] ss:$0 sm:$0xff]  ;;  %p1181_p0 = scmp.ne.s32.totalorder %s898_s24, %s1180_s25  ;;  %p1185_p1 = scmp.lt.s32.totalorder %s898_s24, %s898_s24 }
  0x3f   :  { %p1186_p2 = scmp.lt.s32.totalorder %s1180_s25, %s1180_s25 }
  0x40   :  { %1040 = vmatpush3.bf16.msra.mxu0 %v1166_v16 }
  0x41   :  { %1062 = vmatpush3.bf16.msra.mxu1 %v1167_v18  ;;  %1078 = vmatprep.subr.bf16.mxu0 %v1205_v21  ;;  %p1187_p3 = por %p1186_p2, %p1185_p1 }
  0x43   :  { %715 = vmatmul.mubr.bf16.vlgmr.msra.gmra.mrb[4].mxu0 %v191_v17  ;;  %p1188_p4 = pnand %p1187_p3, %p1181_p0 }
  0x44   :  { %755 = vmatmul.mubr.bf16.vlgmr.msra.gmra.mrb[4].mxu1 %v207_v19  ;;  %1079 = vmatpush3.bf16.msra.mxu0 %v1168_v20 }
  0x45   :  { %1080 = vmatprep.subr.bf16.mxu0 %v1205_v21  ;;  %1094 = vmatprep.mubr.msk.bf16.mxu0 %vm1206_vm0, %v1205_v21 }
  0x48   :  { %1081 = vmatpush3.bf16.msra.mxu0 %v1169_v22 }
  0x49   :  { %1082 = vmatprep.subr.bf16.mxu0 %v1205_v21 }
  0x4c   :  { %1083 = vmatpush3.bf16.msra.mxu0 %v1170_v23 }
  0x4d   :  { %1084 = vmatprep.subr.bf16.mxu0 %v1205_v21 }
  0x50   :  { %1085 = vmatpush3.bf16.msra.mxu0 %v1171_v24 }
  0x51   :  { %1086 = vmatprep.subr.bf16.mxu0 %v1205_v21 }
  0x54   :  { %1087 = vmatpush3.bf16.msra.mxu0 %v1172_v25 }
  0x55   :  { %1088 = vmatprep.subr.bf16.mxu0 %v1205_v21 }
  0x58   :  { %1089 = vmatpush3.bf16.msra.mxu0 %v1173_v26 }
  0x59   :  { %1090 = vmatprep.subr.bf16.mxu0 %v1205_v21 }
  0x5c   :  { %1091 = vmatpush3.bf16.msra.mxu0 %v1174_v27 }
  0x5d   :  { %1092 = vmatprep.subr.bf16.mxu0 %v1205_v21 }
  0x60   :  { %1093 = vmatpush3.bf16.msra.mxu0 %v1175_v28 }
  0xf6   :  { %v997_v29 = vpop.f32.mrb[0].mxu0 }
  0xf7   :  { %v998_v31 = vpop.f32.mrb[1].mxu0  ;;  %v1019_v32 = vpop.f32.mrb[0].mxu1 }
  0xf8   :  { %v999_v33 = vadd.f32 %v998_v31, %v997_v29  ;;  %v1000_v34 = vpop.f32.mrb[2].mxu0  ;;  %v1020_v35 = vpop.f32.mrb[1].mxu1 }
  0xf9   :  { %v1001_v36 = vpop.f32.mrb[3].mxu0  ;;  %v1021_v38 = vadd.f32 %v1020_v35, %v1019_v32  ;;  %v1022_v39 = vpop.f32.mrb[2].mxu1 }
  0xfa   :  { %v637_v37 = vadd.f32 %v999_v33, %v907_v30  ;;  %v1023_v40 = vpop.f32.mrb[3].mxu1 }
  0xfc   :  { %v677_v41 = vadd.f32 %v1021_v38, %v637_v37 }
 0x116   :  { %v1041_v42 = vpop.f32.mrb[4].mxu0 }
 0x117   :  { %v1042_v43 = vpop.f32.mrb[5].mxu0  ;;  %v1063_v44 = vpop.f32.mrb[4].mxu1 }
 0x118   :  { %v1043_v45 = vadd.f32 %v1042_v43, %v1041_v42  ;;  %v1044_v46 = vpop.f32.mrb[6].mxu0  ;;  %v1064_v47 = vpop.f32.mrb[5].mxu1 }
 0x119   :  { %v1045_v48 = vpop.f32.mrb[7].mxu0  ;;  %v1065_v50 = vadd.f32 %v1064_v47, %v1063_v44  ;;  %v1066_v51 = vpop.f32.mrb[6].mxu1 }
 0x11a   :  { %v717_v49 = vadd.f32 %v1043_v45, %v677_v41  ;;  %v1067_v52 = vpop.f32.mrb[7].mxu1 }
 0x11c   :  { %v757_v53 = vadd.f32 %v1065_v50, %v717_v49 }
 0x11e   :  { %v762_v54 = vsub.f32 0.0, %v757_v53  ;;  %v774_v55 = vmax.f32 %v757_v53, 0.0 }
 0x120   :  { %v763_v56 = vmul.f32 1.442695, %v762_v54  ;;  %v775_v57 = vpack.c.bf16 %v774_v55, %v774_v55 }
 0x122   :  { %1176 = vpow2.f32 %v763_v56  ;;  %1095 = vmatmul.mubr.bf16.vlgmr.msra.gmra.mrb[8].mxu0 %v775_v57 }
 0x12c   :  { %v1177_v58 = vpop.eup %1176 }
 0x12d   :  { %v765_v59 = vadd.f32 1.0, %v1177_v58 }
 0x12f   :  { %1178 = vrcp.f32 %v765_v59 }
 0x139   :  { %v1179_v60 = vpop.eup %1178 }
 0x13a   :  { %769 = vrot.lane.b32.xlu0 %v1179_v60, %s1207_s2 }
 0x1ac   :  { %v770_v61 = vpop.permute.xlu0 %769 }
 0x1ad   :  { %773 = vst.msk [vmem:[%s1502_s5] sm:$0x3] %vm772_vm1, %v770_v61 }
 0x1f5   :  { %v881_v63 = vpop.f32.mrb[8].mxu0 }
 0x1f6   :  { %v882_v0 = vadd.f32 %v972_v62, %v881_v63  ;;  %v1096_v1 = vpop.f32.mrb[9].mxu0 }
 0x1f7   :  { %v884_v2 = vpop.f32.mrb[10].mxu0 }
 0x1f8   :  { %v1097_v3 = vpop.f32.mrb[11].mxu0  ;;  %888 = vst.msk [vmem:[#allocation2] sm:$0x3] %vm887_vm2, %v882_v0 }
 0x1f9   :  { %1191 = shalt.err (!%p1188_p4)
}
 0x1fa   :  { %s1192_s4 = scalar_lea.hbm %s1503_s6, 32 }
 0x1fb   :  { %p1193_p5 = scmp.ne.s32.totalorder %s1503_s6, %s1192_s4  ;;  %p1196_p6 = scmp.lt.u32.totalorder %s1192_s4, %s1503_s6 }
 0x1fd   :  { %p1198_p7 = pnand %p1196_p6, %p1193_p5 }
 0x1ff   :  { %1201 = shalt.err (!%p1198_p7)
}
 0x200   :  { %900 = dma.vmem_to_hbm [thread:$0]  %s898_s24, 32, %s1503_s6, [#allocation3]  }
 0x201   :  { %1202 = dma.done.wait [#allocation3], 32  }
 0x202   :  { %1203 = vsyncadd [#allocation3], 4294967264 }
 0x203   :  { %906 = vsyncpa [#allocation3], 1 }

</bundles_post_ra>
